<compile_context>
chip_gen: v5e
topology: v5e:2x2
jax: 0.10.0
libtpu: 0.0.40
codegen_flags: <defaults>
</compile_context>

<pallas_src>
import functools

import jax
import jax.numpy as jnp
from jax.experimental import pallas as pl
from jax.experimental.pallas import tpu as pltpu

# MXU input dtype (accumulation is always f32; LN/softmax math stays f32).
MXU_DTYPE = jnp.bfloat16
LN_EPS = 1e-6  # timm/DeiT LayerNorm eps (PyTorch nn.LayerNorm default is 1e-5).


def _pick_vmem_limit():
    """Per-generation scoped-VMEM budget (v5e/v6e: 128 MiB physical, v7x: 64 MiB)."""
    try:
        kind = jax.devices()[0].device_kind.lower()
    except Exception:
        return 32 * 1024 * 1024
    if "v5" in kind or "v6" in kind:
        return 96 * 1024 * 1024
    if "v7" in kind or "7x" in kind:
        return 48 * 1024 * 1024
    return 32 * 1024 * 1024


VMEM_LIMIT = _pick_vmem_limit()


def _round_up(x, m):
    return ((x + m - 1) // m) * m


def _choose_block(dim, pref, align):
    """Pick (block, padded_dim). Prefers full-dim blocks (no padding) or exact
    aligned divisors; only falls back to host-side zero padding when needed."""
    if dim <= pref:
        return dim, dim                       # full-dim block: always legal
    if dim % align == 0:
        b = (pref // align) * align
        while b >= max(align, pref // 2):
            if dim % b == 0:
                return b, dim                 # exact divisor: no padding
            b -= align
    b = (pref // align) * align
    return b, _round_up(dim, b)               # fallback: pad


def _pad2d(x, rows, cols):
    r, c = x.shape
    if r == rows and c == cols:
        return x
    return jnp.pad(x, ((0, rows - r), (0, cols - c)))


# ------------------------ fused tiled linear kernel -------------------------

def _fused_linear_kernel(*refs, n_k, has_ln, has_res, activation):
    it = iter(refs)
    x_ref = next(it)
    w_ref = next(it)
    b_ref = next(it)
    g_ref = bb_ref = r_ref = None
    if has_ln:
        g_ref = next(it)
        bb_ref = next(it)
    if has_res:
        r_ref = next(it)
    o_ref = next(it)
    xn_ref = next(it) if has_ln else None
    acc_ref = next(it) if n_k > 1 else None

    j_idx = pl.program_id(1)
    k_idx = pl.program_id(2)

    if has_ln:
        # LayerNorm over the full (untiled) K axis, computed once per row block
        # (j == 0) and cached (normalized + bf16-cast) in VMEM for all N tiles.
        @pl.when(j_idx == 0)
        def _():
            xf = x_ref[...].astype(jnp.float32)
            mu = jnp.mean(xf, axis=-1, keepdims=True)
            d = xf - mu
            var = jnp.mean(d * d, axis=-1, keepdims=True)
            xn = d * jax.lax.rsqrt(var + LN_EPS)
            xn = xn * g_ref[...] + bb_ref[...]
            xn_ref[...] = xn.astype(MXU_DTYPE)

        x_in = xn_ref[...]
    else:
        x_in = x_ref[...].astype(MXU_DTYPE)

    part = jnp.dot(x_in, w_ref[...], preferred_element_type=jnp.float32)

    def finalize(acc):
        y = acc + b_ref[...]
        if activation == "gelu":
            # TODO(synk): PyTorch nn.GELU default is exact erf; tanh approx here.
            y = jax.nn.gelu(y, approximate=True)
        if has_res:
            y = y + r_ref[...].astype(jnp.float32)
        o_ref[...] = y.astype(o_ref.dtype)

    if n_k > 1:
        @pl.when(k_idx == 0)
        def _():
            acc_ref[...] = jnp.zeros_like(acc_ref)

        acc_ref[...] += part

        @pl.when(k_idx == n_k - 1)
        def _():
            finalize(acc_ref[...])
    else:
        finalize(part)


def fused_linear(x, w, b, *, ln=None, residual=None, activation=None,
                 out_dtype=jnp.float32, tm=256, tn=512, tk=512):
    """y = [LN(x)] @ w + b, optional GELU, optional +residual.

    x: (M, K), w: (K, N), b: (N,).  Tiled Pallas matmul with an f32 VMEM
    accumulator; matmul operands are fed to the MXU in bf16, LN / bias / GELU /
    residual math in f32.  Block shapes are full dims or exact divisors where
    possible so activations are not padded/copied in HBM.
    """
    M, K = x.shape
    N = w.shape[1]
    has_ln = ln is not None
    has_res = residual is not None

    bm, Mp = _choose_block(M, tm, 8)
    bn, Np = _choose_block(N, tn, 128)
    if has_ln:
        bk, Kp = K, K                  # LN needs full-row stats: K untiled/unpadded
    else:
        bk, Kp = _choose_block(K, tk, 128)
    n_k = Kp // bk

    args = [
        _pad2d(x, Mp, Kp),
        _pad2d(w.astype(MXU_DTYPE), Kp, Np),   # bf16 weights: MXU rate + 1/2 traffic
        _pad2d(b.reshape(1, N).astype(jnp.float32), 1, Np),
    ]
    in_specs = [
        pl.BlockSpec((bm, bk), lambda i, j, k: (i, k)),
        pl.BlockSpec((bk, bn), lambda i, j, k: (k, j)),
        pl.BlockSpec((1, bn), lambda i, j, k: (0, j)),
    ]
    if has_ln:
        g, bb = ln
        args += [g.reshape(1, K).astype(jnp.float32),
                 bb.reshape(1, K).astype(jnp.float32)]
        in_specs += [pl.BlockSpec((1, bk), lambda i, j, k: (0, k)),
                     pl.BlockSpec((1, bk), lambda i, j, k: (0, k))]
    if has_res:
        args += [_pad2d(residual, Mp, Np)]
        in_specs += [pl.BlockSpec((bm, bn), lambda i, j, k: (i, j))]

    scratch = []
    if has_ln:
        scratch.append(pltpu.VMEM((bm, bk), MXU_DTYPE))   # cached normalized x
    if n_k > 1:
        scratch.append(pltpu.VMEM((bm, bn), jnp.float32))  # f32 accumulator

    kern = functools.partial(_fused_linear_kernel, n_k=n_k, has_ln=has_ln,
                             has_res=has_res, activation=activation)

    # j must stay sequential per core when the LN result is cached across j.
    dims = ("parallel", "arbitrary" if has_ln else "parallel", "arbitrary")

    out = pl.pallas_call(
        kern,
        out_shape=jax.ShapeDtypeStruct((Mp, Np), out_dtype),
        grid=(Mp // bm, Np // bn, n_k),
        in_specs=in_specs,
        out_specs=pl.BlockSpec((bm, bn), lambda i, j, k: (i, j)),
        scratch_shapes=scratch,
        compiler_params=pltpu.CompilerParams(
            dimension_semantics=dims, vmem_limit_bytes=VMEM_LIMIT),
    )(*args)
    if Mp != M or Np != N:
        out = out[:M, :N]
    return out


# ------------------- fused attention (+proj +residual) kernel ----------------

def _attention_block_kernel(qkv_ref, x_ref, wp_ref, bp_ref, attns_hbm_ref,
                            o_ref, rec_ref, head_ref, *, num_heads, scale):
    del attns_hbm_ref  # aliased to rec_ref's HBM buffer; never read (no DMA issued)
    qkv = qkv_ref[...]                         # (N, 3C) bf16, timm [q|k|v] layout
    C3 = qkv.shape[1]
    C = C3 // 3
    dh = C // num_heads

    # TODO(synk): at real head counts (H=12, dh=64) switch this static unroll to
    # a lax.fori_loop over 128-lane head groups (pl.ds + pl.multiple_of).
    for h in range(num_heads):
        qh = qkv[:, h * dh:(h + 1) * dh]
        kh = qkv[:, C + h * dh:C + (h + 1) * dh]
        vh = qkv[:, 2 * C + h * dh:2 * C + (h + 1) * dh]
        # q @ k^T via dot_general contracting the last dims (no explicit k.T).
        s = jax.lax.dot_general(qh, kh, (((1,), (1,)), ((), ())),
                                preferred_element_type=jnp.float32) * scale
        s = s - jnp.max(s, axis=-1, keepdims=True)
        p = jnp.exp(s)
        p = p / jnp.sum(p, axis=-1, keepdims=True)   # exact: attns is user-visible
        ho = jnp.dot(p.astype(MXU_DTYPE), vh, preferred_element_type=jnp.float32)
        head_ref[:, h * dh:(h + 1) * dh] = ho.astype(head_ref.dtype)

    y = jnp.dot(head_ref[...], wp_ref[...],
                preferred_element_type=jnp.float32) + bp_ref[...]
    rec_ref[...] = y.astype(rec_ref.dtype)             # Recorder: Attention output
    o_ref[...] = (x_ref[...].astype(jnp.float32) + y).astype(o_ref.dtype)  # residual


def attention_block(x, qkv, w_proj, b_proj, attns, layer, *, num_heads):
    """Fused MHA + output projection + residual add for one transformer block.

    The Attention-module output (the Recorder recording) is written directly
    into attns[:, layer] via a layer-indexed out_spec + input_output_aliases;
    the aliased input stays in HBM (pl.ANY) so no dead DMA is issued for it.
    """
    B, N, C = x.shape
    C3 = qkv.shape[-1]
    L = attns.shape[1]
    scale = (C // num_heads) ** -0.5
    kern = functools.partial(_attention_block_kernel,
                             num_heads=num_heads, scale=scale)
    x_new, attns = pl.pallas_call(
        kern,
        out_shape=(jax.ShapeDtypeStruct((B, N, C), x.dtype),
                   jax.ShapeDtypeStruct((B, L, N, C), jnp.float32)),
        grid=(B,),
        in_specs=[
            pl.BlockSpec((None, N, C3), lambda bi: (bi, 0, 0)),
            pl.BlockSpec((None, N, C), lambda bi: (bi, 0, 0)),
            pl.BlockSpec((C, C), lambda bi: (0, 0)),
            pl.BlockSpec((1, C), lambda bi: (0, 0)),
            pl.BlockSpec(memory_space=pl.ANY),   # aliased Recorder buffer (no DMA)
        ],
        out_specs=(
            pl.BlockSpec((None, N, C), lambda bi: (bi, 0, 0)),
            pl.BlockSpec((None, None, N, C), lambda bi: (bi, layer, 0, 0)),
        ),
        scratch_shapes=[pltpu.VMEM((N, C), MXU_DTYPE)],   # concatenated head outputs
        input_output_aliases={4: 1},
        compiler_params=pltpu.CompilerParams(
            dimension_semantics=("parallel",),
            vmem_limit_bytes=VMEM_LIMIT),
    )(qkv, x, w_proj.astype(MXU_DTYPE),
      b_proj.reshape(1, C).astype(jnp.float32), attns)
    return x_new, attns


# ------------------------- Synthetic DeiT + Recorder -------------------------

def transformer_block(x, attns, p, layer, num_heads):
    B, N, C = x.shape
    x2d = x.reshape(B * N, C)
    # LN1 + QKV projection fused; output kept in bf16 in the timm (B,N,3C) layout.
    qkv = fused_linear(x2d, p["w_qkv"], p["b_qkv"], ln=(p["ln1_g"], p["ln1_b"]),
                       out_dtype=MXU_DTYPE)
    qkv = qkv.reshape(B, N, 3 * C)
    # MHA + proj + residual + in-place recording in one kernel per batch item.
    x, attns = attention_block(x, qkv, p["w_proj"], p["b_proj"], attns, layer,
                               num_heads=num_heads)
    x2d = x.reshape(B * N, C)
    # LN2 + FC1 + GELU fused; FC2 + residual-add fused. bf16 activations in HBM.
    h = fused_linear(x2d, p["w_fc1"], p["b_fc1"], ln=(p["ln2_g"], p["ln2_b"]),
                     activation="gelu", out_dtype=MXU_DTYPE)
    x2d = fused_linear(h, p["w_fc2"], p["b_fc2"], residual=x2d, out_dtype=MXU_DTYPE)
    return x2d.reshape(B, N, C), attns


def deit_forward(img, params, *, patch, num_heads):
    B, Ci, H, W = img.shape
    nh, nw = H // patch, W // patch
    D = params["w_patch"].shape[1]
    # Conv2d(kernel=stride=patch) == unfold into patches + linear (glue reshape).
    patches = (img.reshape(B, Ci, nh, patch, nw, patch)
               .transpose(0, 2, 4, 1, 3, 5)
               .reshape(B * nh * nw, Ci * patch * patch)).astype(MXU_DTYPE)
    x = fused_linear(patches, params["w_patch"], params["b_patch"],
                     out_dtype=MXU_DTYPE)
    x = x.reshape(B, nh * nw, D)
    cls = jnp.broadcast_to(params["cls_token"], (B, 1, D))
    dist = jnp.broadcast_to(params["dist_token"], (B, 1, D))
    x = jnp.concatenate([cls, dist, x.astype(jnp.float32)], axis=1) + params["pos_embed"]
    x = x.astype(MXU_DTYPE)   # bf16 activations in HBM; kernels accumulate in f32

    N = nh * nw + 2
    L = len(params["blocks"])
    # Preallocated Recorder buffer; each layer writes its slice in place (f32).
    attns = jnp.zeros((B, L, N, D), jnp.float32)
    for layer, blk in enumerate(params["blocks"]):
        x, attns = transformer_block(x, attns, blk, layer, num_heads)

    # Final LayerNorm fused into each head matmul (LN is row-wise, so applying
    # it separately to the cls row and the dist row is exact); two small calls
    # avoid the discarded cross products of a merged (2B, 2nc) matmul.
    out_cls = fused_linear(x[:, 0, :], params["w_head"], params["b_head"],
                           ln=(params["norm_g"], params["norm_b"]))
    out_dist = fused_linear(x[:, 1, :], params["w_head_dist"], params["b_head_dist"],
                            ln=(params["norm_g"], params["norm_b"]))
    pred = 0.5 * (out_cls + out_dist)          # DeiT eval-time prediction
    return pred, attns


def recorder_forward(img, params, *, patch, num_heads):
    """Recorder.forward: run deit, return (pred, stacked per-layer attn outputs)."""
    return deit_forward(img, params, patch=patch, num_heads=num_heads)


# -------------------------------- Param init ---------------------------------

def init_params(key, *, img_channels, patch, num_patches, dim, depth, num_heads,
                mlp_dim, num_classes):
    keys = list(jax.random.split(key, 8 + depth * 4))
    ki = iter(keys)

    def nrm(shape, scale=0.02):
        return scale * jax.random.normal(next(ki), shape, dtype=jnp.float32)

    patch_dim = img_channels * patch * patch
    params = {
        "w_patch": nrm((patch_dim, dim)),
        "b_patch": jnp.zeros((dim,), jnp.float32),
        "cls_token": nrm((1, 1, dim)),
        "dist_token": nrm((1, 1, dim)),
        "pos_embed": nrm((1, num_patches + 2, dim)),
        "norm_g": jnp.ones((dim,), jnp.float32),
        "norm_b": jnp.zeros((dim,), jnp.float32),
        "w_head": nrm((dim, num_classes)),
        "b_head": jnp.zeros((num_classes,), jnp.float32),
        "w_head_dist": nrm((dim, num_classes)),
        "b_head_dist": jnp.zeros((num_classes,), jnp.float32),
        "blocks": [],
    }
    for _ in range(depth):
        params["blocks"].append({
            "ln1_g": jnp.ones((dim,), jnp.float32),
            "ln1_b": jnp.zeros((dim,), jnp.float32),
            "w_qkv": nrm((dim, 3 * dim)),
            "b_qkv": jnp.zeros((3 * dim,), jnp.float32),
            "w_proj": nrm((dim, dim)),
            "b_proj": jnp.zeros((dim,), jnp.float32),
            "ln2_g": jnp.ones((dim,), jnp.float32),
            "ln2_b": jnp.zeros((dim,), jnp.float32),
            "w_fc1": nrm((dim, mlp_dim)),
            "b_fc1": jnp.zeros((mlp_dim,), jnp.float32),
            "w_fc2": nrm((mlp_dim, dim)),
            "b_fc2": jnp.zeros((dim,), jnp.float32),
        })
    return params


# ----------------------------------- Main -------------------------------------

if __name__ == "__main__":
    B, C_in, H, W = 2, 3, 16, 16
    patch = 4
    dim, depth, num_heads, mlp_dim, num_classes = 32, 2, 4, 64, 10
    num_patches = (H // patch) * (W // patch)

    img = jax.random.normal(jax.random.PRNGKey(0), (B, C_in, H, W), dtype=jnp.float32)
    params = init_params(
        jax.random.PRNGKey(42),
        img_channels=C_in, patch=patch, num_patches=num_patches,
        dim=dim, depth=depth, num_heads=num_heads,
        mlp_dim=mlp_dim, num_classes=num_classes,
    )

    fwd = jax.jit(functools.partial(recorder_forward, patch=patch, num_heads=num_heads))
    pred, attns = fwd(img, params)
    jax.block_until_ready((pred, attns))

    assert pred.shape == (B, num_classes)
    assert attns.shape == (B, depth, num_patches + 2, dim)
    assert bool(jnp.all(jnp.isfinite(pred))) and bool(jnp.all(jnp.isfinite(attns)))
    print("KERNEL_OK")
</pallas_src>

<mosaic_0001>
module attributes {stable_mosaic.version = 11 : i64} {
  func.func @_fused_linear_kernel(%arg0: i32, %arg1: i32, %arg2: i32, %arg3: memref<36x32xbf16, #tpu.memory_space<vmem>>, %arg4: memref<32x96xbf16, #tpu.memory_space<vmem>>, %arg5: memref<1x96xf32, #tpu.memory_space<vmem>>, %arg6: memref<1x32xf32, #tpu.memory_space<vmem>>, %arg7: memref<1x32xf32, #tpu.memory_space<vmem>>, %arg8: memref<36x96xbf16, #tpu.memory_space<vmem>>, %arg9: memref<36x32xbf16, #tpu.memory_space<vmem>>) attributes {dimension_semantics = [#tpu.dimension_semantics<parallel>, #tpu.dimension_semantics<arbitrary>, #tpu.dimension_semantics<arbitrary>], iteration_bounds = array<i64: 1, 1, 1>, scalar_prefetch = 0 : i64, scratch_operands = 1 : i64, tpu.core_type = #tpu.core_type<tc>, window_params = [{transform_indices = @transform_0, window_bounds = array<i64: 36, 32>}, {transform_indices = @transform_1, window_bounds = array<i64: 32, 96>}, {transform_indices = @transform_2, window_bounds = array<i64: 1, 96>}, {transform_indices = @transform_3, window_bounds = array<i64: 1, 32>}, {transform_indices = @transform_4, window_bounds = array<i64: 1, 32>}, {transform_indices = @transform_5, window_bounds = array<i64: 36, 96>}]} {
    %c0_i32 = arith.constant 0 : i32
    %0 = arith.cmpi eq, %arg1, %c0_i32 : i32
    %1 = arith.extui %0 : i1 to i32
    %c0_i32_0 = arith.constant 0 : i32
    %2 = arith.cmpi ne, %1, %c0_i32_0 : i32
    scf.if %2 {
      %c0_8 = arith.constant 0 : index
      %c0_9 = arith.constant 0 : index
      %11 = vector.load %arg3[%c0_8, %c0_9] : memref<36x32xbf16, #tpu.memory_space<vmem>>, vector<36x32xbf16>
      %12 = arith.extf %11 : vector<36x32xbf16> to vector<36x32xf32>
      %cst_10 = arith.constant dense<0.000000e+00> : vector<36xf32>
      %13 = vector.multi_reduction <add>, %12, %cst_10 [1] : vector<36x32xf32> to vector<36xf32>
      %14 = vector.shape_cast %13 : vector<36xf32> to vector<36x1xf32>
      %cst_11 = arith.constant 3.200000e+01 : f32
      %15 = vector.broadcast %cst_11 : f32 to vector<36x1xf32>
      %16 = arith.divf %14, %15 : vector<36x1xf32>
      %17 = vector.broadcast %16 : vector<36x1xf32> to vector<36x32xf32>
      %18 = arith.subf %12, %17 : vector<36x32xf32>
      %19 = arith.mulf %18, %18 : vector<36x32xf32>
      %cst_12 = arith.constant dense<0.000000e+00> : vector<36xf32>
      %20 = vector.multi_reduction <add>, %19, %cst_12 [1] : vector<36x32xf32> to vector<36xf32>
      %21 = vector.shape_cast %20 : vector<36xf32> to vector<36x1xf32>
      %cst_13 = arith.constant 3.200000e+01 : f32
      %22 = vector.broadcast %cst_13 : f32 to vector<36x1xf32>
      %23 = arith.divf %21, %22 : vector<36x1xf32>
      %cst_14 = arith.constant 9.99999997E-7 : f32
      %24 = vector.broadcast %cst_14 : f32 to vector<36x1xf32>
      %25 = arith.addf %23, %24 : vector<36x1xf32>
      %26 = math.rsqrt %25 : vector<36x1xf32>
      %27 = vector.broadcast %26 : vector<36x1xf32> to vector<36x32xf32>
      %28 = arith.mulf %18, %27 : vector<36x32xf32>
      %c0_15 = arith.constant 0 : index
      %c0_16 = arith.constant 0 : index
      %29 = vector.load %arg6[%c0_15, %c0_16] : memref<1x32xf32, #tpu.memory_space<vmem>>, vector<1x32xf32>
      %30 = vector.broadcast %29 : vector<1x32xf32> to vector<36x32xf32>
      %31 = arith.mulf %28, %30 : vector<36x32xf32>
      %c0_17 = arith.constant 0 : index
      %c0_18 = arith.constant 0 : index
      %32 = vector.load %arg7[%c0_17, %c0_18] : memref<1x32xf32, #tpu.memory_space<vmem>>, vector<1x32xf32>
      %33 = vector.broadcast %32 : vector<1x32xf32> to vector<36x32xf32>
      %34 = arith.addf %31, %33 : vector<36x32xf32>
      %35 = arith.truncf %34 : vector<36x32xf32> to vector<36x32xbf16>
      %c0_19 = arith.constant 0 : index
      %c0_20 = arith.constant 0 : index
      %36 = vector.load %arg9[%c0_19, %c0_20] : memref<36x32xbf16, #tpu.memory_space<vmem>>, vector<36x32xbf16>
      tpu.vector_store %arg9[%c0_19, %c0_20], %35 {strides = array<i32>} : memref<36x32xbf16, #tpu.memory_space<vmem>>, vector<36x32xbf16>,
    } else {
    }
    %c0 = arith.constant 0 : index
    %c0_1 = arith.constant 0 : index
    %3 = vector.load %arg9[%c0, %c0_1] : memref<36x32xbf16, #tpu.memory_space<vmem>>, vector<36x32xbf16>
    %c0_2 = arith.constant 0 : index
    %c0_3 = arith.constant 0 : index
    %4 = vector.load %arg4[%c0_2, %c0_3] : memref<32x96xbf16, #tpu.memory_space<vmem>>, vector<32x96xbf16>
    %cst = arith.constant dense<0.000000e+00> : vector<36x96xf32>
    %5 = tpu.matmul %3, %4, %cst {dimension_numbers = #tpu.dot_dimension_numbers<[1], [0], [0], [1], [0, 0, 1, 1], [], []>} : vector<36x32xbf16>, vector<32x96xbf16>, vector<36x96xf32> -> vector<36x96xf32>
    %c0_4 = arith.constant 0 : index
    %c0_5 = arith.constant 0 : index
    %6 = vector.load %arg5[%c0_4, %c0_5] : memref<1x96xf32, #tpu.memory_space<vmem>>, vector<1x96xf32>
    %7 = vector.broadcast %6 : vector<1x96xf32> to vector<36x96xf32>
    %8 = arith.addf %5, %7 : vector<36x96xf32>
    %9 = arith.truncf %8 : vector<36x96xf32> to vector<36x96xbf16>
    %c0_6 = arith.constant 0 : index
    %c0_7 = arith.constant 0 : index
    %10 = vector.load %arg8[%c0_6, %c0_7] : memref<36x96xbf16, #tpu.memory_space<vmem>>, vector<36x96xbf16>
    tpu.vector_store %arg8[%c0_6, %c0_7], %9 {strides = array<i32>} : memref<36x96xbf16, #tpu.memory_space<vmem>>, vector<36x96xbf16>,
    return
  }
  func.func @transform_0(%arg0: i32, %arg1: i32, %arg2: i32) -> (i32, i32) {
    %c0_i32 = arith.constant 0 : i32
    return %arg0, %arg2 : i32, i32
  }
  func.func @transform_1(%arg0: i32, %arg1: i32, %arg2: i32) -> (i32, i32) {
    %c0_i32 = arith.constant 0 : i32
    return %arg2, %arg1 : i32, i32
  }
  func.func @transform_2(%arg0: i32, %arg1: i32, %arg2: i32) -> (i32, i32) {
    %c0_i32 = arith.constant 0 : i32
    %c0_i32_0 = arith.constant 0 : i32
    return %c0_i32, %arg1 : i32, i32
  }
  func.func @transform_3(%arg0: i32, %arg1: i32, %arg2: i32) -> (i32, i32) {
    %c0_i32 = arith.constant 0 : i32
    %c0_i32_0 = arith.constant 0 : i32
    return %c0_i32, %arg2 : i32, i32
  }
  func.func @transform_4(%arg0: i32, %arg1: i32, %arg2: i32) -> (i32, i32) {
    %c0_i32 = arith.constant 0 : i32
    %c0_i32_0 = arith.constant 0 : i32
    return %c0_i32, %arg2 : i32, i32
  }
  func.func @transform_5(%arg0: i32, %arg1: i32, %arg2: i32) -> (i32, i32) {
    %c0_i32 = arith.constant 0 : i32
    return %arg0, %arg1 : i32, i32
  }
}

module attributes {stable_mosaic.version = 11 : i64} {
  func.func @_fused_linear_kernel(%arg0: i32, %arg1: i32, %arg2: i32, %arg3: memref<32x48xbf16, #tpu.memory_space<vmem>>, %arg4: memref<48x32xbf16, #tpu.memory_space<vmem>>, %arg5: memref<1x32xf32, #tpu.memory_space<vmem>>, %arg6: memref<32x32xbf16, #tpu.memory_space<vmem>>) attributes {dimension_semantics = [#tpu.dimension_semantics<parallel>, #tpu.dimension_semantics<parallel>, #tpu.dimension_semantics<arbitrary>], iteration_bounds = array<i64: 1, 1, 1>, scalar_prefetch = 0 : i64, scratch_operands = 0 : i64, tpu.core_type = #tpu.core_type<tc>, window_params = [{transform_indices = @transform_0, window_bounds = array<i64: 32, 48>}, {transform_indices = @transform_1, window_bounds = array<i64: 48, 32>}, {transform_indices = @transform_2, window_bounds = array<i64: 1, 32>}, {transform_indices = @transform_3, window_bounds = array<i64: 32, 32>}]} {
    %c0 = arith.constant 0 : index
    %c0_0 = arith.constant 0 : index
    %0 = vector.load %arg3[%c0, %c0_0] : memref<32x48xbf16, #tpu.memory_space<vmem>>, vector<32x48xbf16>
    %c0_1 = arith.constant 0 : index
    %c0_2 = arith.constant 0 : index
    %1 = vector.load %arg4[%c0_1, %c0_2] : memref<48x32xbf16, #tpu.memory_space<vmem>>, vector<48x32xbf16>
    %cst = arith.constant dense<0.000000e+00> : vector<32x32xf32>
    %2 = tpu.matmul %0, %1, %cst {dimension_numbers = #tpu.dot_dimension_numbers<[1], [0], [0], [1], [0, 0, 1, 1], [], []>} : vector<32x48xbf16>, vector<48x32xbf16>, vector<32x32xf32> -> vector<32x32xf32>
    %c0_3 = arith.constant 0 : index
    %c0_4 = arith.constant 0 : index
    %3 = vector.load %arg5[%c0_3, %c0_4] : memref<1x32xf32, #tpu.memory_space<vmem>>, vector<1x32xf32>
    %4 = vector.broadcast %3 : vector<1x32xf32> to vector<32x32xf32>
    %5 = arith.addf %2, %4 : vector<32x32xf32>
    %6 = arith.truncf %5 : vector<32x32xf32> to vector<32x32xbf16>
    %c0_5 = arith.constant 0 : index
    %c0_6 = arith.constant 0 : index
    %7 = vector.load %arg6[%c0_5, %c0_6] : memref<32x32xbf16, #tpu.memory_space<vmem>>, vector<32x32xbf16>
    tpu.vector_store %arg6[%c0_5, %c0_6], %6 {strides = array<i32>} : memref<32x32xbf16, #tpu.memory_space<vmem>>, vector<32x32xbf16>,
    return
  }
  func.func @transform_0(%arg0: i32, %arg1: i32, %arg2: i32) -> (i32, i32) {
    %c0_i32 = arith.constant 0 : i32
    return %arg0, %arg2 : i32, i32
  }
  func.func @transform_1(%arg0: i32, %arg1: i32, %arg2: i32) -> (i32, i32) {
    %c0_i32 = arith.constant 0 : i32
    return %arg2, %arg1 : i32, i32
  }
  func.func @transform_2(%arg0: i32, %arg1: i32, %arg2: i32) -> (i32, i32) {
    %c0_i32 = arith.constant 0 : i32
    %c0_i32_0 = arith.constant 0 : i32
    return %c0_i32, %arg1 : i32, i32
  }
  func.func @transform_3(%arg0: i32, %arg1: i32, %arg2: i32) -> (i32, i32) {
    %c0_i32 = arith.constant 0 : i32
    return %arg0, %arg1 : i32, i32
  }
}

module attributes {stable_mosaic.version = 11 : i64} {
  func.func @_attention_block_kernel(%arg0: i32, %arg1: memref<1x18x96xbf16, #tpu.memory_space<vmem>>, %arg2: memref<1x18x32xbf16, #tpu.memory_space<vmem>>, %arg3: memref<32x32xbf16, #tpu.memory_space<vmem>>, %arg4: memref<1x32xf32, #tpu.memory_space<vmem>>, %arg5: memref<2x2x18x32xf32, #tpu.memory_space<any>>, %arg6: memref<1x18x32xbf16, #tpu.memory_space<vmem>>, %arg7: memref<1x1x18x32xf32, #tpu.memory_space<vmem>>, %arg8: memref<18x32xbf16, #tpu.memory_space<vmem>>) attributes {dimension_semantics = [#tpu.dimension_semantics<parallel>], iteration_bounds = array<i64: 2>, scalar_prefetch = 0 : i64, scratch_operands = 1 : i64, tpu.core_type = #tpu.core_type<tc>, window_params = [{transform_indices = @transform_0, window_bounds = array<i64: 1, 18, 96>}, {transform_indices = @transform_1, window_bounds = array<i64: 1, 18, 32>}, {pipeline_mode = #tpu.pipeline_mode<synchronous>, transform_indices = @transform_2, window_bounds = array<i64: 32, 32>}, {pipeline_mode = #tpu.pipeline_mode<synchronous>, transform_indices = @transform_3, window_bounds = array<i64: 1, 32>}, {}, {transform_indices = @transform_5, window_bounds = array<i64: 1, 18, 32>}, {transform_indices = @transform_6, window_bounds = array<i64: 1, 1, 18, 32>}]} {
    %c0 = arith.constant 0 : index
    %c0_0 = arith.constant 0 : index
    %c0_1 = arith.constant 0 : index
    %0 = vector.load %arg1[%c0, %c0_0, %c0_1] : memref<1x18x96xbf16, #tpu.memory_space<vmem>>, vector<1x18x96xbf16>
    %1 = vector.shape_cast %0 : vector<1x18x96xbf16> to vector<18x96xbf16>
    %2 = vector.extract_strided_slice %1 {offsets = [0, 0], sizes = [18, 8], strides = [1, 1]} : vector<18x96xbf16> to vector<18x8xbf16>
    %3 = vector.extract_strided_slice %1 {offsets = [0, 32], sizes = [18, 8], strides = [1, 1]} : vector<18x96xbf16> to vector<18x8xbf16>
    %4 = vector.extract_strided_slice %1 {offsets = [0, 64], sizes = [18, 8], strides = [1, 1]} : vector<18x96xbf16> to vector<18x8xbf16>
    %cst = arith.constant dense<0.000000e+00> : vector<18x18xf32>
    %5 = tpu.matmul %2, %3, %cst {dimension_numbers = #tpu.dot_dimension_numbers<[1], [1], [0], [0], [0, 0, 1, 0], [], []>} : vector<18x8xbf16>, vector<18x8xbf16>, vector<18x18xf32> -> vector<18x18xf32>
    %cst_2 = arith.constant 0.353553385 : f32
    %6 = vector.broadcast %cst_2 : f32 to vector<18x18xf32>
    %7 = arith.mulf %5, %6 : vector<18x18xf32>
    %cst_3 = arith.constant dense<0xFF800000> : vector<18xf32>
    %8 = vector.multi_reduction <maximumf>, %7, %cst_3 [1] : vector<18x18xf32> to vector<18xf32>
    %9 = vector.shape_cast %8 : vector<18xf32> to vector<18x1xf32>
    %10 = vector.broadcast %9 : vector<18x1xf32> to vector<18x18xf32>
    %11 = arith.subf %7, %10 : vector<18x18xf32>
    %12 = math.exp %11 : vector<18x18xf32>
    %cst_4 = arith.constant dense<0.000000e+00> : vector<18xf32>
    %13 = vector.multi_reduction <add>, %12, %cst_4 [1] : vector<18x18xf32> to vector<18xf32>
    %14 = vector.shape_cast %13 : vector<18xf32> to vector<18x1xf32>
    %15 = vector.broadcast %14 : vector<18x1xf32> to vector<18x18xf32>
    %16 = arith.divf %12, %15 : vector<18x18xf32>
    %17 = arith.truncf %16 : vector<18x18xf32> to vector<18x18xbf16>
    %cst_5 = arith.constant dense<0.000000e+00> : vector<18x8xf32>
    %18 = tpu.matmul %17, %4, %cst_5 {dimension_numbers = #tpu.dot_dimension_numbers<[1], [0], [0], [1], [0, 0, 1, 1], [], []>} : vector<18x18xbf16>, vector<18x8xbf16>, vector<18x8xf32> -> vector<18x8xf32>
    %19 = arith.truncf %18 : vector<18x8xf32> to vector<18x8xbf16>
    %c0_6 = arith.constant 0 : index
    %c0_7 = arith.constant 0 : index
    %20 = vector.load %arg8[%c0_6, %c0_7] : memref<18x32xbf16, #tpu.memory_space<vmem>>, vector<18x8xbf16>
    tpu.vector_store %arg8[%c0_6, %c0_7], %19 {strides = array<i32>} : memref<18x32xbf16, #tpu.memory_space<vmem>>, vector<18x8xbf16>,
    %21 = vector.extract_strided_slice %1 {offsets = [0, 8], sizes = [18, 8], strides = [1, 1]} : vector<18x96xbf16> to vector<18x8xbf16>
    %22 = vector.extract_strided_slice %1 {offsets = [0, 40], sizes = [18, 8], strides = [1, 1]} : vector<18x96xbf16> to vector<18x8xbf16>
    %23 = vector.extract_strided_slice %1 {offsets = [0, 72], sizes = [18, 8], strides = [1, 1]} : vector<18x96xbf16> to vector<18x8xbf16>
    %cst_8 = arith.constant dense<0.000000e+00> : vector<18x18xf32>
    %24 = tpu.matmul %21, %22, %cst_8 {dimension_numbers = #tpu.dot_dimension_numbers<[1], [1], [0], [0], [0, 0, 1, 0], [], []>} : vector<18x8xbf16>, vector<18x8xbf16>, vector<18x18xf32> -> vector<18x18xf32>
    %cst_9 = arith.constant 0.353553385 : f32
    %25 = vector.broadcast %cst_9 : f32 to vector<18x18xf32>
    %26 = arith.mulf %24, %25 : vector<18x18xf32>
    %cst_10 = arith.constant dense<0xFF800000> : vector<18xf32>
    %27 = vector.multi_reduction <maximumf>, %26, %cst_10 [1] : vector<18x18xf32> to vector<18xf32>
    %28 = vector.shape_cast %27 : vector<18xf32> to vector<18x1xf32>
    %29 = vector.broadcast %28 : vector<18x1xf32> to vector<18x18xf32>
    %30 = arith.subf %26, %29 : vector<18x18xf32>
    %31 = math.exp %30 : vector<18x18xf32>
    %cst_11 = arith.constant dense<0.000000e+00> : vector<18xf32>
    %32 = vector.multi_reduction <add>, %31, %cst_11 [1] : vector<18x18xf32> to vector<18xf32>
    %33 = vector.shape_cast %32 : vector<18xf32> to vector<18x1xf32>
    %34 = vector.broadcast %33 : vector<18x1xf32> to vector<18x18xf32>
    %35 = arith.divf %31, %34 : vector<18x18xf32>
    %36 = arith.truncf %35 : vector<18x18xf32> to vector<18x18xbf16>
    %cst_12 = arith.constant dense<0.000000e+00> : vector<18x8xf32>
    %37 = tpu.matmul %36, %23, %cst_12 {dimension_numbers = #tpu.dot_dimension_numbers<[1], [0], [0], [1], [0, 0, 1, 1], [], []>} : vector<18x18xbf16>, vector<18x8xbf16>, vector<18x8xf32> -> vector<18x8xf32>
    %38 = arith.truncf %37 : vector<18x8xf32> to vector<18x8xbf16>
    %c0_13 = arith.constant 0 : index
    %c8 = arith.constant 8 : index
    %39 = vector.load %arg8[%c0_13, %c8] : memref<18x32xbf16, #tpu.memory_space<vmem>>, vector<18x8xbf16>
    tpu.vector_store %arg8[%c0_13, %c8], %38 {strides = array<i32>} : memref<18x32xbf16, #tpu.memory_space<vmem>>, vector<18x8xbf16>,
    %40 = vector.extract_strided_slice %1 {offsets = [0, 16], sizes = [18, 8], strides = [1, 1]} : vector<18x96xbf16> to vector<18x8xbf16>
    %41 = vector.extract_strided_slice %1 {offsets = [0, 48], sizes = [18, 8], strides = [1, 1]} : vector<18x96xbf16> to vector<18x8xbf16>
    %42 = vector.extract_strided_slice %1 {offsets = [0, 80], sizes = [18, 8], strides = [1, 1]} : vector<18x96xbf16> to vector<18x8xbf16>
    %cst_14 = arith.constant dense<0.000000e+00> : vector<18x18xf32>
    %43 = tpu.matmul %40, %41, %cst_14 {dimension_numbers = #tpu.dot_dimension_numbers<[1], [1], [0], [0], [0, 0, 1, 0], [], []>} : vector<18x8xbf16>, vector<18x8xbf16>, vector<18x18xf32> -> vector<18x18xf32>
    %cst_15 = arith.constant 0.353553385 : f32
    %44 = vector.broadcast %cst_15 : f32 to vector<18x18xf32>
    %45 = arith.mulf %43, %44 : vector<18x18xf32>
    %cst_16 = arith.constant dense<0xFF800000> : vector<18xf32>
    %46 = vector.multi_reduction <maximumf>, %45, %cst_16 [1] : vector<18x18xf32> to vector<18xf32>
    %47 = vector.shape_cast %46 : vector<18xf32> to vector<18x1xf32>
    %48 = vector.broadcast %47 : vector<18x1xf32> to vector<18x18xf32>
    %49 = arith.subf %45, %48 : vector<18x18xf32>
    %50 = math.exp %49 : vector<18x18xf32>
    %cst_17 = arith.constant dense<0.000000e+00> : vector<18xf32>
    %51 = vector.multi_reduction <add>, %50, %cst_17 [1] : vector<18x18xf32> to vector<18xf32>
    %52 = vector.shape_cast %51 : vector<18xf32> to vector<18x1xf32>
    %53 = vector.broadcast %52 : vector<18x1xf32> to vector<18x18xf32>
    %54 = arith.divf %50, %53 : vector<18x18xf32>
    %55 = arith.truncf %54 : vector<18x18xf32> to vector<18x18xbf16>
    %cst_18 = arith.constant dense<0.000000e+00> : vector<18x8xf32>
    %56 = tpu.matmul %55, %42, %cst_18 {dimension_numbers = #tpu.dot_dimension_numbers<[1], [0], [0], [1], [0, 0, 1, 1], [], []>} : vector<18x18xbf16>, vector<18x8xbf16>, vector<18x8xf32> -> vector<18x8xf32>
    %57 = arith.truncf %56 : vector<18x8xf32> to vector<18x8xbf16>
    %c0_19 = arith.constant 0 : index
    %c16 = arith.constant 16 : index
    %58 = vector.load %arg8[%c0_19, %c16] : memref<18x32xbf16, #tpu.memory_space<vmem>>, vector<18x8xbf16>
    tpu.vector_store %arg8[%c0_19, %c16], %57 {strides = array<i32>} : memref<18x32xbf16, #tpu.memory_space<vmem>>, vector<18x8xbf16>,
    %59 = vector.extract_strided_slice %1 {offsets = [0, 24], sizes = [18, 8], strides = [1, 1]} : vector<18x96xbf16> to vector<18x8xbf16>
    %60 = vector.extract_strided_slice %1 {offsets = [0, 56], sizes = [18, 8], strides = [1, 1]} : vector<18x96xbf16> to vector<18x8xbf16>
    %61 = vector.extract_strided_slice %1 {offsets = [0, 88], sizes = [18, 8], strides = [1, 1]} : vector<18x96xbf16> to vector<18x8xbf16>
    %cst_20 = arith.constant dense<0.000000e+00> : vector<18x18xf32>
    %62 = tpu.matmul %59, %60, %cst_20 {dimension_numbers = #tpu.dot_dimension_numbers<[1], [1], [0], [0], [0, 0, 1, 0], [], []>} : vector<18x8xbf16>, vector<18x8xbf16>, vector<18x18xf32> -> vector<18x18xf32>
    %cst_21 = arith.constant 0.353553385 : f32
    %63 = vector.broadcast %cst_21 : f32 to vector<18x18xf32>
    %64 = arith.mulf %62, %63 : vector<18x18xf32>
    %cst_22 = arith.constant dense<0xFF800000> : vector<18xf32>
    %65 = vector.multi_reduction <maximumf>, %64, %cst_22 [1] : vector<18x18xf32> to vector<18xf32>
    %66 = vector.shape_cast %65 : vector<18xf32> to vector<18x1xf32>
    %67 = vector.broadcast %66 : vector<18x1xf32> to vector<18x18xf32>
    %68 = arith.subf %64, %67 : vector<18x18xf32>
    %69 = math.exp %68 : vector<18x18xf32>
    %cst_23 = arith.constant dense<0.000000e+00> : vector<18xf32>
    %70 = vector.multi_reduction <add>, %69, %cst_23 [1] : vector<18x18xf32> to vector<18xf32>
    %71 = vector.shape_cast %70 : vector<18xf32> to vector<18x1xf32>
    %72 = vector.broadcast %71 : vector<18x1xf32> to vector<18x18xf32>
    %73 = arith.divf %69, %72 : vector<18x18xf32>
    %74 = arith.truncf %73 : vector<18x18xf32> to vector<18x18xbf16>
    %cst_24 = arith.constant dense<0.000000e+00> : vector<18x8xf32>
    %75 = tpu.matmul %74, %61, %cst_24 {dimension_numbers = #tpu.dot_dimension_numbers<[1], [0], [0], [1], [0, 0, 1, 1], [], []>} : vector<18x18xbf16>, vector<18x8xbf16>, vector<18x8xf32> -> vector<18x8xf32>
    %76 = arith.truncf %75 : vector<18x8xf32> to vector<18x8xbf16>
    %c0_25 = arith.constant 0 : index
    %c24 = arith.constant 24 : index
    %77 = vector.load %arg8[%c0_25, %c24] : memref<18x32xbf16, #tpu.memory_space<vmem>>, vector<18x8xbf16>
    tpu.vector_store %arg8[%c0_25, %c24], %76 {strides = array<i32>} : memref<18x32xbf16, #tpu.memory_space<vmem>>, vector<18x8xbf16>,
    %c0_26 = arith.constant 0 : index
    %c0_27 = arith.constant 0 : index
    %78 = vector.load %arg8[%c0_26, %c0_27] : memref<18x32xbf16, #tpu.memory_space<vmem>>, vector<18x32xbf16>
    %c0_28 = arith.constant 0 : index
    %c0_29 = arith.constant 0 : index
    %79 = vector.load %arg3[%c0_28, %c0_29] : memref<32x32xbf16, #tpu.memory_space<vmem>>, vector<32x32xbf16>
    %cst_30 = arith.constant dense<0.000000e+00> : vector<18x32xf32>
    %80 = tpu.matmul %78, %79, %cst_30 {dimension_numbers = #tpu.dot_dimension_numbers<[1], [0], [0], [1], [0, 0, 1, 1], [], []>} : vector<18x32xbf16>, vector<32x32xbf16>, vector<18x32xf32> -> vector<18x32xf32>
    %c0_31 = arith.constant 0 : index
    %c0_32 = arith.constant 0 : index
    %81 = vector.load %arg4[%c0_31, %c0_32] : memref<1x32xf32, #tpu.memory_space<vmem>>, vector<1x32xf32>
    %82 = vector.broadcast %81 : vector<1x32xf32> to vector<18x32xf32>
    %83 = arith.addf %80, %82 : vector<18x32xf32>
    %c0_33 = arith.constant 0 : index
    %c0_34 = arith.constant 0 : index
    %c0_35 = arith.constant 0 : index
    %c0_36 = arith.constant 0 : index
    %84 = vector.load %arg7[%c0_33, %c0_34, %c0_35, %c0_36] : memref<1x1x18x32xf32, #tpu.memory_space<vmem>>, vector<1x1x18x32xf32>
    %85 = vector.shape_cast %84 : vector<1x1x18x32xf32> to vector<18x32xf32>
    %86 = vector.shape_cast %83 : vector<18x32xf32> to vector<1x1x18x32xf32>
    tpu.vector_store %arg7[%c0_33, %c0_34, %c0_35, %c0_36], %86 {strides = array<i32>} : memref<1x1x18x32xf32, #tpu.memory_space<vmem>>, vector<1x1x18x32xf32>,
    %c0_37 = arith.constant 0 : index
    %c0_38 = arith.constant 0 : index
    %c0_39 = arith.constant 0 : index
    %87 = vector.load %arg2[%c0_37, %c0_38, %c0_39] : memref<1x18x32xbf16, #tpu.memory_space<vmem>>, vector<1x18x32xbf16>
    %88 = vector.shape_cast %87 : vector<1x18x32xbf16> to vector<18x32xbf16>
    %89 = arith.extf %88 : vector<18x32xbf16> to vector<18x32xf32>
    %90 = arith.addf %89, %83 : vector<18x32xf32>
    %91 = arith.truncf %90 : vector<18x32xf32> to vector<18x32xbf16>
    %c0_40 = arith.constant 0 : index
    %c0_41 = arith.constant 0 : index
    %c0_42 = arith.constant 0 : index
    %92 = vector.load %arg6[%c0_40, %c0_41, %c0_42] : memref<1x18x32xbf16, #tpu.memory_space<vmem>>, vector<1x18x32xbf16>
    %93 = vector.shape_cast %92 : vector<1x18x32xbf16> to vector<18x32xbf16>
    %94 = vector.shape_cast %91 : vector<18x32xbf16> to vector<1x18x32xbf16>
    tpu.vector_store %arg6[%c0_40, %c0_41, %c0_42], %94 {strides = array<i32>} : memref<1x18x32xbf16, #tpu.memory_space<vmem>>, vector<1x18x32xbf16>,
    return
  }
  func.func @transform_0(%arg0: i32) -> (i32, i32, i32) {
    %c0_i32 = arith.constant 0 : i32
    %c0_i32_0 = arith.constant 0 : i32
    %c0_i32_1 = arith.constant 0 : i32
    return %arg0, %c0_i32, %c0_i32_0 : i32, i32, i32
  }
  func.func @transform_1(%arg0: i32) -> (i32, i32, i32) {
    %c0_i32 = arith.constant 0 : i32
    %c0_i32_0 = arith.constant 0 : i32
    %c0_i32_1 = arith.constant 0 : i32
    return %arg0, %c0_i32, %c0_i32_0 : i32, i32, i32
  }
  func.func @transform_2(%arg0: i32) -> (i32, i32) {
    %c0_i32 = arith.constant 0 : i32
    %c0_i32_0 = arith.constant 0 : i32
    %c0_i32_1 = arith.constant 0 : i32
    return %c0_i32, %c0_i32_0 : i32, i32
  }
  func.func @transform_3(%arg0: i32) -> (i32, i32) {
    %c0_i32 = arith.constant 0 : i32
    %c0_i32_0 = arith.constant 0 : i32
    %c0_i32_1 = arith.constant 0 : i32
    return %c0_i32, %c0_i32_0 : i32, i32
  }
  func.func @transform_5(%arg0: i32) -> (i32, i32, i32) {
    %c0_i32 = arith.constant 0 : i32
    %c0_i32_0 = arith.constant 0 : i32
    %c0_i32_1 = arith.constant 0 : i32
    return %arg0, %c0_i32, %c0_i32_0 : i32, i32, i32
  }
  func.func @transform_6(%arg0: i32) -> (i32, i32, i32, i32) {
    %c0_i32 = arith.constant 0 : i32
    %c0_i32_0 = arith.constant 0 : i32
    %c0_i32_1 = arith.constant 0 : i32
    %c0_i32_2 = arith.constant 0 : i32
    return %arg0, %c0_i32, %c0_i32_0, %c0_i32_1 : i32, i32, i32, i32
  }
}

module attributes {stable_mosaic.version = 11 : i64} {
  func.func @_fused_linear_kernel(%arg0: i32, %arg1: i32, %arg2: i32, %arg3: memref<36x32xbf16, #tpu.memory_space<vmem>>, %arg4: memref<32x64xbf16, #tpu.memory_space<vmem>>, %arg5: memref<1x64xf32, #tpu.memory_space<vmem>>, %arg6: memref<1x32xf32, #tpu.memory_space<vmem>>, %arg7: memref<1x32xf32, #tpu.memory_space<vmem>>, %arg8: memref<36x64xbf16, #tpu.memory_space<vmem>>, %arg9: memref<36x32xbf16, #tpu.memory_space<vmem>>) attributes {dimension_semantics = [#tpu.dimension_semantics<parallel>, #tpu.dimension_semantics<arbitrary>, #tpu.dimension_semantics<arbitrary>], iteration_bounds = array<i64: 1, 1, 1>, scalar_prefetch = 0 : i64, scratch_operands = 1 : i64, tpu.core_type = #tpu.core_type<tc>, window_params = [{transform_indices = @transform_0, window_bounds = array<i64: 36, 32>}, {transform_indices = @transform_1, window_bounds = array<i64: 32, 64>}, {transform_indices = @transform_2, window_bounds = array<i64: 1, 64>}, {transform_indices = @transform_3, window_bounds = array<i64: 1, 32>}, {transform_indices = @transform_4, window_bounds = array<i64: 1, 32>}, {transform_indices = @transform_5, window_bounds = array<i64: 36, 64>}]} {
    %c0_i32 = arith.constant 0 : i32
    %0 = arith.cmpi eq, %arg1, %c0_i32 : i32
    %1 = arith.extui %0 : i1 to i32
    %c0_i32_0 = arith.constant 0 : i32
    %2 = arith.cmpi ne, %1, %c0_i32_0 : i32
    scf.if %2 {
      %c0_12 = arith.constant 0 : index
      %c0_13 = arith.constant 0 : index
      %24 = vector.load %arg3[%c0_12, %c0_13] : memref<36x32xbf16, #tpu.memory_space<vmem>>, vector<36x32xbf16>
      %25 = arith.extf %24 : vector<36x32xbf16> to vector<36x32xf32>
      %cst_14 = arith.constant dense<0.000000e+00> : vector<36xf32>
      %26 = vector.multi_reduction <add>, %25, %cst_14 [1] : vector<36x32xf32> to vector<36xf32>
      %27 = vector.shape_cast %26 : vector<36xf32> to vector<36x1xf32>
      %cst_15 = arith.constant 3.200000e+01 : f32
      %28 = vector.broadcast %cst_15 : f32 to vector<36x1xf32>
      %29 = arith.divf %27, %28 : vector<36x1xf32>
      %30 = vector.broadcast %29 : vector<36x1xf32> to vector<36x32xf32>
      %31 = arith.subf %25, %30 : vector<36x32xf32>
      %32 = arith.mulf %31, %31 : vector<36x32xf32>
      %cst_16 = arith.constant dense<0.000000e+00> : vector<36xf32>
      %33 = vector.multi_reduction <add>, %32, %cst_16 [1] : vector<36x32xf32> to vector<36xf32>
      %34 = vector.shape_cast %33 : vector<36xf32> to vector<36x1xf32>
      %cst_17 = arith.constant 3.200000e+01 : f32
      %35 = vector.broadcast %cst_17 : f32 to vector<36x1xf32>
      %36 = arith.divf %34, %35 : vector<36x1xf32>
      %cst_18 = arith.constant 9.99999997E-7 : f32
      %37 = vector.broadcast %cst_18 : f32 to vector<36x1xf32>
      %38 = arith.addf %36, %37 : vector<36x1xf32>
      %39 = math.rsqrt %38 : vector<36x1xf32>
      %40 = vector.broadcast %39 : vector<36x1xf32> to vector<36x32xf32>
      %41 = arith.mulf %31, %40 : vector<36x32xf32>
      %c0_19 = arith.constant 0 : index
      %c0_20 = arith.constant 0 : index
      %42 = vector.load %arg6[%c0_19, %c0_20] : memref<1x32xf32, #tpu.memory_space<vmem>>, vector<1x32xf32>
      %43 = vector.broadcast %42 : vector<1x32xf32> to vector<36x32xf32>
      %44 = arith.mulf %41, %43 : vector<36x32xf32>
      %c0_21 = arith.constant 0 : index
      %c0_22 = arith.constant 0 : index
      %45 = vector.load %arg7[%c0_21, %c0_22] : memref<1x32xf32, #tpu.memory_space<vmem>>, vector<1x32xf32>
      %46 = vector.broadcast %45 : vector<1x32xf32> to vector<36x32xf32>
      %47 = arith.addf %44, %46 : vector<36x32xf32>
      %48 = arith.truncf %47 : vector<36x32xf32> to vector<36x32xbf16>
      %c0_23 = arith.constant 0 : index
      %c0_24 = arith.constant 0 : index
      %49 = vector.load %arg9[%c0_23, %c0_24] : memref<36x32xbf16, #tpu.memory_space<vmem>>, vector<36x32xbf16>
      tpu.vector_store %arg9[%c0_23, %c0_24], %48 {strides = array<i32>} : memref<36x32xbf16, #tpu.memory_space<vmem>>, vector<36x32xbf16>,
    } else {
    }
    %c0 = arith.constant 0 : index
    %c0_1 = arith.constant 0 : index
    %3 = vector.load %arg9[%c0, %c0_1] : memref<36x32xbf16, #tpu.memory_space<vmem>>, vector<36x32xbf16>
    %c0_2 = arith.constant 0 : index
    %c0_3 = arith.constant 0 : index
    %4 = vector.load %arg4[%c0_2, %c0_3] : memref<32x64xbf16, #tpu.memory_space<vmem>>, vector<32x64xbf16>
    %cst = arith.constant dense<0.000000e+00> : vector<36x64xf32>
    %5 = tpu.matmul %3, %4, %cst {dimension_numbers = #tpu.dot_dimension_numbers<[1], [0], [0], [1], [0, 0, 1, 1], [], []>} : vector<36x32xbf16>, vector<32x64xbf16>, vector<36x64xf32> -> vector<36x64xf32>
    %c0_4 = arith.constant 0 : index
    %c0_5 = arith.constant 0 : index
    %6 = vector.load %arg5[%c0_4, %c0_5] : memref<1x64xf32, #tpu.memory_space<vmem>>, vector<1x64xf32>
    %7 = vector.broadcast %6 : vector<1x64xf32> to vector<36x64xf32>
    %8 = arith.addf %5, %7 : vector<36x64xf32>
    %9 = arith.mulf %8, %8 : vector<36x64xf32>
    %10 = arith.mulf %8, %9 : vector<36x64xf32>
    %cst_6 = arith.constant 4.471500e-02 : f32
    %11 = vector.broadcast %cst_6 : f32 to vector<36x64xf32>
    %12 = arith.mulf %11, %10 : vector<36x64xf32>
    %13 = arith.addf %8, %12 : vector<36x64xf32>
    %cst_7 = arith.constant 0.797884583 : f32
    %14 = vector.broadcast %cst_7 : f32 to vector<36x64xf32>
    %15 = arith.mulf %14, %13 : vector<36x64xf32>
    %16 = math.tanh %15 : vector<36x64xf32>
    %cst_8 = arith.constant 1.000000e+00 : f32
    %17 = vector.broadcast %cst_8 : f32 to vector<36x64xf32>
    %18 = arith.addf %17, %16 : vector<36x64xf32>
    %cst_9 = arith.constant 5.000000e-01 : f32
    %19 = vector.broadcast %cst_9 : f32 to vector<36x64xf32>
    %20 = arith.mulf %19, %18 : vector<36x64xf32>
    %21 = arith.mulf %8, %20 : vector<36x64xf32>
    %22 = arith.truncf %21 : vector<36x64xf32> to vector<36x64xbf16>
    %c0_10 = arith.constant 0 : index
    %c0_11 = arith.constant 0 : index
    %23 = vector.load %arg8[%c0_10, %c0_11] : memref<36x64xbf16, #tpu.memory_space<vmem>>, vector<36x64xbf16>
    tpu.vector_store %arg8[%c0_10, %c0_11], %22 {strides = array<i32>} : memref<36x64xbf16, #tpu.memory_space<vmem>>, vector<36x64xbf16>,
    return
  }
  func.func @transform_0(%arg0: i32, %arg1: i32, %arg2: i32) -> (i32, i32) {
    %c0_i32 = arith.constant 0 : i32
    return %arg0, %arg2 : i32, i32
  }
  func.func @transform_1(%arg0: i32, %arg1: i32, %arg2: i32) -> (i32, i32) {
    %c0_i32 = arith.constant 0 : i32
    return %arg2, %arg1 : i32, i32
  }
  func.func @transform_2(%arg0: i32, %arg1: i32, %arg2: i32) -> (i32, i32) {
    %c0_i32 = arith.constant 0 : i32
    %c0_i32_0 = arith.constant 0 : i32
    return %c0_i32, %arg1 : i32, i32
  }
  func.func @transform_3(%arg0: i32, %arg1: i32, %arg2: i32) -> (i32, i32) {
    %c0_i32 = arith.constant 0 : i32
    %c0_i32_0 = arith.constant 0 : i32
    return %c0_i32, %arg2 : i32, i32
  }
  func.func @transform_4(%arg0: i32, %arg1: i32, %arg2: i32) -> (i32, i32) {
    %c0_i32 = arith.constant 0 : i32
    %c0_i32_0 = arith.constant 0 : i32
    return %c0_i32, %arg2 : i32, i32
  }
  func.func @transform_5(%arg0: i32, %arg1: i32, %arg2: i32) -> (i32, i32) {
    %c0_i32 = arith.constant 0 : i32
    return %arg0, %arg1 : i32, i32
  }
}

module attributes {stable_mosaic.version = 11 : i64} {
  func.func @_fused_linear_kernel(%arg0: i32, %arg1: i32, %arg2: i32, %arg3: memref<36x64xbf16, #tpu.memory_space<vmem>>, %arg4: memref<64x32xbf16, #tpu.memory_space<vmem>>, %arg5: memref<1x32xf32, #tpu.memory_space<vmem>>, %arg6: memref<36x32xbf16, #tpu.memory_space<vmem>>, %arg7: memref<36x32xbf16, #tpu.memory_space<vmem>>) attributes {dimension_semantics = [#tpu.dimension_semantics<parallel>, #tpu.dimension_semantics<parallel>, #tpu.dimension_semantics<arbitrary>], iteration_bounds = array<i64: 1, 1, 1>, scalar_prefetch = 0 : i64, scratch_operands = 0 : i64, tpu.core_type = #tpu.core_type<tc>, window_params = [{transform_indices = @transform_0, window_bounds = array<i64: 36, 64>}, {transform_indices = @transform_1, window_bounds = array<i64: 64, 32>}, {transform_indices = @transform_2, window_bounds = array<i64: 1, 32>}, {transform_indices = @transform_3, window_bounds = array<i64: 36, 32>}, {transform_indices = @transform_4, window_bounds = array<i64: 36, 32>}]} {
    %c0 = arith.constant 0 : index
    %c0_0 = arith.constant 0 : index
    %0 = vector.load %arg3[%c0, %c0_0] : memref<36x64xbf16, #tpu.memory_space<vmem>>, vector<36x64xbf16>
    %c0_1 = arith.constant 0 : index
    %c0_2 = arith.constant 0 : index
    %1 = vector.load %arg4[%c0_1, %c0_2] : memref<64x32xbf16, #tpu.memory_space<vmem>>, vector<64x32xbf16>
    %cst = arith.constant dense<0.000000e+00> : vector<36x32xf32>
    %2 = tpu.matmul %0, %1, %cst {dimension_numbers = #tpu.dot_dimension_numbers<[1], [0], [0], [1], [0, 0, 1, 1], [], []>} : vector<36x64xbf16>, vector<64x32xbf16>, vector<36x32xf32> -> vector<36x32xf32>
    %c0_3 = arith.constant 0 : index
    %c0_4 = arith.constant 0 : index
    %3 = vector.load %arg5[%c0_3, %c0_4] : memref<1x32xf32, #tpu.memory_space<vmem>>, vector<1x32xf32>
    %4 = vector.broadcast %3 : vector<1x32xf32> to vector<36x32xf32>
    %5 = arith.addf %2, %4 : vector<36x32xf32>
    %c0_5 = arith.constant 0 : index
    %c0_6 = arith.constant 0 : index
    %6 = vector.load %arg6[%c0_5, %c0_6] : memref<36x32xbf16, #tpu.memory_space<vmem>>, vector<36x32xbf16>
    %7 = arith.extf %6 : vector<36x32xbf16> to vector<36x32xf32>
    %8 = arith.addf %5, %7 : vector<36x32xf32>
    %9 = arith.truncf %8 : vector<36x32xf32> to vector<36x32xbf16>
    %c0_7 = arith.constant 0 : index
    %c0_8 = arith.constant 0 : index
    %10 = vector.load %arg7[%c0_7, %c0_8] : memref<36x32xbf16, #tpu.memory_space<vmem>>, vector<36x32xbf16>
    tpu.vector_store %arg7[%c0_7, %c0_8], %9 {strides = array<i32>} : memref<36x32xbf16, #tpu.memory_space<vmem>>, vector<36x32xbf16>,
    return
  }
  func.func @transform_0(%arg0: i32, %arg1: i32, %arg2: i32) -> (i32, i32) {
    %c0_i32 = arith.constant 0 : i32
    return %arg0, %arg2 : i32, i32
  }
  func.func @transform_1(%arg0: i32, %arg1: i32, %arg2: i32) -> (i32, i32) {
    %c0_i32 = arith.constant 0 : i32
    return %arg2, %arg1 : i32, i32
  }
  func.func @transform_2(%arg0: i32, %arg1: i32, %arg2: i32) -> (i32, i32) {
    %c0_i32 = arith.constant 0 : i32
    %c0_i32_0 = arith.constant 0 : i32
    return %c0_i32, %arg1 : i32, i32
  }
  func.func @transform_3(%arg0: i32, %arg1: i32, %arg2: i32) -> (i32, i32) {
    %c0_i32 = arith.constant 0 : i32
    return %arg0, %arg1 : i32, i32
  }
  func.func @transform_4(%arg0: i32, %arg1: i32, %arg2: i32) -> (i32, i32) {
    %c0_i32 = arith.constant 0 : i32
    return %arg0, %arg1 : i32, i32
  }
}

module attributes {stable_mosaic.version = 11 : i64} {
  func.func @_attention_block_kernel(%arg0: i32, %arg1: memref<1x18x96xbf16, #tpu.memory_space<vmem>>, %arg2: memref<1x18x32xbf16, #tpu.memory_space<vmem>>, %arg3: memref<32x32xbf16, #tpu.memory_space<vmem>>, %arg4: memref<1x32xf32, #tpu.memory_space<vmem>>, %arg5: memref<2x2x18x32xf32, #tpu.memory_space<any>>, %arg6: memref<1x18x32xbf16, #tpu.memory_space<vmem>>, %arg7: memref<1x1x18x32xf32, #tpu.memory_space<vmem>>, %arg8: memref<18x32xbf16, #tpu.memory_space<vmem>>) attributes {dimension_semantics = [#tpu.dimension_semantics<parallel>], iteration_bounds = array<i64: 2>, scalar_prefetch = 0 : i64, scratch_operands = 1 : i64, tpu.core_type = #tpu.core_type<tc>, window_params = [{transform_indices = @transform_0, window_bounds = array<i64: 1, 18, 96>}, {transform_indices = @transform_1, window_bounds = array<i64: 1, 18, 32>}, {pipeline_mode = #tpu.pipeline_mode<synchronous>, transform_indices = @transform_2, window_bounds = array<i64: 32, 32>}, {pipeline_mode = #tpu.pipeline_mode<synchronous>, transform_indices = @transform_3, window_bounds = array<i64: 1, 32>}, {}, {transform_indices = @transform_5, window_bounds = array<i64: 1, 18, 32>}, {transform_indices = @transform_6, window_bounds = array<i64: 1, 1, 18, 32>}]} {
    %c0 = arith.constant 0 : index
    %c0_0 = arith.constant 0 : index
    %c0_1 = arith.constant 0 : index
    %0 = vector.load %arg1[%c0, %c0_0, %c0_1] : memref<1x18x96xbf16, #tpu.memory_space<vmem>>, vector<1x18x96xbf16>
    %1 = vector.shape_cast %0 : vector<1x18x96xbf16> to vector<18x96xbf16>
    %2 = vector.extract_strided_slice %1 {offsets = [0, 0], sizes = [18, 8], strides = [1, 1]} : vector<18x96xbf16> to vector<18x8xbf16>
    %3 = vector.extract_strided_slice %1 {offsets = [0, 32], sizes = [18, 8], strides = [1, 1]} : vector<18x96xbf16> to vector<18x8xbf16>
    %4 = vector.extract_strided_slice %1 {offsets = [0, 64], sizes = [18, 8], strides = [1, 1]} : vector<18x96xbf16> to vector<18x8xbf16>
    %cst = arith.constant dense<0.000000e+00> : vector<18x18xf32>
    %5 = tpu.matmul %2, %3, %cst {dimension_numbers = #tpu.dot_dimension_numbers<[1], [1], [0], [0], [0, 0, 1, 0], [], []>} : vector<18x8xbf16>, vector<18x8xbf16>, vector<18x18xf32> -> vector<18x18xf32>
    %cst_2 = arith.constant 0.353553385 : f32
    %6 = vector.broadcast %cst_2 : f32 to vector<18x18xf32>
    %7 = arith.mulf %5, %6 : vector<18x18xf32>
    %cst_3 = arith.constant dense<0xFF800000> : vector<18xf32>
    %8 = vector.multi_reduction <maximumf>, %7, %cst_3 [1] : vector<18x18xf32> to vector<18xf32>
    %9 = vector.shape_cast %8 : vector<18xf32> to vector<18x1xf32>
    %10 = vector.broadcast %9 : vector<18x1xf32> to vector<18x18xf32>
    %11 = arith.subf %7, %10 : vector<18x18xf32>
    %12 = math.exp %11 : vector<18x18xf32>
    %cst_4 = arith.constant dense<0.000000e+00> : vector<18xf32>
    %13 = vector.multi_reduction <add>, %12, %cst_4 [1] : vector<18x18xf32> to vector<18xf32>
    %14 = vector.shape_cast %13 : vector<18xf32> to vector<18x1xf32>
    %15 = vector.broadcast %14 : vector<18x1xf32> to vector<18x18xf32>
    %16 = arith.divf %12, %15 : vector<18x18xf32>
    %17 = arith.truncf %16 : vector<18x18xf32> to vector<18x18xbf16>
    %cst_5 = arith.constant dense<0.000000e+00> : vector<18x8xf32>
    %18 = tpu.matmul %17, %4, %cst_5 {dimension_numbers = #tpu.dot_dimension_numbers<[1], [0], [0], [1], [0, 0, 1, 1], [], []>} : vector<18x18xbf16>, vector<18x8xbf16>, vector<18x8xf32> -> vector<18x8xf32>
    %19 = arith.truncf %18 : vector<18x8xf32> to vector<18x8xbf16>
    %c0_6 = arith.constant 0 : index
    %c0_7 = arith.constant 0 : index
    %20 = vector.load %arg8[%c0_6, %c0_7] : memref<18x32xbf16, #tpu.memory_space<vmem>>, vector<18x8xbf16>
    tpu.vector_store %arg8[%c0_6, %c0_7], %19 {strides = array<i32>} : memref<18x32xbf16, #tpu.memory_space<vmem>>, vector<18x8xbf16>,
    %21 = vector.extract_strided_slice %1 {offsets = [0, 8], sizes = [18, 8], strides = [1, 1]} : vector<18x96xbf16> to vector<18x8xbf16>
    %22 = vector.extract_strided_slice %1 {offsets = [0, 40], sizes = [18, 8], strides = [1, 1]} : vector<18x96xbf16> to vector<18x8xbf16>
    %23 = vector.extract_strided_slice %1 {offsets = [0, 72], sizes = [18, 8], strides = [1, 1]} : vector<18x96xbf16> to vector<18x8xbf16>
    %cst_8 = arith.constant dense<0.000000e+00> : vector<18x18xf32>
    %24 = tpu.matmul %21, %22, %cst_8 {dimension_numbers = #tpu.dot_dimension_numbers<[1], [1], [0], [0], [0, 0, 1, 0], [], []>} : vector<18x8xbf16>, vector<18x8xbf16>, vector<18x18xf32> -> vector<18x18xf32>
    %cst_9 = arith.constant 0.353553385 : f32
    %25 = vector.broadcast %cst_9 : f32 to vector<18x18xf32>
    %26 = arith.mulf %24, %25 : vector<18x18xf32>
    %cst_10 = arith.constant dense<0xFF800000> : vector<18xf32>
    %27 = vector.multi_reduction <maximumf>, %26, %cst_10 [1] : vector<18x18xf32> to vector<18xf32>
    %28 = vector.shape_cast %27 : vector<18xf32> to vector<18x1xf32>
    %29 = vector.broadcast %28 : vector<18x1xf32> to vector<18x18xf32>
    %30 = arith.subf %26, %29 : vector<18x18xf32>
    %31 = math.exp %30 : vector<18x18xf32>
    %cst_11 = arith.constant dense<0.000000e+00> : vector<18xf32>
    %32 = vector.multi_reduction <add>, %31, %cst_11 [1] : vector<18x18xf32> to vector<18xf32>
    %33 = vector.shape_cast %32 : vector<18xf32> to vector<18x1xf32>
    %34 = vector.broadcast %33 : vector<18x1xf32> to vector<18x18xf32>
    %35 = arith.divf %31, %34 : vector<18x18xf32>
    %36 = arith.truncf %35 : vector<18x18xf32> to vector<18x18xbf16>
    %cst_12 = arith.constant dense<0.000000e+00> : vector<18x8xf32>
    %37 = tpu.matmul %36, %23, %cst_12 {dimension_numbers = #tpu.dot_dimension_numbers<[1], [0], [0], [1], [0, 0, 1, 1], [], []>} : vector<18x18xbf16>, vector<18x8xbf16>, vector<18x8xf32> -> vector<18x8xf32>
    %38 = arith.truncf %37 : vector<18x8xf32> to vector<18x8xbf16>
    %c0_13 = arith.constant 0 : index
    %c8 = arith.constant 8 : index
    %39 = vector.load %arg8[%c0_13, %c8] : memref<18x32xbf16, #tpu.memory_space<vmem>>, vector<18x8xbf16>
    tpu.vector_store %arg8[%c0_13, %c8], %38 {strides = array<i32>} : memref<18x32xbf16, #tpu.memory_space<vmem>>, vector<18x8xbf16>,
    %40 = vector.extract_strided_slice %1 {offsets = [0, 16], sizes = [18, 8], strides = [1, 1]} : vector<18x96xbf16> to vector<18x8xbf16>
    %41 = vector.extract_strided_slice %1 {offsets = [0, 48], sizes = [18, 8], strides = [1, 1]} : vector<18x96xbf16> to vector<18x8xbf16>
    %42 = vector.extract_strided_slice %1 {offsets = [0, 80], sizes = [18, 8], strides = [1, 1]} : vector<18x96xbf16> to vector<18x8xbf16>
    %cst_14 = arith.constant dense<0.000000e+00> : vector<18x18xf32>
    %43 = tpu.matmul %40, %41, %cst_14 {dimension_numbers = #tpu.dot_dimension_numbers<[1], [1], [0], [0], [0, 0, 1, 0], [], []>} : vector<18x8xbf16>, vector<18x8xbf16>, vector<18x18xf32> -> vector<18x18xf32>
    %cst_15 = arith.constant 0.353553385 : f32
    %44 = vector.broadcast %cst_15 : f32 to vector<18x18xf32>
    %45 = arith.mulf %43, %44 : vector<18x18xf32>
    %cst_16 = arith.constant dense<0xFF800000> : vector<18xf32>
    %46 = vector.multi_reduction <maximumf>, %45, %cst_16 [1] : vector<18x18xf32> to vector<18xf32>
    %47 = vector.shape_cast %46 : vector<18xf32> to vector<18x1xf32>
    %48 = vector.broadcast %47 : vector<18x1xf32> to vector<18x18xf32>
    %49 = arith.subf %45, %48 : vector<18x18xf32>
    %50 = math.exp %49 : vector<18x18xf32>
    %cst_17 = arith.constant dense<0.000000e+00> : vector<18xf32>
    %51 = vector.multi_reduction <add>, %50, %cst_17 [1] : vector<18x18xf32> to vector<18xf32>
    %52 = vector.shape_cast %51 : vector<18xf32> to vector<18x1xf32>
    %53 = vector.broadcast %52 : vector<18x1xf32> to vector<18x18xf32>
    %54 = arith.divf %50, %53 : vector<18x18xf32>
    %55 = arith.truncf %54 : vector<18x18xf32> to vector<18x18xbf16>
    %cst_18 = arith.constant dense<0.000000e+00> : vector<18x8xf32>
    %56 = tpu.matmul %55, %42, %cst_18 {dimension_numbers = #tpu.dot_dimension_numbers<[1], [0], [0], [1], [0, 0, 1, 1], [], []>} : vector<18x18xbf16>, vector<18x8xbf16>, vector<18x8xf32> -> vector<18x8xf32>
    %57 = arith.truncf %56 : vector<18x8xf32> to vector<18x8xbf16>
    %c0_19 = arith.constant 0 : index
    %c16 = arith.constant 16 : index
    %58 = vector.load %arg8[%c0_19, %c16] : memref<18x32xbf16, #tpu.memory_space<vmem>>, vector<18x8xbf16>
    tpu.vector_store %arg8[%c0_19, %c16], %57 {strides = array<i32>} : memref<18x32xbf16, #tpu.memory_space<vmem>>, vector<18x8xbf16>,
    %59 = vector.extract_strided_slice %1 {offsets = [0, 24], sizes = [18, 8], strides = [1, 1]} : vector<18x96xbf16> to vector<18x8xbf16>
    %60 = vector.extract_strided_slice %1 {offsets = [0, 56], sizes = [18, 8], strides = [1, 1]} : vector<18x96xbf16> to vector<18x8xbf16>
    %61 = vector.extract_strided_slice %1 {offsets = [0, 88], sizes = [18, 8], strides = [1, 1]} : vector<18x96xbf16> to vector<18x8xbf16>
    %cst_20 = arith.constant dense<0.000000e+00> : vector<18x18xf32>
    %62 = tpu.matmul %59, %60, %cst_20 {dimension_numbers = #tpu.dot_dimension_numbers<[1], [1], [0], [0], [0, 0, 1, 0], [], []>} : vector<18x8xbf16>, vector<18x8xbf16>, vector<18x18xf32> -> vector<18x18xf32>
    %cst_21 = arith.constant 0.353553385 : f32
    %63 = vector.broadcast %cst_21 : f32 to vector<18x18xf32>
    %64 = arith.mulf %62, %63 : vector<18x18xf32>
    %cst_22 = arith.constant dense<0xFF800000> : vector<18xf32>
    %65 = vector.multi_reduction <maximumf>, %64, %cst_22 [1] : vector<18x18xf32> to vector<18xf32>
    %66 = vector.shape_cast %65 : vector<18xf32> to vector<18x1xf32>
    %67 = vector.broadcast %66 : vector<18x1xf32> to vector<18x18xf32>
    %68 = arith.subf %64, %67 : vector<18x18xf32>
    %69 = math.exp %68 : vector<18x18xf32>
    %cst_23 = arith.constant dense<0.000000e+00> : vector<18xf32>
    %70 = vector.multi_reduction <add>, %69, %cst_23 [1] : vector<18x18xf32> to vector<18xf32>
    %71 = vector.shape_cast %70 : vector<18xf32> to vector<18x1xf32>
    %72 = vector.broadcast %71 : vector<18x1xf32> to vector<18x18xf32>
    %73 = arith.divf %69, %72 : vector<18x18xf32>
    %74 = arith.truncf %73 : vector<18x18xf32> to vector<18x18xbf16>
    %cst_24 = arith.constant dense<0.000000e+00> : vector<18x8xf32>
    %75 = tpu.matmul %74, %61, %cst_24 {dimension_numbers = #tpu.dot_dimension_numbers<[1], [0], [0], [1], [0, 0, 1, 1], [], []>} : vector<18x18xbf16>, vector<18x8xbf16>, vector<18x8xf32> -> vector<18x8xf32>
    %76 = arith.truncf %75 : vector<18x8xf32> to vector<18x8xbf16>
    %c0_25 = arith.constant 0 : index
    %c24 = arith.constant 24 : index
    %77 = vector.load %arg8[%c0_25, %c24] : memref<18x32xbf16, #tpu.memory_space<vmem>>, vector<18x8xbf16>
    tpu.vector_store %arg8[%c0_25, %c24], %76 {strides = array<i32>} : memref<18x32xbf16, #tpu.memory_space<vmem>>, vector<18x8xbf16>,
    %c0_26 = arith.constant 0 : index
    %c0_27 = arith.constant 0 : index
    %78 = vector.load %arg8[%c0_26, %c0_27] : memref<18x32xbf16, #tpu.memory_space<vmem>>, vector<18x32xbf16>
    %c0_28 = arith.constant 0 : index
    %c0_29 = arith.constant 0 : index
    %79 = vector.load %arg3[%c0_28, %c0_29] : memref<32x32xbf16, #tpu.memory_space<vmem>>, vector<32x32xbf16>
    %cst_30 = arith.constant dense<0.000000e+00> : vector<18x32xf32>
    %80 = tpu.matmul %78, %79, %cst_30 {dimension_numbers = #tpu.dot_dimension_numbers<[1], [0], [0], [1], [0, 0, 1, 1], [], []>} : vector<18x32xbf16>, vector<32x32xbf16>, vector<18x32xf32> -> vector<18x32xf32>
    %c0_31 = arith.constant 0 : index
    %c0_32 = arith.constant 0 : index
    %81 = vector.load %arg4[%c0_31, %c0_32] : memref<1x32xf32, #tpu.memory_space<vmem>>, vector<1x32xf32>
    %82 = vector.broadcast %81 : vector<1x32xf32> to vector<18x32xf32>
    %83 = arith.addf %80, %82 : vector<18x32xf32>
    %c0_33 = arith.constant 0 : index
    %c0_34 = arith.constant 0 : index
    %c0_35 = arith.constant 0 : index
    %c0_36 = arith.constant 0 : index
    %84 = vector.load %arg7[%c0_33, %c0_34, %c0_35, %c0_36] : memref<1x1x18x32xf32, #tpu.memory_space<vmem>>, vector<1x1x18x32xf32>
    %85 = vector.shape_cast %84 : vector<1x1x18x32xf32> to vector<18x32xf32>
    %86 = vector.shape_cast %83 : vector<18x32xf32> to vector<1x1x18x32xf32>
    tpu.vector_store %arg7[%c0_33, %c0_34, %c0_35, %c0_36], %86 {strides = array<i32>} : memref<1x1x18x32xf32, #tpu.memory_space<vmem>>, vector<1x1x18x32xf32>,
    %c0_37 = arith.constant 0 : index
    %c0_38 = arith.constant 0 : index
    %c0_39 = arith.constant 0 : index
    %87 = vector.load %arg2[%c0_37, %c0_38, %c0_39] : memref<1x18x32xbf16, #tpu.memory_space<vmem>>, vector<1x18x32xbf16>
    %88 = vector.shape_cast %87 : vector<1x18x32xbf16> to vector<18x32xbf16>
    %89 = arith.extf %88 : vector<18x32xbf16> to vector<18x32xf32>
    %90 = arith.addf %89, %83 : vector<18x32xf32>
    %91 = arith.truncf %90 : vector<18x32xf32> to vector<18x32xbf16>
    %c0_40 = arith.constant 0 : index
    %c0_41 = arith.constant 0 : index
    %c0_42 = arith.constant 0 : index
    %92 = vector.load %arg6[%c0_40, %c0_41, %c0_42] : memref<1x18x32xbf16, #tpu.memory_space<vmem>>, vector<1x18x32xbf16>
    %93 = vector.shape_cast %92 : vector<1x18x32xbf16> to vector<18x32xbf16>
    %94 = vector.shape_cast %91 : vector<18x32xbf16> to vector<1x18x32xbf16>
    tpu.vector_store %arg6[%c0_40, %c0_41, %c0_42], %94 {strides = array<i32>} : memref<1x18x32xbf16, #tpu.memory_space<vmem>>, vector<1x18x32xbf16>,
    return
  }
  func.func @transform_0(%arg0: i32) -> (i32, i32, i32) {
    %c0_i32 = arith.constant 0 : i32
    %c0_i32_0 = arith.constant 0 : i32
    %c0_i32_1 = arith.constant 0 : i32
    return %arg0, %c0_i32, %c0_i32_0 : i32, i32, i32
  }
  func.func @transform_1(%arg0: i32) -> (i32, i32, i32) {
    %c0_i32 = arith.constant 0 : i32
    %c0_i32_0 = arith.constant 0 : i32
    %c0_i32_1 = arith.constant 0 : i32
    return %arg0, %c0_i32, %c0_i32_0 : i32, i32, i32
  }
  func.func @transform_2(%arg0: i32) -> (i32, i32) {
    %c0_i32 = arith.constant 0 : i32
    %c0_i32_0 = arith.constant 0 : i32
    %c0_i32_1 = arith.constant 0 : i32
    return %c0_i32, %c0_i32_0 : i32, i32
  }
  func.func @transform_3(%arg0: i32) -> (i32, i32) {
    %c0_i32 = arith.constant 0 : i32
    %c0_i32_0 = arith.constant 0 : i32
    %c0_i32_1 = arith.constant 0 : i32
    return %c0_i32, %c0_i32_0 : i32, i32
  }
  func.func @transform_5(%arg0: i32) -> (i32, i32, i32) {
    %c0_i32 = arith.constant 0 : i32
    %c0_i32_0 = arith.constant 0 : i32
    %c0_i32_1 = arith.constant 0 : i32
    return %arg0, %c0_i32, %c0_i32_0 : i32, i32, i32
  }
  func.func @transform_6(%arg0: i32) -> (i32, i32, i32, i32) {
    %c1_i32 = arith.constant 1 : i32
    %c0_i32 = arith.constant 0 : i32
    %c0_i32_0 = arith.constant 0 : i32
    %c0_i32_1 = arith.constant 0 : i32
    return %arg0, %c1_i32, %c0_i32, %c0_i32_0 : i32, i32, i32, i32
  }
}

module attributes {stable_mosaic.version = 11 : i64} {
  func.func @_fused_linear_kernel(%arg0: i32, %arg1: i32, %arg2: i32, %arg3: memref<2x32xbf16, #tpu.memory_space<vmem>>, %arg4: memref<32x10xbf16, #tpu.memory_space<vmem>>, %arg5: memref<1x10xf32, #tpu.memory_space<vmem>>, %arg6: memref<1x32xf32, #tpu.memory_space<vmem>>, %arg7: memref<1x32xf32, #tpu.memory_space<vmem>>, %arg8: memref<2x10xf32, #tpu.memory_space<vmem>>, %arg9: memref<2x32xbf16, #tpu.memory_space<vmem>>) attributes {dimension_semantics = [#tpu.dimension_semantics<parallel>, #tpu.dimension_semantics<arbitrary>, #tpu.dimension_semantics<arbitrary>], iteration_bounds = array<i64: 1, 1, 1>, scalar_prefetch = 0 : i64, scratch_operands = 1 : i64, tpu.core_type = #tpu.core_type<tc>, window_params = [{transform_indices = @transform_0, window_bounds = array<i64: 2, 32>}, {transform_indices = @transform_1, window_bounds = array<i64: 32, 10>}, {transform_indices = @transform_2, window_bounds = array<i64: 1, 10>}, {transform_indices = @transform_3, window_bounds = array<i64: 1, 32>}, {transform_indices = @transform_4, window_bounds = array<i64: 1, 32>}, {transform_indices = @transform_5, window_bounds = array<i64: 2, 10>}]} {
    %c0_i32 = arith.constant 0 : i32
    %0 = arith.cmpi eq, %arg1, %c0_i32 : i32
    %1 = arith.extui %0 : i1 to i32
    %c0_i32_0 = arith.constant 0 : i32
    %2 = arith.cmpi ne, %1, %c0_i32_0 : i32
    scf.if %2 {
      %c0_8 = arith.constant 0 : index
      %c0_9 = arith.constant 0 : index
      %10 = vector.load %arg3[%c0_8, %c0_9] : memref<2x32xbf16, #tpu.memory_space<vmem>>, vector<2x32xbf16>
      %11 = arith.extf %10 : vector<2x32xbf16> to vector<2x32xf32>
      %cst_10 = arith.constant dense<0.000000e+00> : vector<2xf32>
      %12 = vector.multi_reduction <add>, %11, %cst_10 [1] : vector<2x32xf32> to vector<2xf32>
      %13 = vector.shape_cast %12 : vector<2xf32> to vector<2x1xf32>
      %cst_11 = arith.constant 3.200000e+01 : f32
      %14 = vector.broadcast %cst_11 : f32 to vector<2x1xf32>
      %15 = arith.divf %13, %14 : vector<2x1xf32>
      %16 = vector.broadcast %15 : vector<2x1xf32> to vector<2x32xf32>
      %17 = arith.subf %11, %16 : vector<2x32xf32>
      %18 = arith.mulf %17, %17 : vector<2x32xf32>
      %cst_12 = arith.constant dense<0.000000e+00> : vector<2xf32>
      %19 = vector.multi_reduction <add>, %18, %cst_12 [1] : vector<2x32xf32> to vector<2xf32>
      %20 = vector.shape_cast %19 : vector<2xf32> to vector<2x1xf32>
      %cst_13 = arith.constant 3.200000e+01 : f32
      %21 = vector.broadcast %cst_13 : f32 to vector<2x1xf32>
      %22 = arith.divf %20, %21 : vector<2x1xf32>
      %cst_14 = arith.constant 9.99999997E-7 : f32
      %23 = vector.broadcast %cst_14 : f32 to vector<2x1xf32>
      %24 = arith.addf %22, %23 : vector<2x1xf32>
      %25 = math.rsqrt %24 : vector<2x1xf32>
      %26 = vector.broadcast %25 : vector<2x1xf32> to vector<2x32xf32>
      %27 = arith.mulf %17, %26 : vector<2x32xf32>
      %c0_15 = arith.constant 0 : index
      %c0_16 = arith.constant 0 : index
      %28 = vector.load %arg6[%c0_15, %c0_16] : memref<1x32xf32, #tpu.memory_space<vmem>>, vector<1x32xf32>
      %29 = vector.broadcast %28 : vector<1x32xf32> to vector<2x32xf32>
      %30 = arith.mulf %27, %29 : vector<2x32xf32>
      %c0_17 = arith.constant 0 : index
      %c0_18 = arith.constant 0 : index
      %31 = vector.load %arg7[%c0_17, %c0_18] : memref<1x32xf32, #tpu.memory_space<vmem>>, vector<1x32xf32>
      %32 = vector.broadcast %31 : vector<1x32xf32> to vector<2x32xf32>
      %33 = arith.addf %30, %32 : vector<2x32xf32>
      %34 = arith.truncf %33 : vector<2x32xf32> to vector<2x32xbf16>
      %c0_19 = arith.constant 0 : index
      %c0_20 = arith.constant 0 : index
      %35 = vector.load %arg9[%c0_19, %c0_20] : memref<2x32xbf16, #tpu.memory_space<vmem>>, vector<2x32xbf16>
      tpu.vector_store %arg9[%c0_19, %c0_20], %34 {strides = array<i32>} : memref<2x32xbf16, #tpu.memory_space<vmem>>, vector<2x32xbf16>,
    } else {
    }
    %c0 = arith.constant 0 : index
    %c0_1 = arith.constant 0 : index
    %3 = vector.load %arg9[%c0, %c0_1] : memref<2x32xbf16, #tpu.memory_space<vmem>>, vector<2x32xbf16>
    %c0_2 = arith.constant 0 : index
    %c0_3 = arith.constant 0 : index
    %4 = vector.load %arg4[%c0_2, %c0_3] : memref<32x10xbf16, #tpu.memory_space<vmem>>, vector<32x10xbf16>
    %cst = arith.constant dense<0.000000e+00> : vector<2x10xf32>
    %5 = tpu.matmul %3, %4, %cst {dimension_numbers = #tpu.dot_dimension_numbers<[1], [0], [0], [1], [0, 0, 1, 1], [], []>} : vector<2x32xbf16>, vector<32x10xbf16>, vector<2x10xf32> -> vector<2x10xf32>
    %c0_4 = arith.constant 0 : index
    %c0_5 = arith.constant 0 : index
    %6 = vector.load %arg5[%c0_4, %c0_5] : memref<1x10xf32, #tpu.memory_space<vmem>>, vector<1x10xf32>
    %7 = vector.broadcast %6 : vector<1x10xf32> to vector<2x10xf32>
    %8 = arith.addf %5, %7 : vector<2x10xf32>
    %c0_6 = arith.constant 0 : index
    %c0_7 = arith.constant 0 : index
    %9 = vector.load %arg8[%c0_6, %c0_7] : memref<2x10xf32, #tpu.memory_space<vmem>>, vector<2x10xf32>
    tpu.vector_store %arg8[%c0_6, %c0_7], %8 {strides = array<i32>} : memref<2x10xf32, #tpu.memory_space<vmem>>, vector<2x10xf32>,
    return
  }
  func.func @transform_0(%arg0: i32, %arg1: i32, %arg2: i32) -> (i32, i32) {
    %c0_i32 = arith.constant 0 : i32
    return %arg0, %arg2 : i32, i32
  }
  func.func @transform_1(%arg0: i32, %arg1: i32, %arg2: i32) -> (i32, i32) {
    %c0_i32 = arith.constant 0 : i32
    return %arg2, %arg1 : i32, i32
  }
  func.func @transform_2(%arg0: i32, %arg1: i32, %arg2: i32) -> (i32, i32) {
    %c0_i32 = arith.constant 0 : i32
    %c0_i32_0 = arith.constant 0 : i32
    return %c0_i32, %arg1 : i32, i32
  }
  func.func @transform_3(%arg0: i32, %arg1: i32, %arg2: i32) -> (i32, i32) {
    %c0_i32 = arith.constant 0 : i32
    %c0_i32_0 = arith.constant 0 : i32
    return %c0_i32, %arg2 : i32, i32
  }
  func.func @transform_4(%arg0: i32, %arg1: i32, %arg2: i32) -> (i32, i32) {
    %c0_i32 = arith.constant 0 : i32
    %c0_i32_0 = arith.constant 0 : i32
    return %c0_i32, %arg2 : i32, i32
  }
  func.func @transform_5(%arg0: i32, %arg1: i32, %arg2: i32) -> (i32, i32) {
    %c0_i32 = arith.constant 0 : i32
    return %arg0, %arg1 : i32, i32
  }
}

</mosaic_0001>

<bundles_post_ra>
// kernel: recorder_forward.11
= control target key start
LH: loop header
LB: loop body
LE: loop exit
PB: predicated region body
PF: predicated region fallthrough
CT: control target
= control target key end

     0   :  { %vm57_vm0 = vcmask 392192   ;;  %vm87_vm1 = vcmask 257024   ;;  %s177_s1 = inlined_call_operand.vmem [shape: bf16[48,32], index: 1, kind: input, shape index: {}]   ;;  %s178_s2 = inlined_call_operand.vmem [shape: f32[1,32], index: 2, kind: input, shape index: {}]   ;;  %s179_s0 = inlined_call_operand.vmem [shape: bf16[32,48], index: 0, kind: input, shape index: {}]   ;;  %s180_s3 = inlined_call_operand.vmem [shape: bf16[32,32], index: 3, kind: output, shape index: {}]  }
   0x1   :  { %v122_v0 = vld [vmem:[%s177_s1 + $0x10] sm:$0xff]  ;;  %v121_v1 = vld [vmem:[%s177_s1 + $0x8] sm:$0xff]  ;;  %v120_v2 = vld [vmem:[%s177_s1] sm:$0xff] }
   0x2   :  { %69 = vmatpush.bf16.msra.mxu0 %v122_v0  ;;  %123 = vmatpush.bf16.msra.mxu1 %v122_v0  ;;  %v118_v3 = vld [vmem:[%s179_s0] sm:$0xff]  ;;  %v119_v4 = vld [vmem:[%s179_s0 + $0x8] sm:$0xff] }
   0x3   :  { %v126_v5 = vld [vmem:[%s178_s2] ss:$0 sm:$0xff] }
   0x6   :  { %70 = vmatpush.bf16.msra.mxu0 %v121_v1  ;;  %124 = vmatpush.bf16.msra.mxu1 %v121_v1 }
   0xa   :  { %71 = vmatpush.bf16.msra.mxu0 %v120_v2  ;;  %125 = vmatpush.bf16.msra.mxu1 %v120_v2 }
   0xd   :  { %116 = vmatmul.msk.bf16.vlgmr.msra.gmra.mxu0 %vm57_vm0, %v118_v3  ;;  %117 = vmatmul.msk.bf16.vlgmr.msra.gmra.mxu1 %vm57_vm0, %v119_v4 }
  0x8a   :  { %v73_v6 = vpop.f32.mrf.mxu0  ;;  %v78_v7 = vpop.f32.mrf.mxu1 }
  0x8b   :  { %v74_v8 = vadd.f32 %v126_v5, %v73_v6  ;;  %v79_v9 = vadd.f32 %v126_v5, %v78_v7 }
  0x8d   :  { %v83_v10 = vpack.c.bf16 %v74_v8, %v74_v8  ;;  %v85_v11 = vpack.c.bf16 %v79_v9, %v79_v9 }
  0x8f   :  { %88 = vst.msk [vmem:[%s180_s3] sm:$0xf] %vm87_vm1, %v83_v10 }
  0x90   :  { %90 = vst.msk [vmem:[%s180_s3 + $0x8] sm:$0xf] %vm87_vm1, %v85_v11 }
  0x92   :  { %v75_v12 = vpop.f32.mrf.mxu0  ;;  %v80_v13 = vpop.f32.mrf.mxu1 }
  0x93   :  { %v76_v14 = vadd.f32 %v126_v5, %v75_v12  ;;  %v81_v15 = vadd.f32 %v126_v5, %v80_v13 }
  0x95   :  { %v84_v16 = vpack.c.bf16 %v76_v14, %v76_v14  ;;  %v86_v17 = vpack.c.bf16 %v81_v15, %v81_v15 }
  0x97   :  { %89 = vst.msk [vmem:[%s180_s3 + $0x4] sm:$0xf] %vm87_vm1, %v84_v16 }
  0x98   :  { %91 = vst.msk [vmem:[%s180_s3 + $0xc] sm:$0xf] %vm87_vm1, %v86_v17 }

// kernel: recorder_forward.12
= control target key start
LH: loop header
LB: loop body
LE: loop exit
PB: predicated region body
PF: predicated region fallthrough
CT: control target
= control target key end

     0   :  { %vm48_vm0 = vcmask 257024   ;;  %vm35_vm1 = vcmask 261120   ;;  %v322_v13 = vmov 32.0   ;;  %vm181_vm12 = vcmask 254976   ;;  %s450_s0 = inlined_call_operand.vmem [shape: bf16[36,32], index: 0, kind: input, shape index: {}]   ;;  %s451_s3 = inlined_call_operand.vmem [shape: f32[1,32], index: 3, kind: input, shape index: {}]   ;;  %s452_s4 = inlined_call_operand.vmem [shape: f32[1,32], index: 4, kind: input, shape index: {}]   ;;  %s453_s2 = inlined_call_operand.vmem [shape: f32[1,96], index: 2, kind: input, shape index: {}]   ;;  %s454_s1 = inlined_call_operand.vmem [shape: bf16[32,96], index: 1, kind: input, shape index: {}]   ;;  %s455_s5 = inlined_call_operand.vmem [shape: bf16[36,96], index: 5, kind: output, shape index: {}]  }
   0x1   :  { %v29_v0 = vld [vmem:[%s450_s0 + $0x10] sm:$0x3]  ;;  %v294_v1 = vld [vmem:[%s450_s0] sm:$0xff]   ;;  %v301_v4 = vld [vmem:[%s450_s0 + $0x8] sm:$0xff]   ;;  %310 = vrcp.f32 %v322_v13 }
   0x2   :  { %v34_v2 = vunpack.c.l.bf16 %v29_v0  ;;  %v296_v3 = vunpack.c.h.bf16 %v294_v1  ;;  %v300_v5 = vunpack.c.h.bf16 %v301_v4  ;;  %v299_v9 = vunpack.c.l.bf16 %v301_v4  ;;  %v292_v51 = vld [vmem:[%s454_s1 + $0x8] sm:$0xff]  ;;  %v291_v52 = vld [vmem:[%s454_s1] sm:$0xff] }
   0x3   :  { %v295_v10 = vunpack.c.l.bf16 %v294_v1  ;;  %303 = vmatpush.bf16.msra.mxu2 %v292_v51  ;;  %237 = vmatpush.bf16.msra.mxu0 %v292_v51 }
   0x4   :  { %v49_v6 = vsel %vm48_vm0, %v34_v2, 0.0  ;;  %v39_v7 = vsel %vm35_vm1, %v296_v3, 0.0  ;;  %v45_v8 = vsel %vm35_vm1, %v300_v5, 0.0  ;;  %v42_v11 = vsel %vm35_vm1, %v299_v9, 0.0  ;;  %302 = vmatpush.bf16.msra.mxu1 %v292_v51 }
   0x5   :  { %50 = vadd.xlane.f32.xlu0 %v49_v6  ;;  %40 = vadd.xlane.f32.xlu1 %v39_v7  ;;  %v36_v12 = vsel %vm35_vm1, %v295_v10, 0.0 }
   0x6   :  { %46 = vadd.xlane.f32.xlu2 %v45_v8 }
   0x7   :  { %v311_v14 = vpop.eup %310  ;;  %305 = vmatpush.bf16.msra.mxu2 %v291_v52  ;;  %238 = vmatpush.bf16.msra.mxu0 %v291_v52 }
   0x8   :  { %v53_v15 = vmul.f32 32.0, %v311_v14  ;;  %vm57_vm2 = vweird.f32 %v311_v14  ;;  %304 = vmatpush.bf16.msra.mxu1 %v291_v52 }
   0xa   :  { %v54_v16 = vsub.f32 1.0, %v53_v15 }
   0xc   :  { %v55_v17 = vmul.f32 %v311_v14, %v54_v16 }
   0xd   :  { %43 = vadd.xlane.f32.xlu1 %v42_v11  ;;  %37 = vadd.xlane.f32.xlu0 %v36_v12  ;;  %v307_v12 = vld [vmem:[%s451_s3] ss:$0 sm:$0xff] }
   0xe   :  { %v56_v18 = vadd.f32 %v311_v14, %v55_v17  ;;  %v308_v17 = vld [vmem:[%s452_s4] ss:$0 sm:$0xff] }
  0x10   :  { %v367_v19 = vsel %vm57_vm2, %v311_v14, %v56_v18 }
  0x78   :  { %v51_v20 = vpop.xlane.xlu0 %50  ;;  %v41_v21 = vpop.xlane.xlu1 %40 }
  0x79   :  { %v63_v22 = vmul.f32 %v367_v19, %v51_v20  ;;  %v60_v23 = vmul.f32 %v367_v19, %v41_v21  ;;  %v47_v28 = vpop.xlane.xlu2 %46 }
  0x7a   :  { %v62_v35 = vmul.f32 %v367_v19, %v47_v28 }
  0x7b   :  { %v371_v24 = vsub.f32 %v34_v2, %v63_v22  ;;  %v373_v25 = vsub.f32 %v296_v3, %v60_v23 }
  0x7c   :  { %v388_v38 = vsub.f32 %v300_v5, %v62_v35 }
  0x7d   :  { %v73_v26 = vmul.f32 %v371_v24, %v371_v24  ;;  %v70_v27 = vmul.f32 %v373_v25, %v373_v25 }
  0x7e   :  { %v72_v43 = vmul.f32 %v388_v38, %v388_v38 }
  0x7f   :  { %v86_v29 = vsel %vm48_vm0, %v73_v26, 0.0  ;;  %v77_v30 = vsel %vm35_vm1, %v70_v27, 0.0 }
  0x80   :  { %87 = vadd.xlane.f32.xlu2 %v86_v29  ;;  %78 = vadd.xlane.f32.xlu1 %v77_v30  ;;  %v44_v31 = vpop.xlane.xlu1 %43  ;;  %v38_v32 = vpop.xlane.xlu0 %37  ;;  %v83_v44 = vsel %vm35_vm1, %v72_v43, 0.0 }
  0x81   :  { %v61_v33 = vmul.f32 %v367_v19, %v44_v31  ;;  %v59_v34 = vmul.f32 %v367_v19, %v38_v32 }
  0x83   :  { %v384_v36 = vsub.f32 %v299_v9, %v61_v33  ;;  %v386_v37 = vsub.f32 %v295_v10, %v59_v34 }
  0x85   :  { %v71_v39 = vmul.f32 %v384_v36, %v384_v36  ;;  %v69_v40 = vmul.f32 %v386_v37, %v386_v37 }
  0x87   :  { %v80_v41 = vsel %vm35_vm1, %v71_v39, 0.0  ;;  %v74_v42 = vsel %vm35_vm1, %v69_v40, 0.0 }
  0x88   :  { %81 = vadd.xlane.f32.xlu2 %v80_v41  ;;  %75 = vadd.xlane.f32.xlu0 %v74_v42 }
  0x90   :  { %84 = vadd.xlane.f32.xlu0 %v83_v44 }
  0xf3   :  { %v88_v45 = vpop.xlane.xlu2 %87  ;;  %v79_v46 = vpop.xlane.xlu1 %78 }
  0xf4   :  { %v93_v47 = vmul.f32 %v88_v45, %v367_v19  ;;  %v90_v48 = vmul.f32 %v79_v46, %v367_v19 }
  0xf6   :  { %v98_v49 = vadd.f32 1e-06, %v93_v47  ;;  %v95_v50 = vadd.f32 1e-06, %v90_v48 }
  0xf8   :  { %312 = vrsqrt.f32 %v98_v49  ;;  %vm115_vm4 = vweird.f32 %v95_v50  ;;  %vm145_vm6 = vweird.f32 %v98_v49 }
  0xf9   :  { %314 = vrsqrt.f32 %v95_v50 }
  0xfb   :  { %v82_v53 = vpop.xlane.xlu2 %81  ;;  %v76_v54 = vpop.xlane.xlu0 %75 }
  0xfc   :  { %v91_v55 = vmul.f32 %v82_v53, %v367_v19  ;;  %v89_v56 = vmul.f32 %v76_v54, %v367_v19 }
  0xfe   :  { %v313_v57 = vpop.eup %312  ;;  %v96_v58 = vadd.f32 1e-06, %v91_v55  ;;  %v94_v59 = vadd.f32 1e-06, %v89_v56 }
  0xff   :  { %v315_v60 = vpop.eup %314  ;;  %v140_v61 = vmul.f32 %v313_v57, %v98_v49  ;;  %vm146_vm3 = vweird.f32 %v313_v57 }
 0x100   :  { %v110_v62 = vmul.f32 %v315_v60, %v95_v50  ;;  %316 = vrsqrt.f32 %v96_v58  ;;  %vm116_vm5 = vweird.f32 %v315_v60  ;;  %vm147_vm7 = vmor %vm145_vm6, %vm146_vm3  ;;  %vm125_vm9 = vweird.f32 %v96_v58 }
 0x101   :  { %v141_v63 = vmul.f32 %v313_v57, %v140_v61  ;;  %318 = vrsqrt.f32 %v94_v59  ;;  %vm117_vm8 = vmor %vm115_vm4, %vm116_vm5  ;;  %vm105_vm14 = vweird.f32 %v94_v59  ;;  %vm259_vm5 = vcmask 781312  }
 0x102   :  { %v111_v0 = vmul.f32 %v315_v60, %v110_v62  ;;  %vm264_vm6 = vcmask 779264  }
 0x103   :  { %v142_v1 = vmul.f32 0.5, %v141_v63  ;;  %v85_v2 = vpop.xlane.xlu0 %84 }
 0x104   :  { %v112_v3 = vmul.f32 0.5, %v111_v0  ;;  %v92_v4 = vmul.f32 %v85_v2, %v367_v19 }
 0x105   :  { %v143_v5 = vsub.f32 1.5, %v142_v1 }
 0x106   :  { %v317_v6 = vpop.eup %316  ;;  %v113_v7 = vsub.f32 1.5, %v112_v3  ;;  %v97_v8 = vadd.f32 1e-06, %v92_v4 }
 0x107   :  { %v319_v9 = vpop.eup %318  ;;  %v144_v10 = vmul.f32 %v313_v57, %v143_v5  ;;  %v120_v11 = vmul.f32 %v317_v6, %v96_v58  ;;  %vm126_vm10 = vweird.f32 %v317_v6 }
 0x108   :  { %v114_v13 = vmul.f32 %v315_v60, %v113_v7  ;;  %v100_v14 = vmul.f32 %v319_v9, %v94_v59  ;;  %320 = vrsqrt.f32 %v97_v8  ;;  %vm106_vm11 = vweird.f32 %v319_v9  ;;  %vm127_vm13 = vmor %vm125_vm9, %vm126_vm10 }
 0x109   :  { %v148_v15 = vsel %vm147_vm7, %v313_v57, %v144_v10  ;;  %v121_v16 = vmul.f32 %v317_v6, %v120_v11  ;;  %vm107_vm15 = vmor %vm105_vm14, %vm106_vm11  ;;  %vm135_vm3 = vweird.f32 %v97_v8 }
 0x10a   :  { %v153_v18 = vmul.f32 %v148_v15, %v371_v24  ;;  %v118_v19 = vsel %vm117_vm8, %v315_v60, %v114_v13  ;;  %v101_v20 = vmul.f32 %v319_v9, %v100_v14 }
 0x10b   :  { %v150_v21 = vmul.f32 %v118_v19, %v373_v25  ;;  %v122_v22 = vmul.f32 0.5, %v121_v16 }
 0x10c   :  { %v162_v23 = vmul.f32 %v307_v12, %v153_v18  ;;  %v102_v26 = vmul.f32 0.5, %v101_v20 }
 0x10d   :  { %v159_v27 = vmul.f32 %v307_v12, %v150_v21  ;;  %v123_v28 = vsub.f32 1.5, %v122_v22 }
 0x10e   :  { %v321_v29 = vpop.eup %320  ;;  %v171_v30 = vadd.f32 %v308_v17, %v162_v23  ;;  %v103_v31 = vsub.f32 1.5, %v102_v26 }
 0x10f   :  { %v168_v32 = vadd.f32 %v308_v17, %v159_v27  ;;  %v124_v33 = vmul.f32 %v317_v6, %v123_v28  ;;  %v130_v34 = vmul.f32 %v321_v29, %v97_v8  ;;  %vm136_vm2 = vweird.f32 %v321_v29 }
 0x110   :  { %v176_v24 = vpack.c.bf16 %v171_v30, %v171_v30  ;;  %v104_v35 = vmul.f32 %v319_v9, %v103_v31  ;;  %vm137_vm4 = vmor %vm135_vm3, %vm136_vm2 }
 0x111   :  { %v173_v25 = vpack.c.bf16 %v168_v32, %v168_v32  ;;  %v128_v39 = vsel %vm127_vm13, %v317_v6, %v124_v33  ;;  %v131_v40 = vmul.f32 %v321_v29, %v130_v34 }
 0x112   :  { %182 = vst.msk [vmem:[#allocation2 + $0x10] sm:$0x3] %vm181_vm12, %v176_v24  ;;  %v151_v41 = vmul.f32 %v128_v39, %v384_v36  ;;  %v108_v42 = vsel %vm107_vm15, %v319_v9, %v104_v35 }
 0x113   :  { %178 = vst.msk [vmem:[#allocation2 + $0x4] sm:$0xf] %vm48_vm0, %v173_v25  ;;  %v149_v43 = vmul.f32 %v108_v42, %v386_v37  ;;  %v132_v44 = vmul.f32 0.5, %v131_v40 }
 0x114   :  { %v160_v45 = vmul.f32 %v307_v12, %v151_v41 }
 0x115   :  { %v158_v46 = vmul.f32 %v307_v12, %v149_v43  ;;  %v133_v47 = vsub.f32 1.5, %v132_v44 }
 0x116   :  { %v169_v48 = vadd.f32 %v308_v17, %v160_v45 }
 0x117   :  { %v167_v49 = vadd.f32 %v308_v17, %v158_v46  ;;  %v134_v50 = vmul.f32 %v321_v29, %v133_v47 }
 0x118   :  { %v174_v51 = vpack.c.bf16 %v169_v48, %v169_v48 }
 0x119   :  { %v172_v52 = vpack.c.bf16 %v167_v49, %v167_v49  ;;  %v138_v53 = vsel %vm137_vm4, %v321_v29, %v134_v50  ;;  %v187_v54 = vld [vmem:[#allocation2 + $0x10] sm:$0x3] }
 0x11a   :  { %179 = vst.msk [vmem:[#allocation2 + $0x8] sm:$0xf] %vm48_vm0, %v174_v51  ;;  %v152_v36 = vmul.f32 %v138_v53, %v388_v38  ;;  %v205_v55 = vunpack.c.l.b16 %v187_v54  ;;  %v309_v38 = vld [vmem:[%s453_s2] ss:$0 sm:$0xff] }
 0x11b   :  { %177 = vst.msk [vmem:[#allocation2] sm:$0xf] %vm48_vm0, %v172_v52 }
 0x11c   :  { %v161_v37 = vmul.f32 %v307_v12, %v152_v36  ;;  %v208_v56 = vpack.c.b16 %v205_v55, %v205_v55 }
 0x11e   :  { %v170_v57 = vadd.f32 %v308_v17, %v161_v37  ;;  %288 = vmatmul.msk.bf16.vlgmr.msra.gmra.mxu2 %vm35_vm1, %v208_v56 }
 0x120   :  { %v175_v58 = vpack.c.bf16 %v170_v57, %v170_v57 }
 0x122   :  { %180 = vst.msk [vmem:[#allocation2 + $0xc] sm:$0xf] %vm48_vm0, %v175_v58  ;;  %v289_v59 = vld [vmem:[#allocation2] sm:$0xff] }
 0x123   :  { %286 = vmatmul.msk.bf16.vlgmr.msra.gmra.mxu0 %vm35_vm1, %v289_v59 }
 0x129   :  { %v290_v60 = vld [vmem:[#allocation2 + $0x8] sm:$0xff] }
 0x12a   :  { %287 = vmatmul.msk.bf16.vlgmr.msra.gmra.mxu1 %vm35_vm1, %v290_v60 }
 0x1a0   :  { %v240_v61 = vpop.f32.mrf.mxu0 }
 0x1a1   :  { %v250_v62 = vpop.f32.mrf.mxu2  ;;  %v241_v63 = vadd.f32 %v309_v38, %v240_v61 }
 0x1a2   :  { %v251_v0 = vadd.f32 %v309_v38, %v250_v62 }
 0x1a3   :  { %v254_v1 = vpack.c.bf16 %v241_v63, %v241_v63 }
 0x1a4   :  { %v258_v2 = vpack.c.bf16 %v251_v0, %v251_v0 }
 0x1a5   :  { %260 = vst.msk [vmem:[%s455_s5] sm:$0xf] %vm259_vm5, %v254_v1 }
 0x1a6   :  { %265 = vst.msk [vmem:[%s455_s5 + $0x10] sm:$0x3] %vm264_vm6, %v258_v2 }
 0x1a7   :  { %v245_v3 = vpop.f32.mrf.mxu1 }
 0x1a8   :  { %v242_v4 = vpop.f32.mrf.mxu0  ;;  %v246_v5 = vadd.f32 %v309_v38, %v245_v3 }
 0x1a9   :  { %v252_v6 = vpop.f32.mrf.mxu2  ;;  %v243_v7 = vadd.f32 %v309_v38, %v242_v4 }
 0x1aa   :  { %v256_v8 = vpack.c.bf16 %v246_v5, %v246_v5 }
 0x1ab   :  { %v255_v9 = vpack.c.bf16 %v243_v7, %v243_v7 }
 0x1ac   :  { %262 = vst.msk [vmem:[%s455_s5 + $0x8] sm:$0xf] %vm259_vm5, %v256_v8 }
 0x1ad   :  { %261 = vst.msk [vmem:[%s455_s5 + $0x4] sm:$0xf] %vm259_vm5, %v255_v9 }
 0x1af   :  { %v247_v10 = vpop.f32.mrf.mxu1 }
 0x1b0   :  { %v248_v11 = vadd.f32 %v309_v38, %v247_v10 }
 0x1b2   :  { %v257_v12 = vpack.c.bf16 %v248_v11, %v248_v11 }
 0x1b4   :  { %263 = vst.msk [vmem:[%s455_s5 + $0xc] sm:$0xf] %vm259_vm5, %v257_v12 }

// kernel: recorder_forward.14
= control target key start
LH: loop header
LB: loop body
LE: loop exit
PB: predicated region body
PF: predicated region fallthrough
CT: control target
= control target key end

     0   :  { %vm35_vm0 = vcmask 261120   ;;  %vm48_vm1 = vcmask 257024   ;;  %v377_v13 = vmov 32.0   ;;  %s505_s0 = inlined_call_operand.vmem [shape: bf16[36,32], index: 0, kind: input, shape index: {}]   ;;  %s506_s3 = inlined_call_operand.vmem [shape: f32[1,32], index: 3, kind: input, shape index: {}]   ;;  %s507_s4 = inlined_call_operand.vmem [shape: f32[1,32], index: 4, kind: input, shape index: {}]   ;;  %s508_s2 = inlined_call_operand.vmem [shape: f32[1,64], index: 2, kind: input, shape index: {}]   ;;  %s509_s1 = inlined_call_operand.vmem [shape: bf16[32,64], index: 1, kind: input, shape index: {}]   ;;  %s510_s5 = inlined_call_operand.vmem [shape: bf16[36,64], index: 5, kind: output, shape index: {}]  }
   0x1   :  { %v346_v0 = vld [vmem:[%s505_s0 + $0x8] sm:$0xff]   ;;  %v339_v1 = vld [vmem:[%s505_s0] sm:$0xff]   ;;  %v29_v2 = vld [vmem:[%s505_s0 + $0x10] sm:$0x3]  ;;  %355 = vrcp.f32 %v377_v13 }
   0x2   :  { %v344_v3 = vunpack.c.l.bf16 %v346_v0  ;;  %v340_v4 = vunpack.c.l.bf16 %v339_v1  ;;  %v34_v5 = vunpack.c.l.bf16 %v29_v2  ;;  %v345_v9 = vunpack.c.h.bf16 %v346_v0  ;;  %v337_v53 = vld [vmem:[%s509_s1 + $0x8] sm:$0xff]  ;;  %v336_v61 = vld [vmem:[%s509_s1] sm:$0xff] }
   0x3   :  { %v341_v10 = vunpack.c.h.bf16 %v339_v1  ;;  %237 = vmatpush.bf16.msra.mxu0 %v337_v53  ;;  %347 = vmatpush.bf16.msra.mxu1 %v337_v53 }
   0x4   :  { %v42_v6 = vsel %vm35_vm0, %v344_v3, 0.0  ;;  %v36_v7 = vsel %vm35_vm0, %v340_v4, 0.0  ;;  %v49_v8 = vsel %vm48_vm1, %v34_v5, 0.0  ;;  %v45_v11 = vsel %vm35_vm0, %v345_v9, 0.0  ;;  %348 = vmatpush.bf16.msra.mxu2 %v337_v53 }
   0x5   :  { %43 = vadd.xlane.f32.xlu1 %v42_v6  ;;  %37 = vadd.xlane.f32.xlu0 %v36_v7  ;;  %v39_v12 = vsel %vm35_vm0, %v341_v10, 0.0 }
   0x6   :  { %50 = vadd.xlane.f32.xlu2 %v49_v8 }
   0x7   :  { %v356_v14 = vpop.eup %355  ;;  %238 = vmatpush.bf16.msra.mxu0 %v336_v61  ;;  %349 = vmatpush.bf16.msra.mxu1 %v336_v61 }
   0x8   :  { %v53_v15 = vmul.f32 32.0, %v356_v14  ;;  %vm57_vm2 = vweird.f32 %v356_v14  ;;  %350 = vmatpush.bf16.msra.mxu2 %v336_v61 }
   0xa   :  { %v54_v16 = vsub.f32 1.0, %v53_v15 }
   0xc   :  { %v55_v17 = vmul.f32 %v356_v14, %v54_v16 }
   0xd   :  { %46 = vadd.xlane.f32.xlu1 %v45_v11  ;;  %40 = vadd.xlane.f32.xlu0 %v39_v12  ;;  %v352_v12 = vld [vmem:[%s506_s3] ss:$0 sm:$0xff] }
   0xe   :  { %v56_v18 = vadd.f32 %v356_v14, %v55_v17  ;;  %v353_v17 = vld [vmem:[%s507_s4] ss:$0 sm:$0xff] }
  0x10   :  { %v422_v19 = vsel %vm57_vm2, %v356_v14, %v56_v18 }
  0x78   :  { %v44_v20 = vpop.xlane.xlu1 %43  ;;  %v38_v21 = vpop.xlane.xlu0 %37 }
  0x79   :  { %v61_v22 = vmul.f32 %v422_v19, %v44_v20  ;;  %v59_v23 = vmul.f32 %v422_v19, %v38_v21  ;;  %v51_v28 = vpop.xlane.xlu2 %50 }
  0x7a   :  { %v63_v35 = vmul.f32 %v422_v19, %v51_v28 }
  0x7b   :  { %v426_v24 = vsub.f32 %v344_v3, %v61_v22  ;;  %v428_v25 = vsub.f32 %v340_v4, %v59_v23 }
  0x7c   :  { %v443_v38 = vsub.f32 %v34_v5, %v63_v35 }
  0x7d   :  { %v71_v26 = vmul.f32 %v426_v24, %v426_v24  ;;  %v69_v27 = vmul.f32 %v428_v25, %v428_v25 }
  0x7e   :  { %v73_v43 = vmul.f32 %v443_v38, %v443_v38 }
  0x7f   :  { %v80_v29 = vsel %vm35_vm0, %v71_v26, 0.0  ;;  %v74_v30 = vsel %vm35_vm0, %v69_v27, 0.0 }
  0x80   :  { %81 = vadd.xlane.f32.xlu1 %v80_v29  ;;  %v47_v31 = vpop.xlane.xlu1 %46  ;;  %75 = vadd.xlane.f32.xlu2 %v74_v30  ;;  %v41_v32 = vpop.xlane.xlu0 %40  ;;  %v86_v44 = vsel %vm48_vm1, %v73_v43, 0.0 }
  0x81   :  { %v62_v33 = vmul.f32 %v422_v19, %v47_v31  ;;  %v60_v34 = vmul.f32 %v422_v19, %v41_v32 }
  0x83   :  { %v439_v36 = vsub.f32 %v345_v9, %v62_v33  ;;  %v441_v37 = vsub.f32 %v341_v10, %v60_v34 }
  0x85   :  { %v72_v39 = vmul.f32 %v439_v36, %v439_v36  ;;  %v70_v40 = vmul.f32 %v441_v37, %v441_v37 }
  0x87   :  { %v83_v41 = vsel %vm35_vm0, %v72_v39, 0.0  ;;  %v77_v42 = vsel %vm35_vm0, %v70_v40, 0.0 }
  0x88   :  { %84 = vadd.xlane.f32.xlu2 %v83_v41  ;;  %78 = vadd.xlane.f32.xlu0 %v77_v42 }
  0x90   :  { %87 = vadd.xlane.f32.xlu0 %v86_v44 }
  0xf3   :  { %v82_v45 = vpop.xlane.xlu1 %81  ;;  %v76_v46 = vpop.xlane.xlu2 %75 }
  0xf4   :  { %v91_v47 = vmul.f32 %v82_v45, %v422_v19  ;;  %v89_v48 = vmul.f32 %v76_v46, %v422_v19 }
  0xf6   :  { %v96_v49 = vadd.f32 1e-06, %v91_v47  ;;  %v94_v50 = vadd.f32 1e-06, %v89_v48 }
  0xf8   :  { %357 = vrsqrt.f32 %v96_v49  ;;  %vm125_vm3 = vweird.f32 %v96_v49  ;;  %vm105_vm7 = vweird.f32 %v94_v50 }
  0xf9   :  { %359 = vrsqrt.f32 %v94_v50 }
  0xfb   :  { %v85_v51 = vpop.xlane.xlu2 %84  ;;  %v79_v52 = vpop.xlane.xlu0 %78 }
  0xfc   :  { %v92_v54 = vmul.f32 %v85_v51, %v422_v19  ;;  %v90_v55 = vmul.f32 %v79_v52, %v422_v19 }
  0xfe   :  { %v358_v56 = vpop.eup %357  ;;  %v97_v57 = vadd.f32 1e-06, %v92_v54  ;;  %v95_v58 = vadd.f32 1e-06, %v90_v55 }
  0xff   :  { %v360_v59 = vpop.eup %359  ;;  %v120_v60 = vmul.f32 %v358_v56, %v96_v49  ;;  %vm126_vm4 = vweird.f32 %v358_v56 }
 0x100   :  { %v100_v62 = vmul.f32 %v360_v59, %v94_v50  ;;  %361 = vrsqrt.f32 %v97_v57  ;;  %vm106_vm5 = vweird.f32 %v360_v59  ;;  %vm127_vm6 = vmor %vm125_vm3, %vm126_vm4  ;;  %vm135_vm9 = vweird.f32 %v97_v57 }
 0x101   :  { %v121_v63 = vmul.f32 %v358_v56, %v120_v60  ;;  %363 = vrsqrt.f32 %v95_v58  ;;  %vm107_vm8 = vmor %vm105_vm7, %vm106_vm5  ;;  %vm115_vm13 = vweird.f32 %v95_v58  ;;  %vm181_vm4 = vcmask 254976  }
 0x102   :  { %v101_v0 = vmul.f32 %v360_v59, %v100_v62 }
 0x103   :  { %v122_v1 = vmul.f32 0.5, %v121_v63  ;;  %v88_v2 = vpop.xlane.xlu0 %87 }
 0x104   :  { %v102_v3 = vmul.f32 0.5, %v101_v0  ;;  %v93_v4 = vmul.f32 %v88_v2, %v422_v19 }
 0x105   :  { %v123_v5 = vsub.f32 1.5, %v122_v1 }
 0x106   :  { %v362_v6 = vpop.eup %361  ;;  %v103_v7 = vsub.f32 1.5, %v102_v3  ;;  %v98_v8 = vadd.f32 1e-06, %v93_v4 }
 0x107   :  { %v364_v9 = vpop.eup %363  ;;  %v124_v10 = vmul.f32 %v358_v56, %v123_v5  ;;  %v130_v11 = vmul.f32 %v362_v6, %v97_v57  ;;  %vm136_vm10 = vweird.f32 %v362_v6 }
 0x108   :  { %v104_v13 = vmul.f32 %v360_v59, %v103_v7  ;;  %v110_v14 = vmul.f32 %v364_v9, %v95_v58  ;;  %365 = vrsqrt.f32 %v98_v8  ;;  %vm116_vm11 = vweird.f32 %v364_v9  ;;  %vm137_vm12 = vmor %vm135_vm9, %vm136_vm10 }
 0x109   :  { %v128_v15 = vsel %vm127_vm6, %v358_v56, %v124_v10  ;;  %v131_v16 = vmul.f32 %v362_v6, %v130_v11  ;;  %vm117_vm14 = vmor %vm115_vm13, %vm116_vm11  ;;  %vm145_vm2 = vweird.f32 %v98_v8 }
 0x10a   :  { %v151_v18 = vmul.f32 %v128_v15, %v426_v24  ;;  %v108_v19 = vsel %vm107_vm8, %v360_v59, %v104_v13  ;;  %v111_v20 = vmul.f32 %v364_v9, %v110_v14 }
 0x10b   :  { %v149_v21 = vmul.f32 %v108_v19, %v428_v25  ;;  %v132_v22 = vmul.f32 0.5, %v131_v16 }
 0x10c   :  { %v160_v23 = vmul.f32 %v352_v12, %v151_v18  ;;  %v112_v26 = vmul.f32 0.5, %v111_v20 }
 0x10d   :  { %v158_v27 = vmul.f32 %v352_v12, %v149_v21  ;;  %v133_v28 = vsub.f32 1.5, %v132_v22 }
 0x10e   :  { %v366_v29 = vpop.eup %365  ;;  %v169_v30 = vadd.f32 %v353_v17, %v160_v23  ;;  %v113_v31 = vsub.f32 1.5, %v112_v26 }
 0x10f   :  { %v167_v32 = vadd.f32 %v353_v17, %v158_v27  ;;  %v134_v33 = vmul.f32 %v362_v6, %v133_v28  ;;  %v140_v34 = vmul.f32 %v366_v29, %v98_v8  ;;  %vm146_vm15 = vweird.f32 %v366_v29 }
 0x110   :  { %v174_v35 = vpack.c.bf16 %v169_v30, %v169_v30  ;;  %v114_v24 = vmul.f32 %v364_v9, %v113_v31  ;;  %vm147_vm3 = vmor %vm145_vm2, %vm146_vm15 }
 0x111   :  { %v172_v39 = vpack.c.bf16 %v167_v32, %v167_v32  ;;  %v138_v25 = vsel %vm137_vm12, %v362_v6, %v134_v33  ;;  %v141_v40 = vmul.f32 %v366_v29, %v140_v34 }
 0x112   :  { %179 = vst.msk [vmem:[#allocation2 + $0x8] sm:$0xf] %vm48_vm1, %v174_v35  ;;  %v152_v41 = vmul.f32 %v138_v25, %v439_v36  ;;  %v118_v42 = vsel %vm117_vm14, %v364_v9, %v114_v24 }
 0x113   :  { %177 = vst.msk [vmem:[#allocation2] sm:$0xf] %vm48_vm1, %v172_v39  ;;  %v150_v43 = vmul.f32 %v118_v42, %v441_v37  ;;  %v142_v44 = vmul.f32 0.5, %v141_v40 }
 0x114   :  { %v161_v45 = vmul.f32 %v352_v12, %v152_v41 }
 0x115   :  { %v159_v46 = vmul.f32 %v352_v12, %v150_v43  ;;  %v143_v47 = vsub.f32 1.5, %v142_v44 }
 0x116   :  { %v170_v48 = vadd.f32 %v353_v17, %v161_v45 }
 0x117   :  { %v168_v49 = vadd.f32 %v353_v17, %v159_v46  ;;  %v144_v50 = vmul.f32 %v366_v29, %v143_v47 }
 0x118   :  { %v175_v51 = vpack.c.bf16 %v170_v48, %v170_v48 }
 0x119   :  { %v173_v52 = vpack.c.bf16 %v168_v49, %v168_v49  ;;  %v148_v53 = vsel %vm147_vm3, %v366_v29, %v144_v50 }
 0x11a   :  { %180 = vst.msk [vmem:[#allocation2 + $0xc] sm:$0xf] %vm48_vm1, %v175_v51  ;;  %v153_v36 = vmul.f32 %v148_v53, %v443_v38  ;;  %v354_v38 = vld [vmem:[%s508_s2] ss:$0 sm:$0xff] }
 0x11b   :  { %178 = vst.msk [vmem:[#allocation2 + $0x4] sm:$0xf] %vm48_vm1, %v173_v52  ;;  %vm309_vm1 = vcmask 517120  }
 0x11c   :  { %v162_v37 = vmul.f32 %v352_v12, %v153_v36 }
 0x11e   :  { %v171_v54 = vadd.f32 %v353_v17, %v162_v37 }
 0x120   :  { %v176_v55 = vpack.c.bf16 %v171_v54, %v171_v54 }
 0x121   :  { %v335_v56 = vld [vmem:[#allocation2 + $0x8] sm:$0xff] }
 0x122   :  { %182 = vst.msk [vmem:[#allocation2 + $0x10] sm:$0x3] %vm181_vm4, %v176_v55  ;;  %v334_v57 = vld [vmem:[#allocation2] sm:$0xff]  ;;  %332 = vmatmul.msk.bf16.vlgmr.msra.gmra.mxu1 %vm35_vm0, %v335_v56 }
 0x123   :  { %331 = vmatmul.msk.bf16.vlgmr.msra.gmra.mxu0 %vm35_vm0, %v334_v57 }
 0x129   :  { %v187_v58 = vld [vmem:[#allocation2 + $0x10] sm:$0x3] }
 0x12a   :  { %v205_v59 = vunpack.c.l.b16 %v187_v58 }
 0x12c   :  { %v208_v60 = vpack.c.b16 %v205_v59, %v205_v59 }
 0x12e   :  { %333 = vmatmul.msk.bf16.vlgmr.msra.gmra.mxu2 %vm35_vm0, %v208_v60  ;;  %vm304_vm0 = vcmask 519168  }
 0x19f   :  { %v245_v61 = vpop.f32.mrf.mxu1 }
 0x1a0   :  { %v240_v62 = vpop.f32.mrf.mxu0  ;;  %v246_v63 = vadd.f32 %v354_v38, %v245_v61 }
 0x1a1   :  { %v241_v0 = vadd.f32 %v354_v38, %v240_v62 }
 0x1a2   :  { %v256_v1 = vmul.f32 %v246_v63, %v246_v63 }
 0x1a3   :  { %v254_v2 = vmul.f32 %v241_v0, %v241_v0 }
 0x1a4   :  { %v261_v3 = vmul.f32 %v256_v1, %v246_v63 }
 0x1a5   :  { %v259_v4 = vmul.f32 %v254_v2, %v241_v0 }
 0x1a6   :  { %v266_v5 = vmul.f32 0.044715, %v261_v3 }
 0x1a7   :  { %v264_v6 = vmul.f32 0.044715, %v259_v4  ;;  %v247_v7 = vpop.f32.mrf.mxu1 }
 0x1a8   :  { %v271_v8 = vadd.f32 %v266_v5, %v246_v63  ;;  %v242_v9 = vpop.f32.mrf.mxu0  ;;  %v248_v10 = vadd.f32 %v354_v38, %v247_v7 }
 0x1a9   :  { %v269_v11 = vadd.f32 %v264_v6, %v241_v0  ;;  %v243_v12 = vadd.f32 %v354_v38, %v242_v9 }
 0x1aa   :  { %v276_v13 = vmul.f32 0.7978846, %v271_v8  ;;  %v257_v14 = vmul.f32 %v248_v10, %v248_v10 }
 0x1ab   :  { %v274_v15 = vmul.f32 0.7978846, %v269_v11  ;;  %v255_v16 = vmul.f32 %v243_v12, %v243_v12 }
 0x1ac   :  { %367 = vtanh.f32 %v276_v13  ;;  %v262_v17 = vmul.f32 %v257_v14, %v248_v10 }
 0x1ad   :  { %369 = vtanh.f32 %v274_v15  ;;  %v260_v18 = vmul.f32 %v255_v16, %v243_v12 }
 0x1ae   :  { %v267_v19 = vmul.f32 0.044715, %v262_v17 }
 0x1af   :  { %v265_v20 = vmul.f32 0.044715, %v260_v18 }
 0x1b0   :  { %v272_v21 = vadd.f32 %v267_v19, %v248_v10 }
 0x1b1   :  { %v250_v22 = vpop.f32.mrf.mxu2  ;;  %v270_v23 = vadd.f32 %v265_v20, %v243_v12 }
 0x1b2   :  { %v251_v26 = vadd.f32 %v354_v38, %v250_v22  ;;  %v368_v27 = vpop.eup %367  ;;  %v277_v28 = vmul.f32 0.7978846, %v272_v21 }
 0x1b3   :  { %v370_v29 = vpop.eup %369  ;;  %v286_v30 = vadd.f32 1.0, %v368_v27  ;;  %v275_v31 = vmul.f32 0.7978846, %v270_v23 }
 0x1b4   :  { %v258_v32 = vmul.f32 %v251_v26, %v251_v26  ;;  %v284_v33 = vadd.f32 1.0, %v370_v29  ;;  %371 = vtanh.f32 %v277_v28 }
 0x1b5   :  { %v291_v34 = vmul.f32 0.5, %v286_v30  ;;  %373 = vtanh.f32 %v275_v31 }
 0x1b6   :  { %v263_v35 = vmul.f32 %v258_v32, %v251_v26  ;;  %v289_v24 = vmul.f32 0.5, %v284_v33 }
 0x1b7   :  { %v296_v39 = vmul.f32 %v291_v34, %v246_v63 }
 0x1b8   :  { %v268_v25 = vmul.f32 0.044715, %v263_v35  ;;  %v294_v40 = vmul.f32 %v289_v24, %v241_v0 }
 0x1b9   :  { %v252_v41 = vpop.f32.mrf.mxu2  ;;  %v301_v42 = vpack.c.bf16 %v296_v39, %v296_v39 }
 0x1ba   :  { %v273_v43 = vadd.f32 %v268_v25, %v251_v26  ;;  %v372_v44 = vpop.eup %371  ;;  %v299_v45 = vpack.c.bf16 %v294_v40, %v294_v40 }
 0x1bb   :  { %v374_v46 = vpop.eup %373  ;;  %307 = vst.msk [vmem:[%s510_s5 + $0x8] sm:$0xf] %vm304_vm0, %v301_v42  ;;  %v287_v47 = vadd.f32 1.0, %v372_v44 }
 0x1bc   :  { %v278_v48 = vmul.f32 0.7978846, %v273_v43  ;;  %305 = vst.msk [vmem:[%s510_s5] sm:$0xf] %vm304_vm0, %v299_v45  ;;  %v285_v49 = vadd.f32 1.0, %v374_v46 }
 0x1bd   :  { %v292_v50 = vmul.f32 0.5, %v287_v47 }
 0x1be   :  { %375 = vtanh.f32 %v278_v48  ;;  %v290_v51 = vmul.f32 0.5, %v285_v49 }
 0x1bf   :  { %v297_v52 = vmul.f32 %v292_v50, %v248_v10 }
 0x1c0   :  { %v295_v53 = vmul.f32 %v290_v51, %v243_v12 }
 0x1c1   :  { %v302_v36 = vpack.c.bf16 %v297_v52, %v297_v52 }
 0x1c2   :  { %v300_v37 = vpack.c.bf16 %v295_v53, %v295_v53 }
 0x1c3   :  { %308 = vst.msk [vmem:[%s510_s5 + $0xc] sm:$0xf] %vm304_vm0, %v302_v36 }
 0x1c4   :  { %v376_v54 = vpop.eup %375  ;;  %306 = vst.msk [vmem:[%s510_s5 + $0x4] sm:$0xf] %vm304_vm0, %v300_v37 }
 0x1c5   :  { %v288_v55 = vadd.f32 1.0, %v376_v54 }
 0x1c7   :  { %v293_v56 = vmul.f32 0.5, %v288_v55 }
 0x1c9   :  { %v298_v57 = vmul.f32 %v293_v56, %v251_v26 }
 0x1cb   :  { %v303_v58 = vpack.c.bf16 %v298_v57, %v298_v57 }
 0x1cd   :  { %310 = vst.msk [vmem:[%s510_s5 + $0x10] sm:$0x3] %vm309_vm1, %v303_v58 }

// kernel: recorder_forward.13
= control target key start
LH: loop header
LB: loop body
LE: loop exit
PB: predicated region body
PF: predicated region fallthrough
CT: control target
= control target key end

     0   :  { %s1289_s21 = smov 0   ;;  %s1562_s0 = inlined_call_operand.vmem [shape: bf16[2,18,96], index: 0, kind: input, shape index: {}]   ;;  %s1563_s1 = inlined_call_operand.vmem [shape: bf16[2,18,32], index: 1, kind: input, shape index: {}]   ;;  %s1564_s2 = inlined_call_operand.vmem [shape: bf16[32,32], index: 2, kind: input, shape index: {}]   ;;  %s1565_s3 = inlined_call_operand.vmem [shape: f32[1,32], index: 3, kind: input, shape index: {}]   ;;  %s1566_s4 = inlined_call_operand.vmem [shape: f32[2,2,18,32], index: 4, kind: input, shape index: {}, may-alias: {4,6}]   ;;  %s1567_s5 = inlined_call_operand.vmem [shape: bf16[2,18,32], index: 5, kind: output, shape index: {0}]   ;;  %s1568_s6 = inlined_call_operand.vmem [shape: f32[2,2,18,32], index: 6, kind: output, shape index: {1}, may-alias: {4,6}]  }
   0x1 LB: > { %s1104_s22 = sadd.s32 4294967295, %s1238_s21   ;;  %p1108_p0 = scmp.ge.s32.totalorder %s1238_s21, 1  ;;  %s1238_s21 = sphi %s1289_s21, %s17_s21  }
   0x2   : > { %p201_p1 = scmp.lt.s32.totalorder %s1238_s21, 3 }
   0x4   : > { %p202_p2 = pnand %p1108_p0, %p201_p1 }
   0x5   : > { %p239_p3 = scmp.lt.s32.totalorder (!%p202_p2), %s1104_s22, 1  ;;  %s1240_s26 = smov (!%p202_p2), 88  }
   0x6   : > { %205 = sbr.rel (%p202_p2) target bundleno = 1514 (0x5ea), region = 36  ;;  %s1241_s27 = smov (!%p202_p2), 96  }
   0x7   : > { %s1242_s28 = smov (!%p202_p2), 64   ;;  %s1243_s29 = smov (!%p202_p2), 120  }
   0x8   : > { %s1244_s30 = smov (!%p202_p2), 80   ;;  %s1245_s7 = smov (!%p202_p2), 72  }
   0x9   : > { %s1246_s8 = smov (!%p202_p2), 112   ;;  %s1247_s9 = smov (!%p202_p2), 104  }
   0xa   : > { %s1248_s10 = smov (!%p202_p2), 56   ;;  %s1249_s11 = smov (!%p202_p2), 48  }
   0xb   : > { %s1576_s22 = smov (!%p239_p3, %s1104_s22), 1  ;;  %vm275_vm0 = vcmask 64512   ;;  %vm396_vm1 = vcmask 1040384   ;;  %vm309_vm2 = vcmask 146432   ;;  %vm316_vm3 = vcmask 140288   ;;  %s1250_s12 = smov 40  }
   0xc   : > { %s1300_s4 = smul.u32 12, %s1576_s22  ;;  %s1251_s13 = smov 8  }
   0xd   : > { %s1252_s14 = smov 16   ;;  %s1253_s15 = smov 24  }
   0xe   : > { %s243_s25 = scalar_lea.vmem %s1562_s0, %s1300_s4  ;;  %s248_s24 = scalar_lea.vmem %s1563_s1, %s1300_s4 }
   0xf   : > { %v262_v0 = vld [vmem:[%s243_s25 + $0x8] sm:$0x1]  ;;  %v1306_v1 = vld [vmem:[%s243_s25] sm:$0xff]  ;;  %s1160_s25 = smul.u32 48, %s1576_s22 }
  0x10   : > { %v268_v2 = vunpack.c.l.b16 %v262_v0  ;;  %430 = vrot.lane.b32.xlu2 %v1306_v1, %s1240_s26 }
  0x12   : > { %v1309_v3 = vpack.c.b16 %v268_v2, %v268_v2 }
  0x14   : > { %273 = vrot.lane.b32.xlu0 %v1309_v3, %s1241_s27  ;;  %387 = vrot.lane.b32.xlu1 %v1309_v3, %s1242_s28 }
  0x18   : > { %432 = vrot.lane.b32.xlu2 %v1309_v3, %s1240_s26 }
  0x1c   : > { %271 = vrot.lane.b32.xlu0 %v1306_v1, %s1241_s27 }
  0x20   : > { %426 = vrot.lane.b32.xlu2 %v1306_v1, %s1243_s29 }
  0x28   : > { %385 = vrot.lane.b32.xlu2 %v1306_v1, %s1242_s28 }
  0x30   : > { %599 = vrot.lane.b32.xlu2 %v1309_v3, %s1244_s30 }
  0x38   : > { %766 = vrot.lane.b32.xlu2 %v1309_v3, %s1245_s7 }
  0x40   : > { %428 = vrot.lane.b32.xlu2 %v1309_v3, %s1243_s29 }
  0x48   : > { %764 = vrot.lane.b32.xlu2 %v1306_v1, %s1245_s7 }
  0x50   : > { %595 = vrot.lane.b32.xlu2 %v1309_v3, %s1246_s8 }
  0x6a   : > { %v431_v4 = vpop.permute.xlu2 %430 }
  0x6b   : > { %v441_v8 = vsel %vm275_vm0, %v431_v4, 0 }
  0x72   : > { %v433_v5 = vpop.permute.xlu2 %432 }
  0x73   : > { %v444_v6 = vsel %vm275_vm0, %v433_v5, 0 }
  0x74   : > { %452 = vmatpush.bf16.xpose.msra.mxu2 %v444_v6 }
  0x7a   : > { %v427_v10 = vpop.permute.xlu2 %426 }
  0x7c   : > { %453 = vmatpush.bf16.xpose.msra.mxu2 %v441_v8 }
  0x82   : > { %v386_v13 = vpop.permute.xlu2 %385 }
  0x83   : > { %1121 = vmatmul.msk.bf16.vlgmr.msra.gmra.mxu2 %vm275_vm0, %v427_v10 }
  0x86   : > { %v274_v7 = vpop.permute.xlu0 %273  ;;  %v388_v17 = vpop.permute.xlu1 %387 }
  0x87   : > { %v286_v9 = vsel %vm275_vm0, %v274_v7, 0  ;;  %v398_v18 = vsel %vm396_vm1, %v388_v17, 0 }
  0x88   : > { %294 = vmatpush.bf16.xpose.msra.mxu0 %v286_v9  ;;  %406 = vmatpush.bf16.msra.mxu1 %v398_v18 }
  0x89   : > { %1157 = vmatpush.bf16.msra.mxu3 %v398_v18 }
  0x8a   : > { %v600_v14 = vpop.permute.xlu2 %599 }
  0x8b   : > { %v611_v45 = vsel %vm275_vm0, %v600_v14, 0 }
  0x8c   : > { %407 = vmatpush.bf16.msra.mxu1 %v386_v13 }
  0x8d   : > { %1158 = vmatpush.bf16.msra.mxu3 %v386_v13 }
  0x8e   : > { %v272_v11 = vpop.permute.xlu0 %271 }
  0x8f   : > { %v283_v12 = vsel %vm275_vm0, %v272_v11, 0 }
  0x90   : > { %295 = vmatpush.bf16.xpose.msra.mxu0 %v283_v12  ;;  %619 = vmatpush.bf16.xpose.msrb.mxu1 %v611_v45 }
  0x92   : > { %v767_v15 = vpop.permute.xlu2 %766 }
  0x93   : > { %v778_v46 = vsel %vm275_vm0, %v767_v15, 0 }
  0x97   : > { %1117 = vmatmul.msk.bf16.vlgmr.msra.gmra.mxu0 %vm275_vm0, %v1306_v1 }
  0x98   : > { %786 = vmatpush.bf16.xpose.msrb.mxu0 %v778_v46 }
  0x9a   : > { %v429_v16 = vpop.permute.xlu2 %428 }
  0x9b   : > { %1122 = vmatmul.msk.bf16.gmra.mxu2 %vm275_vm0, %v429_v16 }
  0xa2   : > { %v765_v47 = vpop.permute.xlu2 %764 }
  0xa3   : > { %v775_v61 = vsel %vm275_vm0, %v765_v47, 0 }
  0xa4   : > { %787 = vmatpush.bf16.xpose.msrb.mxu0 %v775_v61 }
  0xa7   : > { %1118 = vmatmul.msk.bf16.gmra.mxu0 %vm275_vm0, %v1309_v3 }
  0xaa   : > { %v1359_v50 = vpop.permute.xlu2 %595 }
 0x106   : > { %v455_v27 = vpop.f32.mrf.mxu2 }
 0x107   : > { %v1361_v54 = vmul.f32 0.35355338, %v455_v27 }
 0x109   : > { %v467_v55 = vsel %vm309_vm2, %v1361_v54, -inf }
 0x10e   : > { %v457_v30 = vpop.f32.mrf.mxu2 }
 0x10f   : > { %v1355_v48 = vmul.f32 0.35355338, %v457_v30 }
 0x111   : > { %v470_v49 = vsel %vm309_vm2, %v1355_v48, -inf }
 0x114   : > { %v297_v19 = vpop.f32.mrf.mxu0 }
 0x115   : > { %v306_v20 = vmul.f32 0.35355338, %v297_v19 }
 0x117   : > { %v310_v21 = vsel %vm309_vm2, %v306_v20, -inf }
 0x118   : > { %311 = vmax.xlane.f32.xlu1 %v310_v21 }
 0x11c   : > { %v299_v22 = vpop.f32.mrf.mxu0 }
 0x11d   : > { %v307_v23 = vmul.f32 0.35355338, %v299_v22 }
 0x11e   : > { %v460_v31 = vpop.f32.mrf.mxu2 }
 0x11f   : > { %v313_v24 = vsel %vm309_vm2, %v307_v23, -inf  ;;  %v466_v32 = vmul.f32 0.35355338, %v460_v31 }
 0x120   : > { %314 = vmax.xlane.f32.xlu1 %v313_v24 }
 0x121   : > { %v473_v33 = vsel %vm316_vm3, %v466_v32, -inf }
 0x124   : > { %v302_v25 = vpop.f32.mrf.mxu0 }
 0x125   : > { %v308_v28 = vmul.f32 0.35355338, %v302_v25 }
 0x126   : > { %v462_v34 = vpop.f32.mrf.mxu2 }
 0x127   : > { %v317_v29 = vsel %vm316_vm3, %v308_v28, -inf }
 0x128   : > { %318 = vmax.xlane.f32.xlu2 %v317_v29 }
 0x12c   : > { %v304_v26 = vpop.f32.mrf.mxu0 }
 0x130   : > { %474 = vmax.xlane.f32.xlu2 %v473_v33 }
 0x139   : > { %597 = vrot.lane.b32.xlu1 %v1306_v1, %s1244_s30  ;;  %s258_s30 = scalar_lea.vmem %s1568_s6, %s1160_s25 }
 0x18b   : > { %v312_v35 = vpop.xlane.xlu1 %311 }
 0x18c   : > { %v320_v36 = vsub.f32 %v306_v20, %v312_v35 }
 0x18e   : > { %v323_v37 = vmul.f32 1.442695, %v320_v36 }
 0x190   : > { %1184 = vpow2.f32 %v323_v37 }
 0x193   : > { %v315_v38 = vpop.xlane.xlu1 %314 }
 0x194   : > { %v321_v39 = vsub.f32 %v307_v23, %v315_v38 }
 0x196   : > { %v1341_v40 = vpop.eup %1184  ;;  %v325_v41 = vmul.f32 1.442695, %v321_v39 }
 0x197   : > { %v329_v42 = vsel %vm309_vm2, %v1341_v40, 0.0 }
 0x198   : > { %1186 = vpow2.f32 %v325_v41  ;;  %330 = vadd.xlane.f32.xlu0 %v329_v42 }
 0x19b   : > { %v319_v51 = vpop.xlane.xlu2 %318 }
 0x19c   : > { %v322_v52 = vsub.f32 %v308_v28, %v319_v51 }
 0x19e   : > { %v1345_v43 = vpop.eup %1186  ;;  %v327_v53 = vmul.f32 1.442695, %v322_v52 }
 0x19f   : > { %v332_v44 = vsel %vm309_vm2, %v1345_v43, 0.0 }
 0x1a0   : > { %333 = vadd.xlane.f32.xlu1 %v332_v44  ;;  %1188 = vpow2.f32 %v327_v53 }
 0x1a3   : > { %v475_v58 = vpop.xlane.xlu2 %474 }
 0x1a4   : > { %v478_v59 = vsub.f32 %v466_v32, %v475_v58 }
 0x1a6   : > { %v1365_v56 = vpop.eup %1188  ;;  %v483_v60 = vmul.f32 1.442695, %v478_v59 }
 0x1a7   : > { %v335_v57 = vsel %vm316_vm3, %v1365_v56, 0.0 }
 0x1a8   : > { %1190 = vpow2.f32 %v483_v60 }
 0x1ab   : > { %v598_v0 = vpop.permute.xlu1 %597 }
 0x1ac   : > { %760 = vrot.lane.b32.xlu0 %v1306_v1, %s1247_s9  ;;  %v608_v2 = vsel %vm275_vm0, %v598_v0, 0 }
 0x1ad   : > { %620 = vmatpush.bf16.xpose.msrb.mxu1 %v608_v2 }
 0x1ae   : > { %v1370_v62 = vpop.eup %1190 }
 0x1af   : > { %v491_v63 = vsel %vm316_vm3, %v1370_v62, 0.0 }
 0x1b9   : > { %593 = vrot.lane.b32.xlu1 %v1306_v1, %s1246_s8 }
 0x1c1   : > { %762 = vrot.lane.b32.xlu1 %v1309_v3, %s1247_s9  ;;  %s253_s9 = scalar_lea.vmem %s1567_s5, %s1300_s4 }
 0x1d6   : > { %471 = vmax.xlane.f32.xlu0 %v470_v49 }
 0x1de   : > { %336 = vadd.xlane.f32.xlu0 %v335_v57 }
 0x1e6   : > { %492 = vadd.xlane.f32.xlu0 %v491_v63 }
 0x1eb   : > { %468 = vmax.xlane.f32.xlu1 %v467_v55 }
 0x20b   : > { %v331_v4 = vpop.xlane.xlu0 %330 }
 0x20c   : > { %1192 = vrcp.f32 %v331_v4  ;;  %v349_v13 = vand.u32 2147483648, %v331_v4  ;;  %vm343_vm5 = vweird.f32 %v331_v4  ;;  %v347_v14 = vand.u32 2147483647, %v331_v4 }
 0x20e   : > { %v350_v21 = vor.u32 1.1754944e-38, %v349_v13  ;;  %vm348_vm8 = vcmp.eq.f32.partialorder %v347_v14, 8.507059e+37 }
 0x212   : > { %v1193_v5 = vpop.eup %1192 }
 0x213   : > { %v339_v6 = vmul.f32 %v1193_v5, %v331_v4  ;;  %v334_v7 = vpop.xlane.xlu1 %333  ;;  %vm344_vm4 = vweird.f32 %v1193_v5 }
 0x214   : > { %1194 = vrcp.f32 %v334_v7  ;;  %vm345_vm6 = vmor %vm343_vm5, %vm344_vm4  ;;  %v364_v16 = vand.u32 2147483648, %v334_v7  ;;  %v362_v19 = vand.u32 2147483647, %v334_v7  ;;  %vm358_vm9 = vweird.f32 %v334_v7 }
 0x215   : > { %v340_v8 = vsub.f32 1.0, %v339_v6  ;;  %vm424_vm4 = vcmask 57344  }
 0x216   : > { %v365_v23 = vor.u32 1.1754944e-38, %v364_v16  ;;  %vm363_vm11 = vcmp.eq.f32.partialorder %v362_v19, 8.507059e+37 }
 0x217   : > { %v341_v9 = vmul.f32 %v1193_v5, %v340_v8 }
 0x219   : > { %v342_v11 = vadd.f32 %v1193_v5, %v341_v9 }
 0x21a   : > { %v1195_v10 = vpop.eup %1194 }
 0x21b   : > { %v354_v12 = vmul.f32 %v1195_v10, %v334_v7  ;;  %vm359_vm7 = vweird.f32 %v1195_v10  ;;  %v346_v20 = vsel %vm345_vm6, %v1193_v5, %v342_v11 }
 0x21c   : > { %vm360_vm10 = vmor %vm358_vm9, %vm359_vm7  ;;  %v351_v24 = vsel %vm348_vm8, %v350_v21, %v346_v20 }
 0x21d   : > { %v355_v15 = vsub.f32 1.0, %v354_v12  ;;  %v352_v27 = vmul.f32 %v1341_v40, %v351_v24 }
 0x21e   : > { %v761_v17 = vpop.permute.xlu0 %760 }
 0x21f   : > { %v356_v18 = vmul.f32 %v1195_v10, %v355_v15  ;;  %1129 = vmatmul.msk.bf16.vlgmr.msrb.gmra.mxu0 %vm275_vm0, %v761_v17 }
 0x221   : > { %v357_v22 = vadd.f32 %v1195_v10, %v356_v18 }
 0x223   : > { %v361_v25 = vsel %vm360_vm10, %v1195_v10, %v357_v22 }
 0x224   : > { %v366_v26 = vsel %vm363_vm11, %v365_v23, %v361_v25 }
 0x225   : > { %v367_v28 = vmul.f32 %v1345_v43, %v366_v26 }
 0x227   : > { %v383_v29 = vpack.c.bf16 %v367_v28, %v352_v27 }
 0x229   : > { %1119 = vmatmul.msk.bf16.vlgmr.msra.gmra.mxu1 %vm309_vm2, %v383_v29 }
 0x22b   : > { %v594_v30 = vpop.permute.xlu1 %593 }
 0x233   : > { %v763_v31 = vpop.permute.xlu1 %762 }
 0x234   : > { %1130 = vmatmul.msk.bf16.gmra.mxu0 %vm275_vm0, %v763_v31 }
 0x239   : > { %1125 = vmatmul.msk.bf16.vlgmr.msrb.gmra.mxu1 %vm275_vm0, %v594_v30 }
 0x249   : > { %1126 = vmatmul.msk.bf16.gmra.mxu1 %vm275_vm0, %v1359_v50  ;;  %v472_v32 = vpop.xlane.xlu0 %471  ;;  %vm421_vm0 = vcmask 60416  }
 0x24a   : > { %v477_v52 = vsub.f32 %v1355_v48, %v472_v32 }
 0x24c   : > { %v481_v55 = vmul.f32 1.442695, %v477_v52 }
 0x251   : > { %v337_v33 = vpop.xlane.xlu0 %336 }
 0x252   : > { %1196 = vrcp.f32 %v337_v33  ;;  %v379_v36 = vand.u32 2147483648, %v337_v33  ;;  %vm373_vm12 = vweird.f32 %v337_v33  ;;  %v377_v38 = vand.u32 2147483647, %v337_v33 }
 0x254   : > { %v380_v40 = vor.u32 1.1754944e-38, %v379_v36  ;;  %vm378_vm15 = vcmp.eq.f32.partialorder %v377_v38, 8.507059e+37 }
 0x258   : > { %v1197_v34 = vpop.eup %1196 }
 0x259   : > { %v369_v35 = vmul.f32 %v1197_v34, %v337_v33  ;;  %vm374_vm13 = vweird.f32 %v1197_v34  ;;  %v493_v38 = vpop.xlane.xlu0 %492 }
 0x25a   : > { %vm375_vm14 = vmor %vm373_vm12, %vm374_vm13  ;;  %vm529_vm13 = vweird.f32 %v493_v38 }
 0x25b   : > { %v370_v37 = vsub.f32 1.0, %v369_v35 }
 0x25d   : > { %v371_v39 = vmul.f32 %v1197_v34, %v370_v37 }
 0x25e   : > { %v469_v46 = vpop.xlane.xlu1 %468 }
 0x25f   : > { %v372_v41 = vadd.f32 %v1197_v34, %v371_v39  ;;  %v476_v47 = vsub.f32 %v1361_v54, %v469_v46 }
 0x261   : > { %v376_v42 = vsel %vm375_vm14, %v1197_v34, %v372_v41  ;;  %v479_v49 = vmul.f32 1.442695, %v476_v47 }
 0x262   : > { %v381_v43 = vsel %vm378_vm15, %v380_v40, %v376_v42 }
 0x263   : > { %v382_v44 = vmul.f32 %v1365_v56, %v381_v43  ;;  %1198 = vpow2.f32 %v479_v49 }
 0x264   : > { %1200 = vpow2.f32 %v481_v55 }
 0x265   : > { %v384_v45 = vpack.c.bf16 %v382_v44, %v382_v44 }
 0x267   : > { %1120 = vmatmul.msk.bf16.vlgmr.msra.gmra.mxu3 %vm309_vm2, %v384_v45 }
 0x269   : > { %v1388_v57 = vpop.eup %1198 }
 0x26a   : > { %v485_v54 = vsel %vm309_vm2, %v1388_v57, 0.0  ;;  %v1393_v48 = vpop.eup %1200 }
 0x26b   : > { %v488_v2 = vsel %vm309_vm2, %v1393_v48, 0.0 }
 0x29c   : > { %v789_v50 = vpop.f32.mrf.mxu0 }
 0x29d   : > { %v798_v51 = vmul.f32 0.35355338, %v789_v50 }
 0x29f   : > { %v801_v53 = vsel %vm309_vm2, %v798_v51, -inf }
 0x2a0   : > { %802 = vmax.xlane.f32.xlu2 %v801_v53 }
 0x2a4   : > { %v791_v58 = vpop.f32.mrf.mxu0 }
 0x2a5   : > { %v799_v56 = vmul.f32 0.35355338, %v791_v58 }
 0x2a6   : > { %v409_v59 = vpop.f32.mrf.mxu1 }
 0x2a7   : > { %v418_v60 = vpack.c.bf16 %v409_v59, %v409_v59  ;;  %v804_v61 = vsel %vm309_vm2, %v799_v56, -inf }
 0x2a8   : > { %486 = vadd.xlane.f32.xlu2 %v485_v54  ;;  %805 = vmax.xlane.f32.xlu1 %v804_v61 }
 0x2a9   : > { %422 = vst.msk [vmem:[#allocation2] sm:$0xf] %vm421_vm0, %v418_v60 }
 0x2ae   : > { %v411_v63 = vpop.f32.mrf.mxu1 }
 0x2af   : > { %v419_v0 = vpack.c.bf16 %v411_v63, %v411_v63 }
 0x2b0   : > { %489 = vadd.xlane.f32.xlu1 %v488_v2 }
 0x2b1   : > { %423 = vst.msk [vmem:[#allocation2 + $0x4] sm:$0xf] %vm421_vm0, %v419_v0  ;;  %v794_v4 = vpop.f32.mrf.mxu0 }
 0x2b2   : > { %v1397_v5 = vmul.f32 0.35355338, %v794_v4 }
 0x2b4   : > { %v807_v6 = vsel %vm316_vm3, %v1397_v5, -inf }
 0x2b5   : > { %808 = vmax.xlane.f32.xlu2 %v807_v6 }
 0x2b6   : > { %v622_v7 = vpop.f32.mrf.mxu1 }
 0x2b7   : > { %v631_v8 = vmul.f32 0.35355338, %v622_v7 }
 0x2b9   : > { %v634_v9 = vsel %vm309_vm2, %v631_v8, -inf  ;;  %v796_v10 = vpop.f32.mrf.mxu0 }
 0x2ba   : > { %635 = vmax.xlane.f32.xlu1 %v634_v9 }
 0x2be   : > { %v624_v14 = vpop.f32.mrf.mxu1 }
 0x2bf   : > { %v1416_v28 = vmul.f32 0.35355338, %v624_v14 }
 0x2c1   : > { %v637_v32 = vsel %vm309_vm2, %v1416_v28, -inf }
 0x2c6   : > { %v627_v17 = vpop.f32.mrf.mxu1 }
 0x2c7   : > { %v1420_v35 = vmul.f32 0.35355338, %v627_v17 }
 0x2c9   : > { %v640_v40 = vsel %vm316_vm3, %v1420_v35, -inf }
 0x2cd   : > { %541 = vrot.lane.b32.xlu2 %v1306_v1, %s1248_s10 }
 0x2ce   : > { %v629_v20 = vpop.f32.mrf.mxu1 }
 0x2d3   : > { %543 = vrot.lane.b32.xlu1 %v1309_v3, %s1248_s10 }
 0x2d5   : > { %710 = vrot.lane.b32.xlu2 %v1309_v3, %s1249_s11 }
 0x2dd   : > { %708 = vrot.lane.b32.xlu2 %v1306_v1, %s1249_s11 }
 0x2e5   : > { %875 = vrot.lane.b32.xlu2 %v1306_v1, %s1250_s12 }
 0x2ea   : > { %v414_v11 = vpop.f32.mrf.mxu3 }
 0x2eb   : > { %v420_v12 = vpack.c.bf16 %v414_v11, %v414_v11  ;;  %v535_v11 = vand.u32 2147483648, %v493_v38 }
 0x2ed   : > { %425 = vst.msk [vmem:[#allocation2 + $0x8] sm:$0x1] %vm424_vm4, %v420_v12  ;;  %v536_v14 = vor.u32 1.1754944e-38, %v535_v11 }
 0x2f2   : > { %v416_v13 = vpop.f32.mrf.mxu3 }
 0x2f3   : > { %v533_v13 = vand.u32 2147483647, %v493_v38 }
 0x2f5   : > { %vm534_vm0 = vcmp.eq.f32.partialorder %v533_v13, 8.507059e+37 }
 0x313   : > { %v803_v15 = vpop.xlane.xlu2 %802 }
 0x314   : > { %v810_v16 = vsub.f32 %v798_v51, %v803_v15 }
 0x316   : > { %v813_v18 = vmul.f32 1.442695, %v810_v16 }
 0x318   : > { %1202 = vpow2.f32 %v813_v18 }
 0x31b   : > { %v806_v19 = vpop.xlane.xlu1 %805  ;;  %v487_v26 = vpop.xlane.xlu2 %486 }
 0x31c   : > { %v811_v21 = vsub.f32 %v799_v56, %v806_v19  ;;  %v505_v53 = vand.u32 2147483648, %v487_v26  ;;  %vm499_vm9 = vweird.f32 %v487_v26  ;;  %v503_v58 = vand.u32 2147483647, %v487_v26 }
 0x31e   : > { %v1408_v22 = vpop.eup %1202  ;;  %v815_v23 = vmul.f32 1.442695, %v811_v21  ;;  %v506_v54 = vor.u32 1.1754944e-38, %v505_v53  ;;  %vm504_vm12 = vcmp.eq.f32.partialorder %v503_v58, 8.507059e+37 }
 0x31f   : > { %v819_v1 = vsel %vm309_vm2, %v1408_v22, 0.0 }
 0x320   : > { %820 = vadd.xlane.f32.xlu1 %v819_v1  ;;  %1204 = vpow2.f32 %v815_v23 }
 0x323   : > { %v490_v24 = vpop.xlane.xlu1 %489 }
 0x324   : > { %1206 = vrcp.f32 %v490_v24  ;;  %v520_v49 = vand.u32 2147483648, %v490_v24  ;;  %vm514_vm7 = vweird.f32 %v490_v24  ;;  %v518_v51 = vand.u32 2147483647, %v490_v24 }
 0x325   : > { %1208 = vrcp.f32 %v487_v26 }
 0x326   : > { %v1412_v25 = vpop.eup %1204  ;;  %v521_v59 = vor.u32 1.1754944e-38, %v520_v49  ;;  %vm519_vm11 = vcmp.eq.f32.partialorder %v518_v51, 8.507059e+37 }
 0x327   : > { %v822_v27 = vsel %vm309_vm2, %v1412_v25, 0.0 }
 0x328   : > { %823 = vadd.xlane.f32.xlu0 %v822_v27  ;;  %v1426_v46 = vpop.xlane.xlu2 %808 }
 0x32a   : > { %v1207_v30 = vpop.eup %1206 }
 0x32b   : > { %v1209_v33 = vpop.eup %1208  ;;  %v510_v34 = vmul.f32 %v1207_v30, %v490_v24  ;;  %vm515_vm5 = vweird.f32 %v1207_v30 }
 0x32c   : > { %v495_v37 = vmul.f32 %v1209_v33, %v487_v26  ;;  %vm500_vm6 = vweird.f32 %v1209_v33  ;;  %vm516_vm8 = vmor %vm514_vm7, %vm515_vm5 }
 0x32d   : > { %v636_v29 = vpop.xlane.xlu1 %635  ;;  %v511_v39 = vsub.f32 1.0, %v510_v34  ;;  %vm501_vm10 = vmor %vm499_vm9, %vm500_vm6 }
 0x32e   : > { %v643_v31 = vsub.f32 %v631_v8, %v636_v29  ;;  %v496_v41 = vsub.f32 1.0, %v495_v37 }
 0x32f   : > { %v512_v42 = vmul.f32 %v1207_v30, %v511_v39 }
 0x330   : > { %638 = vmax.xlane.f32.xlu0 %v637_v32  ;;  %v646_v36 = vmul.f32 1.442695, %v643_v31  ;;  %v497_v43 = vmul.f32 %v1209_v33, %v496_v41  ;;  %v542_v6 = vpop.permute.xlu2 %541 }
 0x331   : > { %v513_v45 = vadd.f32 %v1207_v30, %v512_v42 }
 0x332   : > { %1210 = vpow2.f32 %v646_v36  ;;  %v498_v50 = vadd.f32 %v1209_v33, %v497_v43 }
 0x333   : > { %1212 = vrcp.f32 %v493_v38  ;;  %v517_v56 = vsel %vm516_vm8, %v1207_v30, %v513_v45 }
 0x334   : > { %v502_v60 = vsel %vm501_vm10, %v1209_v33, %v498_v50  ;;  %v522_v63 = vsel %vm519_vm11, %v521_v59, %v517_v56 }
 0x335   : > { %v507_v4 = vsel %vm504_vm12, %v506_v54, %v502_v60  ;;  %v523_v7 = vmul.f32 %v1393_v48, %v522_v63 }
 0x336   : > { %v508_v9 = vmul.f32 %v1388_v57, %v507_v4 }
 0x338   : > { %641 = vmax.xlane.f32.xlu0 %v640_v40  ;;  %v1424_v44 = vpop.eup %1210  ;;  %v539_v10 = vpack.c.bf16 %v523_v7, %v508_v9 }
 0x339   : > { %v1213_v47 = vpop.eup %1212  ;;  %v652_v52 = vsel %vm309_vm2, %v1424_v44, 0.0 }
 0x33a   : > { %v525_v55 = vmul.f32 %v1213_v47, %v493_v38  ;;  %vm530_vm14 = vweird.f32 %v1213_v47 }
 0x33b   : > { %vm531_vm15 = vmor %vm529_vm13, %vm530_vm14 }
 0x33c   : > { %v526_v0 = vsub.f32 1.0, %v525_v55 }
 0x33e   : > { %v527_v8 = vmul.f32 %v1213_v47, %v526_v0 }
 0x340   : > { %653 = vadd.xlane.f32.xlu0 %v652_v52  ;;  %v528_v12 = vadd.f32 %v1213_v47, %v527_v8 }
 0x342   : > { %v532_v15 = vsel %vm531_vm15, %v1213_v47, %v528_v12 }
 0x343   : > { %v537_v16 = vsel %vm534_vm0, %v536_v14, %v532_v15 }
 0x344   : > { %v538_v17 = vmul.f32 %v1370_v62, %v537_v16 }
 0x345   : > { %v544_v61 = vpop.permute.xlu1 %543 }
 0x346   : > { %v553_v2 = vsel %vm396_vm1, %v544_v61, 0  ;;  %v540_v48 = vpack.c.bf16 %v538_v17, %v538_v17 }
 0x347   : > { %561 = vmatpush.bf16.msrb.mxu3 %v553_v2 }
 0x34b   : > { %562 = vmatpush.bf16.msrb.mxu3 %v542_v6 }
 0x34e   : > { %1123 = vmatmul.msk.bf16.vlgmr.msrb.gmra.mxu3 %vm309_vm2, %v539_v10 }
 0x35e   : > { %1124 = vmatmul.msk.bf16.gmra.mxu3 %vm309_vm2, %v540_v48 }
 0x393   : > { %v1461_v41 = vpop.xlane.xlu1 %820 }
 0x394   : > { %vm833_vm4 = vweird.f32 %v1461_v41  ;;  %v837_v48 = vand.u32 2147483647, %v1461_v41 }
 0x39b   : > { %v1436_v57 = vpop.xlane.xlu0 %823 }
 0x39c   : > { %vm848_vm10 = vweird.f32 %v1436_v57  ;;  %v852_v11 = vand.u32 2147483647, %v1436_v57  ;;  %v854_v12 = vand.u32 2147483648, %v1436_v57 }
 0x3a3   : > { %v639_v18 = vpop.xlane.xlu0 %638 }
 0x3a4   : > { %v644_v19 = vsub.f32 %v1416_v28, %v639_v18  ;;  %v711_v28 = vpop.permute.xlu2 %710  ;;  %v839_v18 = vand.u32 2147483648, %v1461_v41 }
 0x3a5   : > { %v720_v29 = vsel %vm396_vm1, %v711_v28, 0 }
 0x3a6   : > { %v648_v20 = vmul.f32 1.442695, %v644_v19  ;;  %728 = vmatpush.bf16.msra.mxu3 %v720_v29 }
 0x3a8   : > { %1214 = vpow2.f32 %v648_v20 }
 0x3ab   : > { %v642_v21 = vpop.xlane.xlu0 %641 }
 0x3ac   : > { %v645_v23 = vsub.f32 %v1420_v35, %v642_v21  ;;  %v709_v32 = vpop.permute.xlu2 %708  ;;  %v812_v35 = vsub.f32 %v1397_v5, %v1426_v46 }
 0x3ad   : > { %729 = vmatpush.bf16.msra.mxu3 %v709_v32  ;;  %v840_v32 = vor.u32 1.1754944e-38, %v839_v18  ;;  %v1151_v18 = vld [vmem:[%s1564_s2] sm:$0xff] }
 0x3ae   : > { %v1440_v1 = vpop.eup %1214  ;;  %v650_v24 = vmul.f32 1.442695, %v645_v23  ;;  %v817_v36 = vmul.f32 1.442695, %v812_v35 }
 0x3af   : > { %v655_v26 = vsel %vm309_vm2, %v1440_v1, 0.0 }
 0x3b0   : > { %1216 = vpow2.f32 %v650_v24  ;;  %656 = vadd.xlane.f32.xlu0 %v655_v26  ;;  %v855_v26 = vor.u32 1.1754944e-38, %v854_v12 }
 0x3b1   : > { %1218 = vpow2.f32 %v817_v36 }
 0x3b3   : > { %v654_v40 = vpop.xlane.xlu0 %653 }
 0x3b4   : > { %1220 = vrcp.f32 %v654_v40  ;;  %v1471_v49 = vpop.permute.xlu2 %875  ;;  %v672_v61 = vand.u32 2147483648, %v654_v40  ;;  %vm666_vm5 = vweird.f32 %v654_v40  ;;  %v670_v0 = vand.u32 2147483647, %v654_v40 }
 0x3b5   : > { %1222 = vrcp.f32 %v1436_v57 }
 0x3b6   : > { %v1444_v62 = vpop.eup %1216  ;;  %1224 = vrcp.f32 %v1461_v41  ;;  %v673_v13 = vor.u32 1.1754944e-38, %v672_v61  ;;  %vm671_vm12 = vcmp.eq.f32.partialorder %v670_v0, 8.507059e+37 }
 0x3b7   : > { %v658_v27 = vsel %vm316_vm3, %v1444_v62, 0.0  ;;  %v1457_v38 = vpop.eup %1218 }
 0x3b8   : > { %659 = vadd.xlane.f32.xlu2 %v658_v27  ;;  %v825_v39 = vsel %vm316_vm3, %v1457_v38, 0.0 }
 0x3ba   : > { %v1221_v42 = vpop.eup %1220 }
 0x3bb   : > { %v1465_v5 = vpop.eup %1222  ;;  %v662_v43 = vmul.f32 %v1221_v42, %v654_v40  ;;  %vm667_vm3 = vweird.f32 %v1221_v42 }
 0x3bc   : > { %v1467_v45 = vpop.eup %1224  ;;  %v844_v46 = vmul.f32 %v1465_v5, %v1436_v57  ;;  %vm849_vm7 = vweird.f32 %v1465_v5  ;;  %vm1484_vm8 = vmor %vm666_vm5, %vm667_vm3  ;;  %vm853_vm3 = vcmp.eq.f32.partialorder %v852_v11, 8.507059e+37  ;;  %vm838_vm5 = vcmp.eq.f32.partialorder %v837_v48, 8.507059e+37  ;;  %v1152_v48 = vld [vmem:[%s1564_s2 + $0x8] sm:$0xff] }
 0x3bd   : > { %v663_v47 = vsub.f32 1.0, %v662_v43  ;;  %v829_v51 = vmul.f32 %v1467_v45, %v1461_v41  ;;  %vm834_vm6 = vweird.f32 %v1467_v45  ;;  %vm1494_vm11 = vmor %vm848_vm10, %vm849_vm7  ;;  %971 = vmatpush.bf16.msra.mxu1 %v1152_v48 }
 0x3be   : > { %v845_v52 = vsub.f32 1.0, %v844_v46  ;;  %vm1509_vm0 = vmor %vm833_vm4, %vm834_vm6 }
 0x3bf   : > { %v664_v53 = vmul.f32 %v1221_v42, %v663_v47  ;;  %v830_v55 = vsub.f32 1.0, %v829_v51 }
 0x3c0   : > { %v846_v56 = vmul.f32 %v1465_v5, %v845_v52 }
 0x3c1   : > { %v665_v59 = vadd.f32 %v1221_v42, %v664_v53  ;;  %v831_v63 = vmul.f32 %v1467_v45, %v830_v55  ;;  %972 = vmatpush.bf16.msra.mxu1 %v1151_v18 }
 0x3c2   : > { %v847_v4 = vadd.f32 %v1465_v5, %v846_v56 }
 0x3c3   : > { %v669_v8 = vsel %vm1484_vm8, %v1221_v42, %v665_v59  ;;  %v832_v14 = vadd.f32 %v1467_v45, %v831_v63  ;;  %vm588_vm8 = vcmask 126016  }
 0x3c4   : > { %877 = vrot.lane.b32.xlu0 %v1309_v3, %s1250_s12  ;;  %v674_v19 = vsel %vm671_vm12, %v673_v13, %v669_v8  ;;  %v851_v57 = vsel %vm1494_vm11, %v1465_v5, %v847_v4 }
 0x3c5   : > { %v836_v28 = vsel %vm1509_vm0, %v1467_v45, %v832_v14  ;;  %v675_v29 = vmul.f32 %v1424_v44, %v674_v19  ;;  %vm758_vm0 = vcmask 188544  }
 0x3d1   : > { %v564_v30 = vpop.f32.mrf.mxu3 }
 0x3d2   : > { %v573_v31 = vpack.c.bf16 %v564_v30, %v564_v30 }
 0x3d4   : > { %579 = vrot.lane.b32.xlu1 %v573_v31, %s1251_s13 }
 0x3d9   : > { %v566_v33 = vpop.f32.mrf.mxu3 }
 0x3da   : > { %v574_v34 = vpack.c.bf16 %v566_v33, %v566_v33 }
 0x3dc   : > { %581 = vrot.lane.b32.xlu1 %v574_v34, %s1251_s13  ;;  %v856_v34 = vsel %vm853_vm3, %v855_v26, %v851_v57  ;;  %vm925_vm3 = vcmask 254144  }
 0x3dd   : > { %v857_v40 = vmul.f32 %v1412_v25, %v856_v34 }
 0x3e1   : > { %v1455_v3 = vpop.f32.mrf.mxu3 }
 0x3e9   : > { %v571_v37 = vpop.f32.mrf.mxu3 }
 0x3ee   : > { %826 = vadd.xlane.f32.xlu0 %v825_v39  ;;  %v841_v39 = vsel %vm838_vm5, %v840_v32, %v836_v28  ;;  %vm999_vm5 = vcmask 257024  }
 0x423   : > { %v657_v50 = vpop.xlane.xlu0 %656 }
 0x424   : > { %1226 = vrcp.f32 %v657_v50  ;;  %v687_v7 = vand.u32 2147483648, %v657_v50  ;;  %v685_v10 = vand.u32 2147483647, %v657_v50  ;;  %vm681_vm13 = vweird.f32 %v657_v50 }
 0x426   : > { %v688_v20 = vor.u32 1.1754944e-38, %v687_v7  ;;  %vm686_vm15 = vcmp.eq.f32.partialorder %v685_v10, 8.507059e+37 }
 0x42a   : > { %v1227_v58 = vpop.eup %1226 }
 0x42b   : > { %v677_v60 = vmul.f32 %v1227_v58, %v657_v50  ;;  %v1476_v54 = vpop.xlane.xlu2 %659  ;;  %vm682_vm9 = vweird.f32 %v1227_v58 }
 0x42c   : > { %1228 = vrcp.f32 %v1476_v54  ;;  %vm683_vm14 = vmor %vm681_vm13, %vm682_vm9  ;;  %v702_v44 = vand.u32 2147483648, %v1476_v54  ;;  %vm696_vm6 = vweird.f32 %v1476_v54  ;;  %v700_v42 = vand.u32 2147483647, %v1476_v54 }
 0x42d   : > { %v678_v2 = vsub.f32 1.0, %v677_v60  ;;  %vm922_vm13 = vcmask 257216  }
 0x42e   : > { %v703_v45 = vor.u32 1.1754944e-38, %v702_v44  ;;  %v989_v44 = vld [vmem:[%s248_s24 + $0x8] sm:$0x1] }
 0x42f   : > { %v679_v9 = vmul.f32 %v1227_v58, %v678_v2 }
 0x431   : > { %v680_v16 = vadd.f32 %v1227_v58, %v679_v9 }
 0x432   : > { %v1229_v17 = vpop.eup %1228 }
 0x433   : > { %v684_v21 = vsel %vm683_vm14, %v1227_v58, %v680_v16  ;;  %v692_v23 = vmul.f32 %v1229_v17, %v1476_v54  ;;  %vm697_vm4 = vweird.f32 %v1229_v17  ;;  %vm591_vm14 = vcmask 122944  }
 0x434   : > { %v689_v27 = vsel %vm686_vm15, %v688_v20, %v684_v21  ;;  %vm698_vm7 = vmor %vm696_vm6, %vm697_vm4  ;;  %vm958_vm15 = vcmask 261120   ;;  %vm985_vm4 = vcmask 254976   ;;  %vm1002_vm6 = vcmask 253952  }
 0x435   : > { %v690_v30 = vmul.f32 %v1440_v1, %v689_v27  ;;  %v693_v31 = vsub.f32 1.0, %v692_v23  ;;  %v842_v1 = vmul.f32 %v1408_v22, %v841_v39 }
 0x436   : > { %v878_v33 = vpop.permute.xlu0 %877 }
 0x437   : > { %v694_v35 = vmul.f32 %v1229_v17, %v693_v31  ;;  %v887_v36 = vsel %vm396_vm1, %v878_v33, 0  ;;  %v706_v37 = vpack.c.bf16 %v690_v30, %v675_v29  ;;  %v873_v5 = vpack.c.bf16 %v857_v40, %v842_v1  ;;  %v1154_v29 = vld [vmem:[%s248_s24] sm:$0xff]  }
 0x438   : > { %895 = vmatpush.bf16.msrb.mxu2 %v887_v36  ;;  %vm701_vm1 = vcmp.eq.f32.partialorder %v700_v42, 8.507059e+37  ;;  %v1183_v30 = vld [vmem:[%s1565_s3] ss:$0 sm:$0xff]  ;;  %v1155_v31 = vunpack.c.l.bf16 %v1154_v29  ;;  %v1156_v36 = vunpack.c.h.bf16 %v1154_v29  ;;  %v992_v1 = vunpack.c.l.bf16 %v989_v44 }
 0x439   : > { %1127 = vmatmul.msk.bf16.vlgmr.msra.gmra.mxu3 %vm309_vm2, %v706_v37  ;;  %v695_v41 = vadd.f32 %v1229_v17, %v694_v35 }
 0x43b   : > { %v699_v43 = vsel %vm698_vm7, %v1229_v17, %v695_v41 }
 0x43c   : > { %896 = vmatpush.bf16.msrb.mxu2 %v1471_v49  ;;  %v704_v46 = vsel %vm701_vm1, %v703_v45, %v699_v43 }
 0x43d   : > { %v705_v25 = vmul.f32 %v1444_v62, %v704_v46 }
 0x43f   : > { %1131 = vmatmul.msk.bf16.vlgmr.msrb.gmra.mxu2 %vm309_vm2, %v873_v5  ;;  %v707_v50 = vpack.c.bf16 %v705_v25, %v705_v25 }
 0x446   : > { %v580_v47 = vpop.permute.xlu1 %579 }
 0x447   : > { %589 = vst.msk [vmem:[#allocation2] sm:$0xf] %vm588_vm8, %v580_v47 }
 0x449   : > { %1128 = vmatmul.msk.bf16.gmra.mxu3 %vm309_vm2, %v707_v50 }
 0x44e   : > { %v582_v22 = vpop.permute.xlu1 %581 }
 0x44f   : > { %590 = vst.msk [vmem:[#allocation2 + $0x4] sm:$0xf] %vm588_vm8, %v582_v22 }
 0x461   : > { %v827_v51 = vpop.xlane.xlu0 %826 }
 0x462   : > { %1230 = vrcp.f32 %v827_v51  ;;  %v869_v55 = vand.u32 2147483648, %v827_v51  ;;  %v867_v56 = vand.u32 2147483647, %v827_v51  ;;  %vm863_vm10 = vweird.f32 %v827_v51 }
 0x464   : > { %v870_v62 = vor.u32 1.1754944e-38, %v869_v55  ;;  %vm868_vm12 = vcmp.eq.f32.partialorder %v867_v56, 8.507059e+37 }
 0x468   : > { %v1231_v49 = vpop.eup %1230 }
 0x469   : > { %v859_v52 = vmul.f32 %v1231_v49, %v827_v51  ;;  %vm864_vm9 = vweird.f32 %v1231_v49 }
 0x46a   : > { %vm865_vm11 = vmor %vm863_vm10, %vm864_vm9 }
 0x46b   : > { %v860_v53 = vsub.f32 1.0, %v859_v52 }
 0x46d   : > { %v861_v58 = vmul.f32 %v1231_v49, %v860_v53 }
 0x46f   : > { %v862_v59 = vadd.f32 %v1231_v49, %v861_v58 }
 0x471   : > { %v866_v60 = vsel %vm865_vm11, %v1231_v49, %v862_v59 }
 0x472   : > { %v871_v54 = vsel %vm868_vm12, %v870_v62, %v866_v60 }
 0x473   : > { %v872_v61 = vmul.f32 %v1457_v38, %v871_v54  ;;  %v575_v38 = vpack.c.bf16 %v1455_v3, %v1455_v3 }
 0x475   : > { %v874_v63 = vpack.c.bf16 %v872_v61, %v872_v61 }
 0x477   : > { %1132 = vmatmul.msk.bf16.gmra.mxu2 %vm309_vm2, %v874_v63  ;;  %vm755_vm2 = vcmask 191616  }
 0x4bc   : > { %v731_v0 = vpop.f32.mrf.mxu3 }
 0x4bd   : > { %v740_v2 = vpack.c.bf16 %v731_v0, %v731_v0 }
 0x4bf   : > { %746 = vrot.lane.b32.xlu2 %v740_v2, %s1252_s14 }
 0x4c2   : > { %v898_v4 = vpop.f32.mrf.mxu2 }
 0x4c3   : > { %v907_v6 = vpack.c.bf16 %v898_v4, %v898_v4 }
 0x4c4   : > { %v733_v7 = vpop.f32.mrf.mxu3 }
 0x4c5   : > { %v741_v8 = vpack.c.bf16 %v733_v7, %v733_v7  ;;  %913 = vrot.lane.b32.xlu1 %v907_v6, %s1253_s15 }
 0x4c7   : > { %748 = vrot.lane.b32.xlu0 %v741_v8, %s1252_s14 }
 0x4ca   : > { %v900_v9 = vpop.f32.mrf.mxu2 }
 0x4cb   : > { %v908_v10 = vpack.c.bf16 %v900_v9, %v900_v9 }
 0x4cc   : > { %v736_v11 = vpop.f32.mrf.mxu3 }
 0x4cd   : > { %v742_v12 = vpack.c.bf16 %v736_v11, %v736_v11  ;;  %915 = vrot.lane.b32.xlu1 %v908_v10, %s1253_s15 }
 0x4cf   : > { %750 = vrot.lane.b32.xlu0 %v742_v12, %s1252_s14 }
 0x4d4   : > { %v738_v13 = vpop.f32.mrf.mxu3 }
 0x4d5   : > { %583 = vrot.lane.b32.xlu1 %v575_v38, %s1251_s13 }
 0x4fa   : > { %v903_v14 = vpop.f32.mrf.mxu2 }
 0x4fb   : > { %v909_v15 = vpack.c.bf16 %v903_v14, %v903_v14 }
 0x4fd   : > { %917 = vrot.lane.b32.xlu2 %v909_v15, %s1253_s15 }
 0x502   : > { %v905_v16 = vpop.f32.mrf.mxu2 }
 0x519   : > { %v747_v17 = vpop.permute.xlu2 %746 }
 0x51a   : > { %756 = vst.msk [vmem:[#allocation2] sm:$0xf] %vm755_vm2, %v747_v17 }
 0x537   : > { %v914_v3 = vpop.permute.xlu1 %913 }
 0x538   : > { %923 = vst.msk [vmem:[#allocation2] sm:$0xf] %vm922_vm13, %v914_v3 }
 0x539   : > { %v749_v19 = vpop.permute.xlu0 %748 }
 0x53a   : > { %757 = vst.msk [vmem:[#allocation2 + $0x4] sm:$0xf] %vm755_vm2, %v749_v19 }
 0x53f   : > { %v916_v20 = vpop.permute.xlu1 %915 }
 0x540   : > { %924 = vst.msk [vmem:[#allocation2 + $0x4] sm:$0xf] %vm922_vm13, %v916_v20 }
 0x541   : > { %v751_v23 = vpop.permute.xlu0 %750 }
 0x547   : > { %v584_v57 = vpop.permute.xlu1 %583  ;;  %v1150_v21 = vld [vmem:[#allocation2] sm:$0xff] }
 0x548   : > { %592 = vst.msk [vmem:[#allocation2 + $0x8] sm:$0x1] %vm591_vm14, %v584_v57  ;;  %1145 = vmatmul.msk.bf16.vlgmr.msra.gmra.mxu1 %vm958_vm15, %v1150_v21 }
 0x549   : > { %759 = vst.msk [vmem:[#allocation2 + $0x8] sm:$0x1] %vm758_vm0, %v751_v23 }
 0x557   : > { %v918_v24 = vpop.permute.xlu2 %917 }
 0x558   : > { %926 = vst.msk [vmem:[#allocation2 + $0x8] sm:$0x1] %vm925_vm3, %v918_v24 }
 0x55f   : > { %v929_v26 = vld [vmem:[#allocation2 + $0x8] sm:$0x1] }
 0x560   : > { %v943_v27 = vunpack.c.l.b16 %v929_v26 }
 0x562   : > { %v945_v28 = vpack.c.b16 %v943_v27, %v943_v27 }
 0x564   : > { %1146 = vmatmul.msk.bf16.gmra.mxu1 %vm958_vm15, %v945_v28 }
 0x5c5   : > { %v974_v32 = vpop.f32.mrf.mxu1 }
 0x5c6   : > { %v975_v33 = vadd.f32 %v1183_v30, %v974_v32 }
 0x5c8   : > { %983 = vst.msk [vmem:[%s258_s30] sm:$0xff] %vm958_vm15, %v975_v33  ;;  %v993_v34 = vadd.f32 %v1155_v31, %v975_v33 }
 0x5ca   : > { %v996_v35 = vpack.c.bf16 %v993_v34, %v993_v34 }
 0x5cc   : > { %1000 = vst.msk [vmem:[%s253_s9] sm:$0xf] %vm999_vm5, %v996_v35 }
 0x5cd   : > { %v976_v37 = vpop.f32.mrf.mxu1 }
 0x5ce   : > { %v977_v39 = vadd.f32 %v1183_v30, %v976_v37 }
 0x5d0   : > { %984 = vst.msk [vmem:[%s258_s30 + $0x8] sm:$0xff] %vm958_vm15, %v977_v39  ;;  %v994_v40 = vadd.f32 %v1156_v36, %v977_v39 }
 0x5d2   : > { %v997_v41 = vpack.c.bf16 %v994_v40, %v994_v40 }
 0x5d4   : > { %1001 = vst.msk [vmem:[%s253_s9 + $0x4] sm:$0xf] %vm999_vm5, %v997_v41 }
 0x5e1   : > { %v979_v42 = vpop.f32.mrf.mxu1 }
 0x5e2   : > { %v980_v5 = vadd.f32 %v1183_v30, %v979_v42 }
 0x5e4   : > { %986 = vst.msk [vmem:[%s258_s30 + $0x10] sm:$0x3] %vm985_vm4, %v980_v5  ;;  %v995_v43 = vadd.f32 %v992_v1, %v980_v5 }
 0x5e6   : > { %v998_v45 = vpack.c.bf16 %v995_v43, %v995_v43 }
 0x5e8   : > { %1003 = vst.msk [vmem:[%s253_s9 + $0x8] sm:$0x1] %vm1002_vm6, %v998_v45 }
 0x5e9   : > { %v981_v46 = vpop.f32.mrf.mxu1 }
 0x5ea PF: > { %s17_s21 = sadd.s32 1, %s1238_s21  }
 0x5eb   : > { %p14_p4 = scmp.ge.s32.totalorder %s17_s21, 4  }
 0x5ed   :  { %16 = sbr.rel (!%p14_p4) target bundleno = 1 (0x1), region = 81 }

// kernel: recorder_forward.15
= control target key start
LH: loop header
LB: loop body
LE: loop exit
PB: predicated region body
PF: predicated region fallthrough
CT: control target
= control target key end

     0   :  { %vm72_vm0 = vcmask 523264   ;;  %vm125_vm1 = vcmask 257024   ;;  %vm130_vm2 = vcmask 254976   ;;  %s264_s1 = inlined_call_operand.vmem [shape: bf16[64,32], index: 1, kind: input, shape index: {}]   ;;  %s265_s2 = inlined_call_operand.vmem [shape: f32[1,32], index: 2, kind: input, shape index: {}]   ;;  %s266_s0 = inlined_call_operand.vmem [shape: bf16[36,64], index: 0, kind: input, shape index: {}]   ;;  %s267_s3 = inlined_call_operand.vmem [shape: bf16[36,32], index: 3, kind: input, shape index: {}]   ;;  %s268_s4 = inlined_call_operand.vmem [shape: bf16[36,32], index: 4, kind: output, shape index: {}]  }
   0x1   :  { %v168_v0 = vld [vmem:[%s264_s1 + $0x18] sm:$0xff]  ;;  %v167_v1 = vld [vmem:[%s264_s1 + $0x10] sm:$0xff]  ;;  %v166_v2 = vld [vmem:[%s264_s1 + $0x8] sm:$0xff] }
   0x2   :  { %86 = vmatpush.bf16.msra.mxu0 %v168_v0  ;;  %178 = vmatpush.bf16.msra.mxu1 %v168_v0  ;;  %v22_v3 = vld [vmem:[%s266_s0 + $0x10] sm:$0x3]  ;;  %v165_v4 = vld [vmem:[%s264_s1] sm:$0xff]  ;;  %v164_v7 = vld [vmem:[%s266_s0 + $0x8] sm:$0xff] }
   0x3   :  { %179 = vmatpush.bf16.msra.mxu2 %v168_v0  ;;  %v44_v5 = vunpack.c.l.b16 %v22_v3  ;;  %v163_v6 = vld [vmem:[%s266_s0] sm:$0xff]  ;;  %v177_v10 = vld [vmem:[%s267_s3 + $0x8] sm:$0xff]   ;;  %v109_v20 = vld [vmem:[%s267_s3 + $0x10] sm:$0x3] }
   0x4   :  { %v170_v9 = vld [vmem:[%s267_s3] sm:$0xff]   ;;  %v175_v13 = vunpack.c.l.bf16 %v177_v10  ;;  %v114_v23 = vunpack.c.l.bf16 %v109_v20  ;;  %v176_v26 = vunpack.c.h.bf16 %v177_v10 }
   0x5   :  { %v47_v8 = vpack.c.b16 %v44_v5, %v44_v5  ;;  %v186_v11 = vld [vmem:[%s265_s2] ss:$0 sm:$0xff]  ;;  %v171_v12 = vunpack.c.l.bf16 %v170_v9  ;;  %v172_v25 = vunpack.c.h.bf16 %v170_v9 }
   0x6   :  { %87 = vmatpush.bf16.msra.mxu0 %v167_v1  ;;  %180 = vmatpush.bf16.msra.mxu1 %v167_v1 }
   0x7   :  { %181 = vmatpush.bf16.msra.mxu2 %v167_v1 }
   0xa   :  { %88 = vmatpush.bf16.msra.mxu0 %v166_v2  ;;  %182 = vmatpush.bf16.msra.mxu1 %v166_v2 }
   0xb   :  { %183 = vmatpush.bf16.msra.mxu2 %v166_v2 }
   0xe   :  { %89 = vmatpush.bf16.msra.mxu0 %v165_v4  ;;  %184 = vmatpush.bf16.msra.mxu1 %v165_v4 }
   0xf   :  { %185 = vmatpush.bf16.msra.mxu2 %v165_v4 }
  0x11   :  { %160 = vmatmul.msk.bf16.vlgmr.msra.gmra.mxu0 %vm72_vm0, %v163_v6  ;;  %161 = vmatmul.msk.bf16.vlgmr.msra.gmra.mxu1 %vm72_vm0, %v164_v7 }
  0x12   :  { %162 = vmatmul.msk.bf16.vlgmr.msra.gmra.mxu2 %vm72_vm0, %v47_v8 }
  0x8e   :  { %v91_v14 = vpop.f32.mrf.mxu0  ;;  %v96_v15 = vpop.f32.mrf.mxu1 }
  0x8f   :  { %v92_v16 = vadd.f32 %v186_v11, %v91_v14  ;;  %v97_v17 = vadd.f32 %v186_v11, %v96_v15 }
  0x91   :  { %v115_v18 = vadd.f32 %v171_v12, %v92_v16  ;;  %v117_v19 = vadd.f32 %v175_v13, %v97_v17 }
  0x93   :  { %v120_v21 = vpack.c.bf16 %v115_v18, %v115_v18  ;;  %v122_v22 = vpack.c.bf16 %v117_v19, %v117_v19 }
  0x95   :  { %126 = vst.msk [vmem:[%s268_s4] sm:$0xf] %vm125_vm1, %v120_v21  ;;  %v101_v24 = vpop.f32.mrf.mxu2 }
  0x96   :  { %128 = vst.msk [vmem:[%s268_s4 + $0x8] sm:$0xf] %vm125_vm1, %v122_v22  ;;  %v102_v27 = vadd.f32 %v186_v11, %v101_v24  ;;  %v93_v28 = vpop.f32.mrf.mxu0  ;;  %v98_v29 = vpop.f32.mrf.mxu1 }
  0x97   :  { %v94_v30 = vadd.f32 %v186_v11, %v93_v28  ;;  %v99_v31 = vadd.f32 %v186_v11, %v98_v29 }
  0x98   :  { %v119_v32 = vadd.f32 %v114_v23, %v102_v27 }
  0x99   :  { %v116_v33 = vadd.f32 %v172_v25, %v94_v30  ;;  %v118_v34 = vadd.f32 %v176_v26, %v99_v31 }
  0x9a   :  { %v124_v35 = vpack.c.bf16 %v119_v32, %v119_v32 }
  0x9b   :  { %v121_v36 = vpack.c.bf16 %v116_v33, %v116_v33  ;;  %v123_v37 = vpack.c.bf16 %v118_v34, %v118_v34 }
  0x9c   :  { %131 = vst.msk [vmem:[%s268_s4 + $0x10] sm:$0x3] %vm130_vm2, %v124_v35 }
  0x9d   :  { %127 = vst.msk [vmem:[%s268_s4 + $0x4] sm:$0xf] %vm125_vm1, %v121_v36  ;;  %v103_v38 = vpop.f32.mrf.mxu2 }
  0x9e   :  { %129 = vst.msk [vmem:[%s268_s4 + $0xc] sm:$0xf] %vm125_vm1, %v123_v37 }

// kernel: recorder_forward.21
= control target key start
LH: loop header
LB: loop body
LE: loop exit
PB: predicated region body
PF: predicated region fallthrough
CT: control target
= control target key end

     0   :  { %vm27_vm0 = vcmask 254976   ;;  %v133_v3 = vmov 32.0   ;;  %vm68_vm5 = vcmask 253952   ;;  %vm91_vm6 = vcmask 261120   ;;  %s187_s0 = inlined_call_operand.vmem [shape: bf16[2,32], index: 0, kind: input, shape index: {}]   ;;  %s188_s3 = inlined_call_operand.vmem [shape: f32[1,32], index: 3, kind: input, shape index: {}]   ;;  %s189_s4 = inlined_call_operand.vmem [shape: f32[1,32], index: 4, kind: input, shape index: {}]   ;;  %s190_s2 = inlined_call_operand.vmem [shape: f32[1,10], index: 2, kind: input, shape index: {}]   ;;  %s191_s1 = inlined_call_operand.vmem [shape: bf16[32,10], index: 1, kind: input, shape index: {}]   ;;  %s192_s5 = inlined_call_operand.vmem [shape: f32[2,10], index: 5, kind: output, shape index: {}]  }
   0x1   :  { %v25_v0 = vld [vmem:[%s187_s0] sm:$0x1]  ;;  %129 = vrcp.f32 %v133_v3  ;;  %v124_v15 = vld [vmem:[%s191_s1 + $0x8] sm:$0xff]  ;;  %vm108_vm7 = vcmask 74752  }
   0x2   :  { %v26_v1 = vunpack.c.l.bf16 %v25_v0  ;;  %101 = vmatpush.bf16.msra.mxu0 %v124_v15  ;;  %v123_v17 = vld [vmem:[%s191_s1] sm:$0xff] }
   0x3   :  { %v126_v26 = vld [vmem:[%s188_s3] ss:$0 sm:$0xff] }
   0x4   :  { %v28_v2 = vsel %vm27_vm0, %v26_v1, 0.0  ;;  %v127_v28 = vld [vmem:[%s189_s4] ss:$0 sm:$0xff] }
   0x5   :  { %29 = vadd.xlane.f32.xlu0 %v28_v2  ;;  %v128_v34 = vld [vmem:[%s190_s2] ss:$0 sm:$0xff] }
   0x6   :  { %102 = vmatpush.bf16.msra.mxu0 %v123_v17 }
   0x7   :  { %v130_v4 = vpop.eup %129 }
   0x8   :  { %v32_v5 = vmul.f32 32.0, %v130_v4  ;;  %vm36_vm1 = vweird.f32 %v130_v4 }
   0xa   :  { %v33_v6 = vsub.f32 1.0, %v32_v5 }
   0xc   :  { %v34_v7 = vmul.f32 %v130_v4, %v33_v6 }
   0xe   :  { %v35_v8 = vadd.f32 %v130_v4, %v34_v7 }
  0x10   :  { %v37_v9 = vsel %vm36_vm1, %v130_v4, %v35_v8 }
  0x78   :  { %v30_v10 = vpop.xlane.xlu0 %29 }
  0x79   :  { %v38_v11 = vmul.f32 %v37_v9, %v30_v10 }
  0x7b   :  { %v39_v12 = vsub.f32 %v26_v1, %v38_v11 }
  0x7d   :  { %v40_v13 = vmul.f32 %v39_v12, %v39_v12 }
  0x7f   :  { %v41_v14 = vsel %vm27_vm0, %v40_v13, 0.0 }
  0x80   :  { %42 = vadd.xlane.f32.xlu0 %v41_v14 }
  0xf3   :  { %v43_v16 = vpop.xlane.xlu0 %42 }
  0xf4   :  { %v44_v18 = vmul.f32 %v43_v16, %v37_v9 }
  0xf6   :  { %v45_v19 = vadd.f32 1e-06, %v44_v18 }
  0xf8   :  { %131 = vrsqrt.f32 %v45_v19  ;;  %vm52_vm3 = vweird.f32 %v45_v19 }
  0xfe   :  { %v132_v20 = vpop.eup %131 }
  0xff   :  { %v47_v21 = vmul.f32 %v132_v20, %v45_v19  ;;  %vm53_vm2 = vweird.f32 %v132_v20 }
 0x100   :  { %vm54_vm4 = vmor %vm52_vm3, %vm53_vm2 }
 0x101   :  { %v48_v22 = vmul.f32 %v132_v20, %v47_v21 }
 0x103   :  { %v49_v23 = vmul.f32 0.5, %v48_v22 }
 0x105   :  { %v50_v24 = vsub.f32 1.5, %v49_v23 }
 0x107   :  { %v51_v25 = vmul.f32 %v132_v20, %v50_v24 }
 0x109   :  { %v55_v27 = vsel %vm54_vm4, %v132_v20, %v51_v25 }
 0x10a   :  { %v56_v29 = vmul.f32 %v55_v27, %v39_v12 }
 0x10c   :  { %v61_v30 = vmul.f32 %v126_v26, %v56_v29 }
 0x10e   :  { %v66_v31 = vadd.f32 %v127_v28, %v61_v30 }
 0x110   :  { %v67_v32 = vpack.c.bf16 %v66_v31, %v66_v31 }
 0x112   :  { %69 = vst.msk [vmem:[#allocation2] sm:$0x1] %vm68_vm5, %v67_v32 }
 0x119   :  { %v70_v33 = vld [vmem:[#allocation2] sm:$0x1] }
 0x11a   :  { %122 = vmatmul.msk.bf16.vlgmr.msra.gmra.mxu0 %vm91_vm6, %v70_v33 }
 0x197   :  { %v104_v35 = vpop.f32.mrf.mxu0 }
 0x198   :  { %v105_v36 = vadd.f32 %v128_v34, %v104_v35 }
 0x19a   :  { %109 = vst.msk [vmem:[%s192_s5] sm:$0x3] %vm108_vm7, %v105_v36 }
 0x19f   :  { %v106_v37 = vpop.f32.mrf.mxu0 }

// kernel: recorder_forward.17
= control target key start
LH: loop header
LB: loop body
LE: loop exit
PB: predicated region body
PF: predicated region fallthrough
CT: control target
= control target key end

     0   :  { %s1303_s21 = smov 0   ;;  %s1576_s0 = inlined_call_operand.vmem [shape: bf16[2,18,96], index: 0, kind: input, shape index: {}]   ;;  %s1577_s1 = inlined_call_operand.vmem [shape: bf16[2,18,32], index: 1, kind: input, shape index: {}]   ;;  %s1578_s2 = inlined_call_operand.vmem [shape: bf16[32,32], index: 2, kind: input, shape index: {}]   ;;  %s1579_s3 = inlined_call_operand.vmem [shape: f32[1,32], index: 3, kind: input, shape index: {}]   ;;  %s1580_s4 = inlined_call_operand.vmem [shape: f32[2,2,18,32], index: 4, kind: input, shape index: {}, may-alias: {4,6}]   ;;  %s1581_s5 = inlined_call_operand.vmem [shape: bf16[2,18,32], index: 5, kind: output, shape index: {0}]   ;;  %s1582_s6 = inlined_call_operand.vmem [shape: f32[2,2,18,32], index: 6, kind: output, shape index: {1}, may-alias: {4,6}]  }
   0x1 LB: > { %s1116_s22 = sadd.s32 4294967295, %s1252_s21   ;;  %p1120_p0 = scmp.ge.s32.totalorder %s1252_s21, 1  ;;  %s1252_s21 = sphi %s1303_s21, %s17_s21  }
   0x2   : > { %p201_p1 = scmp.lt.s32.totalorder %s1252_s21, 3 }
   0x4   : > { %p202_p2 = pnand %p1120_p0, %p201_p1 }
   0x5   : > { %p240_p3 = scmp.lt.s32.totalorder (!%p202_p2), %s1116_s22, 1  ;;  %s1254_s26 = smov (!%p202_p2), 88  }
   0x6   : > { %205 = sbr.rel (%p202_p2) target bundleno = 1514 (0x5ea), region = 36  ;;  %s1255_s27 = smov (!%p202_p2), 96  }
   0x7   : > { %s1256_s28 = smov (!%p202_p2), 64   ;;  %s1257_s29 = smov (!%p202_p2), 120  }
   0x8   : > { %s1258_s30 = smov (!%p202_p2), 80   ;;  %s1259_s7 = smov (!%p202_p2), 72  }
   0x9   : > { %s1260_s8 = smov (!%p202_p2), 112   ;;  %s1261_s9 = smov (!%p202_p2), 104  }
   0xa   : > { %s1262_s10 = smov (!%p202_p2), 56   ;;  %s1263_s11 = smov (!%p202_p2), 48  }
   0xb   : > { %s1590_s22 = smov (!%p240_p3, %s1116_s22), 1  ;;  %vm277_vm0 = vcmask 64512   ;;  %vm398_vm1 = vcmask 1040384   ;;  %vm311_vm2 = vcmask 146432   ;;  %vm318_vm3 = vcmask 140288   ;;  %s1264_s12 = smov 40  }
   0xc   : > { %s1314_s4 = smul.u32 12, %s1590_s22  ;;  %s1265_s13 = smov 8  }
   0xd   : > { %s1266_s14 = smov 16   ;;  %s1267_s15 = smov 24  }
   0xe   : > { %s244_s25 = scalar_lea.vmem %s1576_s0, %s1314_s4  ;;  %s249_s24 = scalar_lea.vmem %s1577_s1, %s1314_s4 }
   0xf   : > { %v264_v0 = vld [vmem:[%s244_s25 + $0x8] sm:$0x1]  ;;  %v1320_v1 = vld [vmem:[%s244_s25] sm:$0xff]  ;;  %s1124_s25 = smul.u32 48, %s1590_s22 }
  0x10   : > { %v270_v2 = vunpack.c.l.b16 %v264_v0  ;;  %432 = vrot.lane.b32.xlu2 %v1320_v1, %s1254_s26 }
  0x12   : > { %v1323_v3 = vpack.c.b16 %v270_v2, %v270_v2 }
  0x14   : > { %275 = vrot.lane.b32.xlu0 %v1323_v3, %s1255_s27  ;;  %389 = vrot.lane.b32.xlu1 %v1323_v3, %s1256_s28 }
  0x18   : > { %434 = vrot.lane.b32.xlu2 %v1323_v3, %s1254_s26 }
  0x1c   : > { %273 = vrot.lane.b32.xlu0 %v1320_v1, %s1255_s27 }
  0x20   : > { %428 = vrot.lane.b32.xlu2 %v1320_v1, %s1257_s29 }
  0x28   : > { %387 = vrot.lane.b32.xlu2 %v1320_v1, %s1256_s28 }
  0x30   : > { %601 = vrot.lane.b32.xlu2 %v1323_v3, %s1258_s30 }
  0x38   : > { %768 = vrot.lane.b32.xlu2 %v1323_v3, %s1259_s7 }
  0x40   : > { %430 = vrot.lane.b32.xlu2 %v1323_v3, %s1257_s29 }
  0x48   : > { %766 = vrot.lane.b32.xlu2 %v1320_v1, %s1259_s7 }
  0x50   : > { %597 = vrot.lane.b32.xlu2 %v1323_v3, %s1260_s8 }
  0x6a   : > { %v433_v4 = vpop.permute.xlu2 %432 }
  0x6b   : > { %v443_v8 = vsel %vm277_vm0, %v433_v4, 0 }
  0x72   : > { %v435_v5 = vpop.permute.xlu2 %434 }
  0x73   : > { %v446_v6 = vsel %vm277_vm0, %v435_v5, 0 }
  0x74   : > { %454 = vmatpush.bf16.xpose.msra.mxu2 %v446_v6 }
  0x7a   : > { %v429_v10 = vpop.permute.xlu2 %428 }
  0x7c   : > { %455 = vmatpush.bf16.xpose.msra.mxu2 %v443_v8 }
  0x82   : > { %v388_v13 = vpop.permute.xlu2 %387 }
  0x83   : > { %1133 = vmatmul.msk.bf16.vlgmr.msra.gmra.mxu2 %vm277_vm0, %v429_v10 }
  0x86   : > { %v276_v7 = vpop.permute.xlu0 %275  ;;  %v390_v17 = vpop.permute.xlu1 %389 }
  0x87   : > { %v288_v9 = vsel %vm277_vm0, %v276_v7, 0  ;;  %v400_v18 = vsel %vm398_vm1, %v390_v17, 0 }
  0x88   : > { %296 = vmatpush.bf16.xpose.msra.mxu0 %v288_v9  ;;  %408 = vmatpush.bf16.msra.mxu1 %v400_v18 }
  0x89   : > { %1172 = vmatpush.bf16.msra.mxu3 %v400_v18 }
  0x8a   : > { %v602_v14 = vpop.permute.xlu2 %601 }
  0x8b   : > { %v613_v45 = vsel %vm277_vm0, %v602_v14, 0 }
  0x8c   : > { %409 = vmatpush.bf16.msra.mxu1 %v388_v13 }
  0x8d   : > { %1173 = vmatpush.bf16.msra.mxu3 %v388_v13 }
  0x8e   : > { %v274_v11 = vpop.permute.xlu0 %273 }
  0x8f   : > { %v285_v12 = vsel %vm277_vm0, %v274_v11, 0 }
  0x90   : > { %297 = vmatpush.bf16.xpose.msra.mxu0 %v285_v12  ;;  %621 = vmatpush.bf16.xpose.msrb.mxu1 %v613_v45 }
  0x92   : > { %v769_v15 = vpop.permute.xlu2 %768 }
  0x93   : > { %v780_v46 = vsel %vm277_vm0, %v769_v15, 0 }
  0x97   : > { %1129 = vmatmul.msk.bf16.vlgmr.msra.gmra.mxu0 %vm277_vm0, %v1320_v1 }
  0x98   : > { %788 = vmatpush.bf16.xpose.msrb.mxu0 %v780_v46 }
  0x9a   : > { %v431_v16 = vpop.permute.xlu2 %430 }
  0x9b   : > { %1134 = vmatmul.msk.bf16.gmra.mxu2 %vm277_vm0, %v431_v16 }
  0xa2   : > { %v767_v47 = vpop.permute.xlu2 %766 }
  0xa3   : > { %v777_v61 = vsel %vm277_vm0, %v767_v47, 0 }
  0xa4   : > { %789 = vmatpush.bf16.xpose.msrb.mxu0 %v777_v61 }
  0xa7   : > { %1130 = vmatmul.msk.bf16.gmra.mxu0 %vm277_vm0, %v1323_v3 }
  0xaa   : > { %v1373_v50 = vpop.permute.xlu2 %597 }
 0x106   : > { %v457_v27 = vpop.f32.mrf.mxu2 }
 0x107   : > { %v1375_v54 = vmul.f32 0.35355338, %v457_v27 }
 0x109   : > { %v469_v55 = vsel %vm311_vm2, %v1375_v54, -inf }
 0x10e   : > { %v459_v30 = vpop.f32.mrf.mxu2 }
 0x10f   : > { %v1369_v48 = vmul.f32 0.35355338, %v459_v30 }
 0x111   : > { %v472_v49 = vsel %vm311_vm2, %v1369_v48, -inf }
 0x114   : > { %v299_v19 = vpop.f32.mrf.mxu0 }
 0x115   : > { %v308_v20 = vmul.f32 0.35355338, %v299_v19 }
 0x117   : > { %v312_v21 = vsel %vm311_vm2, %v308_v20, -inf }
 0x118   : > { %313 = vmax.xlane.f32.xlu1 %v312_v21 }
 0x11c   : > { %v301_v22 = vpop.f32.mrf.mxu0 }
 0x11d   : > { %v309_v23 = vmul.f32 0.35355338, %v301_v22 }
 0x11e   : > { %v462_v31 = vpop.f32.mrf.mxu2 }
 0x11f   : > { %v315_v24 = vsel %vm311_vm2, %v309_v23, -inf  ;;  %v468_v32 = vmul.f32 0.35355338, %v462_v31 }
 0x120   : > { %316 = vmax.xlane.f32.xlu1 %v315_v24 }
 0x121   : > { %v475_v33 = vsel %vm318_vm3, %v468_v32, -inf }
 0x124   : > { %v304_v25 = vpop.f32.mrf.mxu0 }
 0x125   : > { %v310_v28 = vmul.f32 0.35355338, %v304_v25 }
 0x126   : > { %v464_v34 = vpop.f32.mrf.mxu2 }
 0x127   : > { %v319_v29 = vsel %vm318_vm3, %v310_v28, -inf }
 0x128   : > { %320 = vmax.xlane.f32.xlu2 %v319_v29 }
 0x12c   : > { %v306_v26 = vpop.f32.mrf.mxu0 }
 0x130   : > { %476 = vmax.xlane.f32.xlu2 %v475_v33 }
 0x139   : > { %599 = vrot.lane.b32.xlu1 %v1320_v1, %s1258_s30  ;;  %s1067_s30 = scalar_lea.vmem %s1582_s6, %s1124_s25 }
 0x18b   : > { %v314_v35 = vpop.xlane.xlu1 %313 }
 0x18c   : > { %v322_v36 = vsub.f32 %v308_v20, %v314_v35 }
 0x18e   : > { %v325_v37 = vmul.f32 1.442695, %v322_v36 }
 0x190   : > { %1198 = vpow2.f32 %v325_v37 }
 0x193   : > { %v317_v38 = vpop.xlane.xlu1 %316 }
 0x194   : > { %v323_v39 = vsub.f32 %v309_v23, %v317_v38 }
 0x196   : > { %v1355_v40 = vpop.eup %1198  ;;  %v327_v41 = vmul.f32 1.442695, %v323_v39 }
 0x197   : > { %v331_v42 = vsel %vm311_vm2, %v1355_v40, 0.0 }
 0x198   : > { %1200 = vpow2.f32 %v327_v41  ;;  %332 = vadd.xlane.f32.xlu0 %v331_v42 }
 0x19b   : > { %v321_v51 = vpop.xlane.xlu2 %320 }
 0x19c   : > { %v324_v52 = vsub.f32 %v310_v28, %v321_v51 }
 0x19e   : > { %v1359_v43 = vpop.eup %1200  ;;  %v329_v53 = vmul.f32 1.442695, %v324_v52 }
 0x19f   : > { %v334_v44 = vsel %vm311_vm2, %v1359_v43, 0.0 }
 0x1a0   : > { %335 = vadd.xlane.f32.xlu1 %v334_v44  ;;  %1202 = vpow2.f32 %v329_v53 }
 0x1a3   : > { %v477_v58 = vpop.xlane.xlu2 %476 }
 0x1a4   : > { %v480_v59 = vsub.f32 %v468_v32, %v477_v58 }
 0x1a6   : > { %v1379_v56 = vpop.eup %1202  ;;  %v485_v60 = vmul.f32 1.442695, %v480_v59 }
 0x1a7   : > { %v337_v57 = vsel %vm318_vm3, %v1379_v56, 0.0 }
 0x1a8   : > { %1204 = vpow2.f32 %v485_v60 }
 0x1ab   : > { %v600_v0 = vpop.permute.xlu1 %599 }
 0x1ac   : > { %762 = vrot.lane.b32.xlu0 %v1320_v1, %s1261_s9  ;;  %v610_v2 = vsel %vm277_vm0, %v600_v0, 0 }
 0x1ad   : > { %622 = vmatpush.bf16.xpose.msrb.mxu1 %v610_v2 }
 0x1ae   : > { %v1384_v62 = vpop.eup %1204 }
 0x1af   : > { %v493_v63 = vsel %vm318_vm3, %v1384_v62, 0.0 }
 0x1b9   : > { %595 = vrot.lane.b32.xlu1 %v1320_v1, %s1260_s8 }
 0x1c1   : > { %764 = vrot.lane.b32.xlu1 %v1323_v3, %s1261_s9  ;;  %s254_s9 = scalar_lea.vmem %s1581_s5, %s1314_s4 }
 0x1d6   : > { %473 = vmax.xlane.f32.xlu0 %v472_v49 }
 0x1de   : > { %338 = vadd.xlane.f32.xlu0 %v337_v57 }
 0x1e6   : > { %494 = vadd.xlane.f32.xlu0 %v493_v63 }
 0x1eb   : > { %470 = vmax.xlane.f32.xlu1 %v469_v55 }
 0x20b   : > { %v333_v4 = vpop.xlane.xlu0 %332 }
 0x20c   : > { %1206 = vrcp.f32 %v333_v4  ;;  %v351_v13 = vand.u32 2147483648, %v333_v4  ;;  %vm345_vm5 = vweird.f32 %v333_v4  ;;  %v349_v14 = vand.u32 2147483647, %v333_v4 }
 0x20e   : > { %v352_v21 = vor.u32 1.1754944e-38, %v351_v13  ;;  %vm350_vm8 = vcmp.eq.f32.partialorder %v349_v14, 8.507059e+37 }
 0x212   : > { %v1207_v5 = vpop.eup %1206 }
 0x213   : > { %v341_v6 = vmul.f32 %v1207_v5, %v333_v4  ;;  %v336_v7 = vpop.xlane.xlu1 %335  ;;  %vm346_vm4 = vweird.f32 %v1207_v5 }
 0x214   : > { %1208 = vrcp.f32 %v336_v7  ;;  %vm347_vm6 = vmor %vm345_vm5, %vm346_vm4  ;;  %v366_v16 = vand.u32 2147483648, %v336_v7  ;;  %v364_v19 = vand.u32 2147483647, %v336_v7  ;;  %vm360_vm9 = vweird.f32 %v336_v7 }
 0x215   : > { %v342_v8 = vsub.f32 1.0, %v341_v6  ;;  %vm426_vm4 = vcmask 57344  }
 0x216   : > { %v367_v23 = vor.u32 1.1754944e-38, %v366_v16  ;;  %vm365_vm11 = vcmp.eq.f32.partialorder %v364_v19, 8.507059e+37 }
 0x217   : > { %v343_v9 = vmul.f32 %v1207_v5, %v342_v8 }
 0x219   : > { %v344_v11 = vadd.f32 %v1207_v5, %v343_v9 }
 0x21a   : > { %v1209_v10 = vpop.eup %1208 }
 0x21b   : > { %v356_v12 = vmul.f32 %v1209_v10, %v336_v7  ;;  %vm361_vm7 = vweird.f32 %v1209_v10  ;;  %v348_v20 = vsel %vm347_vm6, %v1207_v5, %v344_v11 }
 0x21c   : > { %vm362_vm10 = vmor %vm360_vm9, %vm361_vm7  ;;  %v353_v24 = vsel %vm350_vm8, %v352_v21, %v348_v20 }
 0x21d   : > { %v357_v15 = vsub.f32 1.0, %v356_v12  ;;  %v354_v27 = vmul.f32 %v1355_v40, %v353_v24 }
 0x21e   : > { %v763_v17 = vpop.permute.xlu0 %762 }
 0x21f   : > { %v358_v18 = vmul.f32 %v1209_v10, %v357_v15  ;;  %1141 = vmatmul.msk.bf16.vlgmr.msrb.gmra.mxu0 %vm277_vm0, %v763_v17 }
 0x221   : > { %v359_v22 = vadd.f32 %v1209_v10, %v358_v18 }
 0x223   : > { %v363_v25 = vsel %vm362_vm10, %v1209_v10, %v359_v22 }
 0x224   : > { %v368_v26 = vsel %vm365_vm11, %v367_v23, %v363_v25 }
 0x225   : > { %v369_v28 = vmul.f32 %v1359_v43, %v368_v26 }
 0x227   : > { %v385_v29 = vpack.c.bf16 %v369_v28, %v354_v27 }
 0x229   : > { %1131 = vmatmul.msk.bf16.vlgmr.msra.gmra.mxu1 %vm311_vm2, %v385_v29 }
 0x22b   : > { %v596_v30 = vpop.permute.xlu1 %595 }
 0x233   : > { %v765_v31 = vpop.permute.xlu1 %764 }
 0x234   : > { %1142 = vmatmul.msk.bf16.gmra.mxu0 %vm277_vm0, %v765_v31 }
 0x239   : > { %1137 = vmatmul.msk.bf16.vlgmr.msrb.gmra.mxu1 %vm277_vm0, %v596_v30 }
 0x249   : > { %1138 = vmatmul.msk.bf16.gmra.mxu1 %vm277_vm0, %v1373_v50  ;;  %v474_v32 = vpop.xlane.xlu0 %473  ;;  %vm423_vm0 = vcmask 60416  }
 0x24a   : > { %v479_v52 = vsub.f32 %v1369_v48, %v474_v32 }
 0x24c   : > { %v483_v55 = vmul.f32 1.442695, %v479_v52 }
 0x251   : > { %v339_v33 = vpop.xlane.xlu0 %338 }
 0x252   : > { %1210 = vrcp.f32 %v339_v33  ;;  %v381_v36 = vand.u32 2147483648, %v339_v33  ;;  %vm375_vm12 = vweird.f32 %v339_v33  ;;  %v379_v38 = vand.u32 2147483647, %v339_v33 }
 0x254   : > { %v382_v40 = vor.u32 1.1754944e-38, %v381_v36  ;;  %vm380_vm15 = vcmp.eq.f32.partialorder %v379_v38, 8.507059e+37 }
 0x258   : > { %v1211_v34 = vpop.eup %1210 }
 0x259   : > { %v371_v35 = vmul.f32 %v1211_v34, %v339_v33  ;;  %vm376_vm13 = vweird.f32 %v1211_v34  ;;  %v495_v38 = vpop.xlane.xlu0 %494 }
 0x25a   : > { %vm377_vm14 = vmor %vm375_vm12, %vm376_vm13  ;;  %vm531_vm13 = vweird.f32 %v495_v38 }
 0x25b   : > { %v372_v37 = vsub.f32 1.0, %v371_v35 }
 0x25d   : > { %v373_v39 = vmul.f32 %v1211_v34, %v372_v37 }
 0x25e   : > { %v471_v46 = vpop.xlane.xlu1 %470 }
 0x25f   : > { %v374_v41 = vadd.f32 %v1211_v34, %v373_v39  ;;  %v478_v47 = vsub.f32 %v1375_v54, %v471_v46 }
 0x261   : > { %v378_v42 = vsel %vm377_vm14, %v1211_v34, %v374_v41  ;;  %v481_v49 = vmul.f32 1.442695, %v478_v47 }
 0x262   : > { %v383_v43 = vsel %vm380_vm15, %v382_v40, %v378_v42 }
 0x263   : > { %v384_v44 = vmul.f32 %v1379_v56, %v383_v43  ;;  %1212 = vpow2.f32 %v481_v49 }
 0x264   : > { %1214 = vpow2.f32 %v483_v55 }
 0x265   : > { %v386_v45 = vpack.c.bf16 %v384_v44, %v384_v44 }
 0x267   : > { %1132 = vmatmul.msk.bf16.vlgmr.msra.gmra.mxu3 %vm311_vm2, %v386_v45 }
 0x269   : > { %v1402_v57 = vpop.eup %1212 }
 0x26a   : > { %v487_v54 = vsel %vm311_vm2, %v1402_v57, 0.0  ;;  %v1407_v48 = vpop.eup %1214 }
 0x26b   : > { %v490_v2 = vsel %vm311_vm2, %v1407_v48, 0.0 }
 0x29c   : > { %v791_v50 = vpop.f32.mrf.mxu0 }
 0x29d   : > { %v800_v51 = vmul.f32 0.35355338, %v791_v50 }
 0x29f   : > { %v803_v53 = vsel %vm311_vm2, %v800_v51, -inf }
 0x2a0   : > { %804 = vmax.xlane.f32.xlu2 %v803_v53 }
 0x2a4   : > { %v793_v58 = vpop.f32.mrf.mxu0 }
 0x2a5   : > { %v801_v56 = vmul.f32 0.35355338, %v793_v58 }
 0x2a6   : > { %v411_v59 = vpop.f32.mrf.mxu1 }
 0x2a7   : > { %v420_v60 = vpack.c.bf16 %v411_v59, %v411_v59  ;;  %v806_v61 = vsel %vm311_vm2, %v801_v56, -inf }
 0x2a8   : > { %488 = vadd.xlane.f32.xlu2 %v487_v54  ;;  %807 = vmax.xlane.f32.xlu1 %v806_v61 }
 0x2a9   : > { %424 = vst.msk [vmem:[#allocation2] sm:$0xf] %vm423_vm0, %v420_v60 }
 0x2ae   : > { %v413_v63 = vpop.f32.mrf.mxu1 }
 0x2af   : > { %v421_v0 = vpack.c.bf16 %v413_v63, %v413_v63 }
 0x2b0   : > { %491 = vadd.xlane.f32.xlu1 %v490_v2 }
 0x2b1   : > { %425 = vst.msk [vmem:[#allocation2 + $0x4] sm:$0xf] %vm423_vm0, %v421_v0  ;;  %v796_v4 = vpop.f32.mrf.mxu0 }
 0x2b2   : > { %v1411_v5 = vmul.f32 0.35355338, %v796_v4 }
 0x2b4   : > { %v809_v6 = vsel %vm318_vm3, %v1411_v5, -inf }
 0x2b5   : > { %810 = vmax.xlane.f32.xlu2 %v809_v6 }
 0x2b6   : > { %v624_v7 = vpop.f32.mrf.mxu1 }
 0x2b7   : > { %v633_v8 = vmul.f32 0.35355338, %v624_v7 }
 0x2b9   : > { %v636_v9 = vsel %vm311_vm2, %v633_v8, -inf  ;;  %v798_v10 = vpop.f32.mrf.mxu0 }
 0x2ba   : > { %637 = vmax.xlane.f32.xlu1 %v636_v9 }
 0x2be   : > { %v626_v14 = vpop.f32.mrf.mxu1 }
 0x2bf   : > { %v1430_v28 = vmul.f32 0.35355338, %v626_v14 }
 0x2c1   : > { %v639_v32 = vsel %vm311_vm2, %v1430_v28, -inf }
 0x2c6   : > { %v629_v17 = vpop.f32.mrf.mxu1 }
 0x2c7   : > { %v1434_v35 = vmul.f32 0.35355338, %v629_v17 }
 0x2c9   : > { %v642_v40 = vsel %vm318_vm3, %v1434_v35, -inf }
 0x2cd   : > { %543 = vrot.lane.b32.xlu2 %v1320_v1, %s1262_s10 }
 0x2ce   : > { %v631_v20 = vpop.f32.mrf.mxu1 }
 0x2d3   : > { %545 = vrot.lane.b32.xlu1 %v1323_v3, %s1262_s10 }
 0x2d5   : > { %712 = vrot.lane.b32.xlu2 %v1323_v3, %s1263_s11 }
 0x2dd   : > { %710 = vrot.lane.b32.xlu2 %v1320_v1, %s1263_s11 }
 0x2e5   : > { %877 = vrot.lane.b32.xlu2 %v1320_v1, %s1264_s12 }
 0x2ea   : > { %v416_v11 = vpop.f32.mrf.mxu3 }
 0x2eb   : > { %v422_v12 = vpack.c.bf16 %v416_v11, %v416_v11  ;;  %v537_v11 = vand.u32 2147483648, %v495_v38 }
 0x2ed   : > { %427 = vst.msk [vmem:[#allocation2 + $0x8] sm:$0x1] %vm426_vm4, %v422_v12  ;;  %v538_v14 = vor.u32 1.1754944e-38, %v537_v11 }
 0x2f2   : > { %v418_v13 = vpop.f32.mrf.mxu3 }
 0x2f3   : > { %v535_v13 = vand.u32 2147483647, %v495_v38 }
 0x2f5   : > { %vm536_vm0 = vcmp.eq.f32.partialorder %v535_v13, 8.507059e+37 }
 0x313   : > { %v805_v15 = vpop.xlane.xlu2 %804 }
 0x314   : > { %v812_v16 = vsub.f32 %v800_v51, %v805_v15 }
 0x316   : > { %v815_v18 = vmul.f32 1.442695, %v812_v16 }
 0x318   : > { %1216 = vpow2.f32 %v815_v18 }
 0x31b   : > { %v808_v19 = vpop.xlane.xlu1 %807  ;;  %v489_v26 = vpop.xlane.xlu2 %488 }
 0x31c   : > { %v813_v21 = vsub.f32 %v801_v56, %v808_v19  ;;  %v507_v53 = vand.u32 2147483648, %v489_v26  ;;  %vm501_vm9 = vweird.f32 %v489_v26  ;;  %v505_v58 = vand.u32 2147483647, %v489_v26 }
 0x31e   : > { %v1422_v22 = vpop.eup %1216  ;;  %v817_v23 = vmul.f32 1.442695, %v813_v21  ;;  %v508_v54 = vor.u32 1.1754944e-38, %v507_v53  ;;  %vm506_vm12 = vcmp.eq.f32.partialorder %v505_v58, 8.507059e+37 }
 0x31f   : > { %v821_v1 = vsel %vm311_vm2, %v1422_v22, 0.0 }
 0x320   : > { %822 = vadd.xlane.f32.xlu1 %v821_v1  ;;  %1218 = vpow2.f32 %v817_v23 }
 0x323   : > { %v492_v24 = vpop.xlane.xlu1 %491 }
 0x324   : > { %1220 = vrcp.f32 %v492_v24  ;;  %v522_v49 = vand.u32 2147483648, %v492_v24  ;;  %vm516_vm7 = vweird.f32 %v492_v24  ;;  %v520_v51 = vand.u32 2147483647, %v492_v24 }
 0x325   : > { %1222 = vrcp.f32 %v489_v26 }
 0x326   : > { %v1426_v25 = vpop.eup %1218  ;;  %v523_v59 = vor.u32 1.1754944e-38, %v522_v49  ;;  %vm521_vm11 = vcmp.eq.f32.partialorder %v520_v51, 8.507059e+37 }
 0x327   : > { %v824_v27 = vsel %vm311_vm2, %v1426_v25, 0.0 }
 0x328   : > { %825 = vadd.xlane.f32.xlu0 %v824_v27  ;;  %v1440_v46 = vpop.xlane.xlu2 %810 }
 0x32a   : > { %v1221_v30 = vpop.eup %1220 }
 0x32b   : > { %v1223_v33 = vpop.eup %1222  ;;  %v512_v34 = vmul.f32 %v1221_v30, %v492_v24  ;;  %vm517_vm5 = vweird.f32 %v1221_v30 }
 0x32c   : > { %v497_v37 = vmul.f32 %v1223_v33, %v489_v26  ;;  %vm502_vm6 = vweird.f32 %v1223_v33  ;;  %vm518_vm8 = vmor %vm516_vm7, %vm517_vm5 }
 0x32d   : > { %v638_v29 = vpop.xlane.xlu1 %637  ;;  %v513_v39 = vsub.f32 1.0, %v512_v34  ;;  %vm503_vm10 = vmor %vm501_vm9, %vm502_vm6 }
 0x32e   : > { %v645_v31 = vsub.f32 %v633_v8, %v638_v29  ;;  %v498_v41 = vsub.f32 1.0, %v497_v37 }
 0x32f   : > { %v514_v42 = vmul.f32 %v1221_v30, %v513_v39 }
 0x330   : > { %640 = vmax.xlane.f32.xlu0 %v639_v32  ;;  %v648_v36 = vmul.f32 1.442695, %v645_v31  ;;  %v499_v43 = vmul.f32 %v1223_v33, %v498_v41  ;;  %v544_v6 = vpop.permute.xlu2 %543 }
 0x331   : > { %v515_v45 = vadd.f32 %v1221_v30, %v514_v42 }
 0x332   : > { %1224 = vpow2.f32 %v648_v36  ;;  %v500_v50 = vadd.f32 %v1223_v33, %v499_v43 }
 0x333   : > { %1226 = vrcp.f32 %v495_v38  ;;  %v519_v56 = vsel %vm518_vm8, %v1221_v30, %v515_v45 }
 0x334   : > { %v504_v60 = vsel %vm503_vm10, %v1223_v33, %v500_v50  ;;  %v524_v63 = vsel %vm521_vm11, %v523_v59, %v519_v56 }
 0x335   : > { %v509_v4 = vsel %vm506_vm12, %v508_v54, %v504_v60  ;;  %v525_v7 = vmul.f32 %v1407_v48, %v524_v63 }
 0x336   : > { %v510_v9 = vmul.f32 %v1402_v57, %v509_v4 }
 0x338   : > { %643 = vmax.xlane.f32.xlu0 %v642_v40  ;;  %v1438_v44 = vpop.eup %1224  ;;  %v541_v10 = vpack.c.bf16 %v525_v7, %v510_v9 }
 0x339   : > { %v1227_v47 = vpop.eup %1226  ;;  %v654_v52 = vsel %vm311_vm2, %v1438_v44, 0.0 }
 0x33a   : > { %v527_v55 = vmul.f32 %v1227_v47, %v495_v38  ;;  %vm532_vm14 = vweird.f32 %v1227_v47 }
 0x33b   : > { %vm533_vm15 = vmor %vm531_vm13, %vm532_vm14 }
 0x33c   : > { %v528_v0 = vsub.f32 1.0, %v527_v55 }
 0x33e   : > { %v529_v8 = vmul.f32 %v1227_v47, %v528_v0 }
 0x340   : > { %655 = vadd.xlane.f32.xlu0 %v654_v52  ;;  %v530_v12 = vadd.f32 %v1227_v47, %v529_v8 }
 0x342   : > { %v534_v15 = vsel %vm533_vm15, %v1227_v47, %v530_v12 }
 0x343   : > { %v539_v16 = vsel %vm536_vm0, %v538_v14, %v534_v15 }
 0x344   : > { %v540_v17 = vmul.f32 %v1384_v62, %v539_v16 }
 0x345   : > { %v546_v61 = vpop.permute.xlu1 %545 }
 0x346   : > { %v555_v2 = vsel %vm398_vm1, %v546_v61, 0  ;;  %v542_v48 = vpack.c.bf16 %v540_v17, %v540_v17 }
 0x347   : > { %563 = vmatpush.bf16.msrb.mxu3 %v555_v2 }
 0x34b   : > { %564 = vmatpush.bf16.msrb.mxu3 %v544_v6 }
 0x34e   : > { %1135 = vmatmul.msk.bf16.vlgmr.msrb.gmra.mxu3 %vm311_vm2, %v541_v10 }
 0x35e   : > { %1136 = vmatmul.msk.bf16.gmra.mxu3 %vm311_vm2, %v542_v48 }
 0x393   : > { %v1475_v41 = vpop.xlane.xlu1 %822 }
 0x394   : > { %vm835_vm4 = vweird.f32 %v1475_v41  ;;  %v839_v48 = vand.u32 2147483647, %v1475_v41 }
 0x39b   : > { %v1450_v57 = vpop.xlane.xlu0 %825 }
 0x39c   : > { %vm850_vm10 = vweird.f32 %v1450_v57  ;;  %v854_v11 = vand.u32 2147483647, %v1450_v57  ;;  %v856_v12 = vand.u32 2147483648, %v1450_v57 }
 0x3a3   : > { %v641_v18 = vpop.xlane.xlu0 %640 }
 0x3a4   : > { %v646_v19 = vsub.f32 %v1430_v28, %v641_v18  ;;  %v713_v28 = vpop.permute.xlu2 %712  ;;  %v841_v18 = vand.u32 2147483648, %v1475_v41 }
 0x3a5   : > { %v722_v29 = vsel %vm398_vm1, %v713_v28, 0 }
 0x3a6   : > { %v650_v20 = vmul.f32 1.442695, %v646_v19  ;;  %730 = vmatpush.bf16.msra.mxu3 %v722_v29 }
 0x3a8   : > { %1228 = vpow2.f32 %v650_v20 }
 0x3ab   : > { %v644_v21 = vpop.xlane.xlu0 %643 }
 0x3ac   : > { %v647_v23 = vsub.f32 %v1434_v35, %v644_v21  ;;  %v711_v32 = vpop.permute.xlu2 %710  ;;  %v814_v35 = vsub.f32 %v1411_v5, %v1440_v46 }
 0x3ad   : > { %731 = vmatpush.bf16.msra.mxu3 %v711_v32  ;;  %v842_v32 = vor.u32 1.1754944e-38, %v841_v18  ;;  %v1166_v18 = vld [vmem:[%s1578_s2] sm:$0xff] }
 0x3ae   : > { %v1454_v1 = vpop.eup %1228  ;;  %v652_v24 = vmul.f32 1.442695, %v647_v23  ;;  %v819_v36 = vmul.f32 1.442695, %v814_v35 }
 0x3af   : > { %v657_v26 = vsel %vm311_vm2, %v1454_v1, 0.0 }
 0x3b0   : > { %1230 = vpow2.f32 %v652_v24  ;;  %658 = vadd.xlane.f32.xlu0 %v657_v26  ;;  %v857_v26 = vor.u32 1.1754944e-38, %v856_v12 }
 0x3b1   : > { %1232 = vpow2.f32 %v819_v36 }
 0x3b3   : > { %v656_v40 = vpop.xlane.xlu0 %655 }
 0x3b4   : > { %1234 = vrcp.f32 %v656_v40  ;;  %v1485_v49 = vpop.permute.xlu2 %877  ;;  %v674_v61 = vand.u32 2147483648, %v656_v40  ;;  %vm668_vm5 = vweird.f32 %v656_v40  ;;  %v672_v0 = vand.u32 2147483647, %v656_v40 }
 0x3b5   : > { %1236 = vrcp.f32 %v1450_v57 }
 0x3b6   : > { %v1458_v62 = vpop.eup %1230  ;;  %1238 = vrcp.f32 %v1475_v41  ;;  %v675_v13 = vor.u32 1.1754944e-38, %v674_v61  ;;  %vm673_vm12 = vcmp.eq.f32.partialorder %v672_v0, 8.507059e+37 }
 0x3b7   : > { %v660_v27 = vsel %vm318_vm3, %v1458_v62, 0.0  ;;  %v1471_v38 = vpop.eup %1232 }
 0x3b8   : > { %661 = vadd.xlane.f32.xlu2 %v660_v27  ;;  %v827_v39 = vsel %vm318_vm3, %v1471_v38, 0.0 }
 0x3ba   : > { %v1235_v42 = vpop.eup %1234 }
 0x3bb   : > { %v1479_v5 = vpop.eup %1236  ;;  %v664_v43 = vmul.f32 %v1235_v42, %v656_v40  ;;  %vm669_vm3 = vweird.f32 %v1235_v42 }
 0x3bc   : > { %v1481_v45 = vpop.eup %1238  ;;  %v846_v46 = vmul.f32 %v1479_v5, %v1450_v57  ;;  %vm851_vm7 = vweird.f32 %v1479_v5  ;;  %vm1498_vm8 = vmor %vm668_vm5, %vm669_vm3  ;;  %vm855_vm3 = vcmp.eq.f32.partialorder %v854_v11, 8.507059e+37  ;;  %vm840_vm5 = vcmp.eq.f32.partialorder %v839_v48, 8.507059e+37  ;;  %v1167_v48 = vld [vmem:[%s1578_s2 + $0x8] sm:$0xff] }
 0x3bd   : > { %v665_v47 = vsub.f32 1.0, %v664_v43  ;;  %v831_v51 = vmul.f32 %v1481_v45, %v1475_v41  ;;  %vm836_vm6 = vweird.f32 %v1481_v45  ;;  %vm1508_vm11 = vmor %vm850_vm10, %vm851_vm7  ;;  %973 = vmatpush.bf16.msra.mxu1 %v1167_v48 }
 0x3be   : > { %v847_v52 = vsub.f32 1.0, %v846_v46  ;;  %vm1523_vm0 = vmor %vm835_vm4, %vm836_vm6 }
 0x3bf   : > { %v666_v53 = vmul.f32 %v1235_v42, %v665_v47  ;;  %v832_v55 = vsub.f32 1.0, %v831_v51 }
 0x3c0   : > { %v848_v56 = vmul.f32 %v1479_v5, %v847_v52 }
 0x3c1   : > { %v667_v59 = vadd.f32 %v1235_v42, %v666_v53  ;;  %v833_v63 = vmul.f32 %v1481_v45, %v832_v55  ;;  %974 = vmatpush.bf16.msra.mxu1 %v1166_v18 }
 0x3c2   : > { %v849_v4 = vadd.f32 %v1479_v5, %v848_v56 }
 0x3c3   : > { %v671_v8 = vsel %vm1498_vm8, %v1235_v42, %v667_v59  ;;  %v834_v14 = vadd.f32 %v1481_v45, %v833_v63  ;;  %vm590_vm8 = vcmask 126016  }
 0x3c4   : > { %879 = vrot.lane.b32.xlu0 %v1323_v3, %s1264_s12  ;;  %v676_v19 = vsel %vm673_vm12, %v675_v13, %v671_v8  ;;  %v853_v57 = vsel %vm1508_vm11, %v1479_v5, %v849_v4 }
 0x3c5   : > { %v838_v28 = vsel %vm1523_vm0, %v1481_v45, %v834_v14  ;;  %v677_v29 = vmul.f32 %v1438_v44, %v676_v19  ;;  %vm760_vm0 = vcmask 188544  }
 0x3d1   : > { %v566_v30 = vpop.f32.mrf.mxu3 }
 0x3d2   : > { %v575_v31 = vpack.c.bf16 %v566_v30, %v566_v30 }
 0x3d4   : > { %581 = vrot.lane.b32.xlu1 %v575_v31, %s1265_s13 }
 0x3d9   : > { %v568_v33 = vpop.f32.mrf.mxu3 }
 0x3da   : > { %v576_v34 = vpack.c.bf16 %v568_v33, %v568_v33 }
 0x3dc   : > { %583 = vrot.lane.b32.xlu1 %v576_v34, %s1265_s13  ;;  %v858_v34 = vsel %vm855_vm3, %v857_v26, %v853_v57  ;;  %vm927_vm3 = vcmask 254144  }
 0x3dd   : > { %v859_v40 = vmul.f32 %v1426_v25, %v858_v34 }
 0x3e1   : > { %v1469_v3 = vpop.f32.mrf.mxu3 }
 0x3e9   : > { %v573_v37 = vpop.f32.mrf.mxu3 }
 0x3ee   : > { %828 = vadd.xlane.f32.xlu0 %v827_v39  ;;  %v843_v39 = vsel %vm840_vm5, %v842_v32, %v838_v28  ;;  %vm1001_vm5 = vcmask 257024  }
 0x423   : > { %v659_v50 = vpop.xlane.xlu0 %658 }
 0x424   : > { %1240 = vrcp.f32 %v659_v50  ;;  %v689_v7 = vand.u32 2147483648, %v659_v50  ;;  %v687_v10 = vand.u32 2147483647, %v659_v50  ;;  %vm683_vm13 = vweird.f32 %v659_v50 }
 0x426   : > { %v690_v20 = vor.u32 1.1754944e-38, %v689_v7  ;;  %vm688_vm15 = vcmp.eq.f32.partialorder %v687_v10, 8.507059e+37 }
 0x42a   : > { %v1241_v58 = vpop.eup %1240 }
 0x42b   : > { %v679_v60 = vmul.f32 %v1241_v58, %v659_v50  ;;  %v1490_v54 = vpop.xlane.xlu2 %661  ;;  %vm684_vm9 = vweird.f32 %v1241_v58 }
 0x42c   : > { %1242 = vrcp.f32 %v1490_v54  ;;  %vm685_vm14 = vmor %vm683_vm13, %vm684_vm9  ;;  %v704_v44 = vand.u32 2147483648, %v1490_v54  ;;  %vm698_vm6 = vweird.f32 %v1490_v54  ;;  %v702_v42 = vand.u32 2147483647, %v1490_v54 }
 0x42d   : > { %v680_v2 = vsub.f32 1.0, %v679_v60  ;;  %vm924_vm13 = vcmask 257216  }
 0x42e   : > { %v705_v45 = vor.u32 1.1754944e-38, %v704_v44  ;;  %v991_v44 = vld [vmem:[%s249_s24 + $0x8] sm:$0x1] }
 0x42f   : > { %v681_v9 = vmul.f32 %v1241_v58, %v680_v2 }
 0x431   : > { %v682_v16 = vadd.f32 %v1241_v58, %v681_v9 }
 0x432   : > { %v1243_v17 = vpop.eup %1242 }
 0x433   : > { %v686_v21 = vsel %vm685_vm14, %v1241_v58, %v682_v16  ;;  %v694_v23 = vmul.f32 %v1243_v17, %v1490_v54  ;;  %vm699_vm4 = vweird.f32 %v1243_v17  ;;  %vm593_vm14 = vcmask 122944  }
 0x434   : > { %v691_v27 = vsel %vm688_vm15, %v690_v20, %v686_v21  ;;  %vm700_vm7 = vmor %vm698_vm6, %vm699_vm4  ;;  %vm960_vm15 = vcmask 261120   ;;  %vm987_vm4 = vcmask 254976   ;;  %vm1004_vm6 = vcmask 253952  }
 0x435   : > { %v692_v30 = vmul.f32 %v1454_v1, %v691_v27  ;;  %v695_v31 = vsub.f32 1.0, %v694_v23  ;;  %v844_v1 = vmul.f32 %v1422_v22, %v843_v39 }
 0x436   : > { %v880_v33 = vpop.permute.xlu0 %879 }
 0x437   : > { %v696_v35 = vmul.f32 %v1243_v17, %v695_v31  ;;  %v889_v36 = vsel %vm398_vm1, %v880_v33, 0  ;;  %v708_v37 = vpack.c.bf16 %v692_v30, %v677_v29  ;;  %v875_v5 = vpack.c.bf16 %v859_v40, %v844_v1  ;;  %v1169_v29 = vld [vmem:[%s249_s24] sm:$0xff]  }
 0x438   : > { %897 = vmatpush.bf16.msrb.mxu2 %v889_v36  ;;  %vm703_vm1 = vcmp.eq.f32.partialorder %v702_v42, 8.507059e+37  ;;  %v1197_v30 = vld [vmem:[%s1579_s3] ss:$0 sm:$0xff]  ;;  %v1170_v31 = vunpack.c.l.bf16 %v1169_v29  ;;  %v1171_v36 = vunpack.c.h.bf16 %v1169_v29  ;;  %v994_v1 = vunpack.c.l.bf16 %v991_v44 }
 0x439   : > { %1139 = vmatmul.msk.bf16.vlgmr.msra.gmra.mxu3 %vm311_vm2, %v708_v37  ;;  %v697_v41 = vadd.f32 %v1243_v17, %v696_v35 }
 0x43b   : > { %v701_v43 = vsel %vm700_vm7, %v1243_v17, %v697_v41 }
 0x43c   : > { %898 = vmatpush.bf16.msrb.mxu2 %v1485_v49  ;;  %v706_v46 = vsel %vm703_vm1, %v705_v45, %v701_v43 }
 0x43d   : > { %v707_v25 = vmul.f32 %v1458_v62, %v706_v46 }
 0x43f   : > { %1143 = vmatmul.msk.bf16.vlgmr.msrb.gmra.mxu2 %vm311_vm2, %v875_v5  ;;  %v709_v50 = vpack.c.bf16 %v707_v25, %v707_v25 }
 0x446   : > { %v582_v47 = vpop.permute.xlu1 %581 }
 0x447   : > { %591 = vst.msk [vmem:[#allocation2] sm:$0xf] %vm590_vm8, %v582_v47 }
 0x449   : > { %1140 = vmatmul.msk.bf16.gmra.mxu3 %vm311_vm2, %v709_v50 }
 0x44e   : > { %v584_v22 = vpop.permute.xlu1 %583 }
 0x44f   : > { %592 = vst.msk [vmem:[#allocation2 + $0x4] sm:$0xf] %vm590_vm8, %v584_v22 }
 0x461   : > { %v829_v51 = vpop.xlane.xlu0 %828 }
 0x462   : > { %1244 = vrcp.f32 %v829_v51  ;;  %v871_v55 = vand.u32 2147483648, %v829_v51  ;;  %v869_v56 = vand.u32 2147483647, %v829_v51  ;;  %vm865_vm10 = vweird.f32 %v829_v51 }
 0x464   : > { %v872_v62 = vor.u32 1.1754944e-38, %v871_v55  ;;  %vm870_vm12 = vcmp.eq.f32.partialorder %v869_v56, 8.507059e+37 }
 0x468   : > { %v1245_v49 = vpop.eup %1244 }
 0x469   : > { %v861_v52 = vmul.f32 %v1245_v49, %v829_v51  ;;  %vm866_vm9 = vweird.f32 %v1245_v49 }
 0x46a   : > { %vm867_vm11 = vmor %vm865_vm10, %vm866_vm9 }
 0x46b   : > { %v862_v53 = vsub.f32 1.0, %v861_v52 }
 0x46d   : > { %v863_v58 = vmul.f32 %v1245_v49, %v862_v53 }
 0x46f   : > { %v864_v59 = vadd.f32 %v1245_v49, %v863_v58 }
 0x471   : > { %v868_v60 = vsel %vm867_vm11, %v1245_v49, %v864_v59 }
 0x472   : > { %v873_v54 = vsel %vm870_vm12, %v872_v62, %v868_v60 }
 0x473   : > { %v874_v61 = vmul.f32 %v1471_v38, %v873_v54  ;;  %v577_v38 = vpack.c.bf16 %v1469_v3, %v1469_v3 }
 0x475   : > { %v876_v63 = vpack.c.bf16 %v874_v61, %v874_v61 }
 0x477   : > { %1144 = vmatmul.msk.bf16.gmra.mxu2 %vm311_vm2, %v876_v63  ;;  %vm757_vm2 = vcmask 191616  }
 0x4bc   : > { %v733_v0 = vpop.f32.mrf.mxu3 }
 0x4bd   : > { %v742_v2 = vpack.c.bf16 %v733_v0, %v733_v0 }
 0x4bf   : > { %748 = vrot.lane.b32.xlu2 %v742_v2, %s1266_s14 }
 0x4c2   : > { %v900_v4 = vpop.f32.mrf.mxu2 }
 0x4c3   : > { %v909_v6 = vpack.c.bf16 %v900_v4, %v900_v4 }
 0x4c4   : > { %v735_v7 = vpop.f32.mrf.mxu3 }
 0x4c5   : > { %v743_v8 = vpack.c.bf16 %v735_v7, %v735_v7  ;;  %915 = vrot.lane.b32.xlu1 %v909_v6, %s1267_s15 }
 0x4c7   : > { %750 = vrot.lane.b32.xlu0 %v743_v8, %s1266_s14 }
 0x4ca   : > { %v902_v9 = vpop.f32.mrf.mxu2 }
 0x4cb   : > { %v910_v10 = vpack.c.bf16 %v902_v9, %v902_v9 }
 0x4cc   : > { %v738_v11 = vpop.f32.mrf.mxu3 }
 0x4cd   : > { %v744_v12 = vpack.c.bf16 %v738_v11, %v738_v11  ;;  %917 = vrot.lane.b32.xlu1 %v910_v10, %s1267_s15 }
 0x4cf   : > { %752 = vrot.lane.b32.xlu0 %v744_v12, %s1266_s14 }
 0x4d4   : > { %v740_v13 = vpop.f32.mrf.mxu3 }
 0x4d5   : > { %585 = vrot.lane.b32.xlu1 %v577_v38, %s1265_s13 }
 0x4fa   : > { %v905_v14 = vpop.f32.mrf.mxu2 }
 0x4fb   : > { %v911_v15 = vpack.c.bf16 %v905_v14, %v905_v14 }
 0x4fd   : > { %919 = vrot.lane.b32.xlu2 %v911_v15, %s1267_s15 }
 0x502   : > { %v907_v16 = vpop.f32.mrf.mxu2 }
 0x519   : > { %v749_v17 = vpop.permute.xlu2 %748 }
 0x51a   : > { %758 = vst.msk [vmem:[#allocation2] sm:$0xf] %vm757_vm2, %v749_v17 }
 0x537   : > { %v916_v3 = vpop.permute.xlu1 %915 }
 0x538   : > { %925 = vst.msk [vmem:[#allocation2] sm:$0xf] %vm924_vm13, %v916_v3 }
 0x539   : > { %v751_v19 = vpop.permute.xlu0 %750 }
 0x53a   : > { %759 = vst.msk [vmem:[#allocation2 + $0x4] sm:$0xf] %vm757_vm2, %v751_v19 }
 0x53f   : > { %v918_v20 = vpop.permute.xlu1 %917 }
 0x540   : > { %926 = vst.msk [vmem:[#allocation2 + $0x4] sm:$0xf] %vm924_vm13, %v918_v20 }
 0x541   : > { %v753_v23 = vpop.permute.xlu0 %752 }
 0x547   : > { %v586_v57 = vpop.permute.xlu1 %585  ;;  %v1165_v21 = vld [vmem:[#allocation2] sm:$0xff] }
 0x548   : > { %594 = vst.msk [vmem:[#allocation2 + $0x8] sm:$0x1] %vm593_vm14, %v586_v57  ;;  %1157 = vmatmul.msk.bf16.vlgmr.msra.gmra.mxu1 %vm960_vm15, %v1165_v21 }
 0x549   : > { %761 = vst.msk [vmem:[#allocation2 + $0x8] sm:$0x1] %vm760_vm0, %v753_v23 }
 0x557   : > { %v920_v24 = vpop.permute.xlu2 %919 }
 0x558   : > { %928 = vst.msk [vmem:[#allocation2 + $0x8] sm:$0x1] %vm927_vm3, %v920_v24 }
 0x55f   : > { %v931_v26 = vld [vmem:[#allocation2 + $0x8] sm:$0x1] }
 0x560   : > { %v945_v27 = vunpack.c.l.b16 %v931_v26 }
 0x562   : > { %v947_v28 = vpack.c.b16 %v945_v27, %v945_v27 }
 0x564   : > { %1158 = vmatmul.msk.bf16.gmra.mxu1 %vm960_vm15, %v947_v28 }
 0x5c5   : > { %v976_v32 = vpop.f32.mrf.mxu1 }
 0x5c6   : > { %v977_v33 = vadd.f32 %v1197_v30, %v976_v32 }
 0x5c8   : > { %1159 = vst.msk [vmem:[%s1067_s30 + $0x18] sm:$0xff] %vm960_vm15, %v977_v33  ;;  %v995_v34 = vadd.f32 %v1170_v31, %v977_v33 }
 0x5ca   : > { %v998_v35 = vpack.c.bf16 %v995_v34, %v995_v34 }
 0x5cc   : > { %1002 = vst.msk [vmem:[%s254_s9] sm:$0xf] %vm1001_vm5, %v998_v35 }
 0x5cd   : > { %v978_v37 = vpop.f32.mrf.mxu1 }
 0x5ce   : > { %v979_v39 = vadd.f32 %v1197_v30, %v978_v37 }
 0x5d0   : > { %1160 = vst.msk [vmem:[%s1067_s30 + $0x20] sm:$0xff] %vm960_vm15, %v979_v39  ;;  %v996_v40 = vadd.f32 %v1171_v36, %v979_v39 }
 0x5d2   : > { %v999_v41 = vpack.c.bf16 %v996_v40, %v996_v40 }
 0x5d4   : > { %1003 = vst.msk [vmem:[%s254_s9 + $0x4] sm:$0xf] %vm1001_vm5, %v999_v41 }
 0x5e1   : > { %v981_v42 = vpop.f32.mrf.mxu1 }
 0x5e2   : > { %v982_v5 = vadd.f32 %v1197_v30, %v981_v42 }
 0x5e4   : > { %1161 = vst.msk [vmem:[%s1067_s30 + $0x28] sm:$0x3] %vm987_vm4, %v982_v5  ;;  %v997_v43 = vadd.f32 %v994_v1, %v982_v5 }
 0x5e6   : > { %v1000_v45 = vpack.c.bf16 %v997_v43, %v997_v43 }
 0x5e8   : > { %1005 = vst.msk [vmem:[%s254_s9 + $0x8] sm:$0x1] %vm1004_vm6, %v1000_v45 }
 0x5e9   : > { %v983_v46 = vpop.f32.mrf.mxu1 }
 0x5ea PF: > { %s17_s21 = sadd.s32 1, %s1252_s21  }
 0x5eb   : > { %p14_p4 = scmp.ge.s32.totalorder %s17_s21, 4  }
 0x5ed   :  { %16 = sbr.rel (!%p14_p4) target bundleno = 1 (0x1), region = 81 }

</bundles_post_ra>
